<compile_context>
chip_gen: v7x
topology: tpu7x:2x2x1
jax: 0.10.0
libtpu: 0.0.40
codegen_flags: <defaults>
</compile_context>

<pallas_src>
import functools
import math

import numpy as np
import jax
import jax.numpy as jnp
from jax import lax
from jax.experimental import pallas as pl
from jax.experimental.pallas import tpu as pltpu

HEADS = 2


# ----------------------------------------------------------------------------- utils
def _round_up(x, m):
    return ((x + m - 1) // m) * m


def _pick_vmem_limit():
    # v5e/v6e: 128 MiB physical VMEM -> ~96 MiB scoped; v7x: 64 MiB -> ~48 MiB.
    try:
        cap = int(pltpu.get_tpu_info().vmem_capacity_bytes)
        return max(32 * 1024 * 1024, min(96 * 1024 * 1024, (cap * 3) // 4))
    except Exception:
        return 32 * 1024 * 1024


_VMEM_LIMIT = _pick_vmem_limit()


# ----------------------------------------------------------------------------- Pallas kernels
# ---- fused multi-operand matmul: sum_i A_i @ B_i (+ bias), bf16 MXU / f32 acc ------
def _mm_multi_kernel(*refs, n, has_bias):
    o_ref = refs[-1]
    acc = jnp.dot(refs[0][...], refs[n][...], preferred_element_type=jnp.float32)
    for i in range(1, n):
        acc = acc + jnp.dot(refs[i][...], refs[n + i][...],
                            preferred_element_type=jnp.float32)
    if has_bias:
        acc = acc + refs[2 * n][...]
    o_ref[...] = acc.astype(o_ref.dtype)


@functools.lru_cache(maxsize=None)
def _mm_call(M, Ks, O, TM, has_bias, n):
    in_specs = [pl.BlockSpec((TM, K), lambda i: (i, 0)) for K in Ks]
    in_specs += [pl.BlockSpec((K, O), lambda i: (0, 0)) for K in Ks]
    if has_bias:
        in_specs.append(pl.BlockSpec((1, O), lambda i: (0, 0)))
    return pl.pallas_call(
        functools.partial(_mm_multi_kernel, n=n, has_bias=has_bias),
        out_shape=jax.ShapeDtypeStruct((M, O), jnp.float32),
        grid=(pl.cdiv(M, TM),),
        in_specs=in_specs,
        out_specs=pl.BlockSpec((TM, O), lambda i: (i, 0)),
        compiler_params=pltpu.CompilerParams(
            dimension_semantics=("parallel",),
            vmem_limit_bytes=_VMEM_LIMIT),
    )


def matmul_fused(a_list, b_list, bias=None):
    """sum_i a_i @ b_i (+ bias).  a_i: (M, K_i); b_i: (K_i, O) bf16; bias: (1, O) f32."""
    M = int(a_list[0].shape[0])
    O = int(b_list[0].shape[1])
    Mp = _round_up(max(M, 1), 8)
    if Mp != M:                       # defensive only; M is a multiple of 8 in this model
        a_list = [jnp.pad(a, ((0, Mp - M), (0, 0))) for a in a_list]
    TM = min(1024, Mp)
    Ks = tuple(int(a.shape[1]) for a in a_list)
    args = [a.astype(jnp.bfloat16) for a in a_list]
    args += [b.astype(jnp.bfloat16) for b in b_list]
    if bias is not None:
        args.append(bias.astype(jnp.float32))
    out = _mm_call(Mp, Ks, O, TM, bias is not None, len(a_list))(*args)
    return out if Mp == M else out[:M]


# ---- fused KxK stride-1 conv: im2col windows gathered inside the kernel ------------
def _convk_kernel(x_ref, w_ref, o_ref, *, k, H, W):
    # x_ref: (Hp, Wp, C) padded sample f32;  w_ref: (k*k, C, O) bf16;  o_ref: (H*W, O) f32
    acc = None
    for di in range(k):
        for dj in range(k):
            win = x_ref[pl.ds(di, H), pl.ds(dj, W), :]            # (H, W, C)
            a = win.reshape(H * W, win.shape[-1]).astype(jnp.bfloat16)
            d = jnp.dot(a, w_ref[di * k + dj], preferred_element_type=jnp.float32)
            acc = d if acc is None else acc + d
    o_ref[...] = acc


@functools.lru_cache(maxsize=None)
def _convk_call(N, Hp, Wp, C, O, k, H, W):
    return pl.pallas_call(
        functools.partial(_convk_kernel, k=k, H=H, W=W),
        out_shape=jax.ShapeDtypeStruct((N, H * W, O), jnp.float32),
        grid=(N,),
        in_specs=[pl.BlockSpec((None, Hp, Wp, C), lambda n: (n, 0, 0, 0)),
                  pl.BlockSpec((k * k, C, O), lambda n: (0, 0, 0))],
        out_specs=pl.BlockSpec((None, H * W, O), lambda n: (n, 0, 0)),
        compiler_params=pltpu.CompilerParams(
            dimension_semantics=("parallel",),
            vmem_limit_bytes=_VMEM_LIMIT),
    )


# ---- depthwise conv: taps gathered inside the kernel (NHWC) ------------------------
def _dw_kernel(x_ref, w_ref, o_ref, *, k, H, W):
    # x_ref: (Hp, Wp, C) padded sample,  w_ref: (k*k, C),  o_ref: (H, W, C)
    acc = None
    for di in range(k):
        for dj in range(k):
            tap = x_ref[pl.ds(di, H), pl.ds(dj, W), :]
            term = tap * w_ref[di * k + dj:di * k + dj + 1, :]
            acc = term if acc is None else acc + term
    o_ref[...] = acc


@functools.lru_cache(maxsize=None)
def _dw_call(N, Hp, Wp, C, k, H, W):
    return pl.pallas_call(
        functools.partial(_dw_kernel, k=k, H=H, W=W),
        out_shape=jax.ShapeDtypeStruct((N, H, W, C), jnp.float32),
        grid=(N,),
        in_specs=[pl.BlockSpec((None, Hp, Wp, C), lambda n: (n, 0, 0, 0)),
                  pl.BlockSpec((k * k, C), lambda n: (0, 0))],
        out_specs=pl.BlockSpec((None, H, W, C), lambda n: (n, 0, 0, 0)),
        compiler_params=pltpu.CompilerParams(
            dimension_semantics=("parallel",),
            vmem_limit_bytes=_VMEM_LIMIT),
    )


# ---- w_att attention: channels-last streaming, bf16 DMA, f32 norms / accumulation --
def _attn_kernel(t_ref, q_ref, k_ref, v_ref, o_ref, *, nh, d):
    # t_ref: (C, 1) f32 per-channel temperature (applied after normalization)
    # q_ref: (C, L) bf16 (channel-major);  k_ref / v_ref / o_ref: (L, C) bf16
    q = q_ref[...].astype(jnp.float32)
    k = k_ref[...].astype(jnp.float32)
    v = v_ref[...]
    qn = q * lax.rsqrt(jnp.maximum(jnp.sum(q * q, axis=1, keepdims=True), 1e-24))
    kn = k * lax.rsqrt(jnp.maximum(jnp.sum(k * k, axis=0, keepdims=True), 1e-24))
    qn = (qn * t_ref[...]).astype(jnp.bfloat16)
    kn = kn.astype(jnp.bfloat16)
    outs = []
    for h in range(nh):
        s = jnp.dot(qn[h * d:(h + 1) * d, :], kn[:, h * d:(h + 1) * d],
                    preferred_element_type=jnp.float32)                      # (d, d)
        s = s - jnp.max(s, axis=-1, keepdims=True)
        e = jnp.exp(s)
        p_att = e * pl.reciprocal(jnp.sum(e, axis=-1, keepdims=True), approx=True)
        out_h = lax.dot_general(v[:, h * d:(h + 1) * d], p_att.astype(jnp.bfloat16),
                                (((1,), (1,)), ((), ())),
                                preferred_element_type=jnp.float32)          # (L, d)
        outs.append(out_h)
    o_ref[...] = jnp.concatenate(outs, axis=-1).astype(o_ref.dtype)


@functools.lru_cache(maxsize=None)
def _attn_call(B, L, C, nh):
    d = C // nh
    return pl.pallas_call(
        functools.partial(_attn_kernel, nh=nh, d=d),
        out_shape=jax.ShapeDtypeStruct((B, L, C), jnp.bfloat16),
        grid=(B,),
        in_specs=[pl.BlockSpec((C, 1), lambda b: (0, 0)),
                  pl.BlockSpec((None, C, L), lambda b: (b, 0, 0)),
                  pl.BlockSpec((None, L, C), lambda b: (b, 0, 0)),
                  pl.BlockSpec((None, L, C), lambda b: (b, 0, 0))],
        out_specs=pl.BlockSpec((None, L, C), lambda b: (b, 0, 0)),
        compiler_params=pltpu.CompilerParams(
            dimension_semantics=("parallel",),
            vmem_limit_bytes=_VMEM_LIMIT),
    )


def _attn_reference(tvec, qT, kf, vf, nh):
    """Pure-jnp fallback with identical semantics (used only if the kernel probe fails)."""
    q = qT.astype(jnp.float32)
    k = kf.astype(jnp.float32)
    v = vf.astype(jnp.float32)
    b, c, L = q.shape
    d = c // nh
    qn = q * lax.rsqrt(jnp.maximum(jnp.sum(q * q, axis=2, keepdims=True), 1e-24))
    kn = k * lax.rsqrt(jnp.maximum(jnp.sum(k * k, axis=1, keepdims=True), 1e-24))
    qn = qn * tvec[None]
    qh = qn.reshape(b, nh, d, L)
    kh = jnp.transpose(kn.reshape(b, L, nh, d), (0, 2, 3, 1))
    vh = jnp.transpose(v.reshape(b, L, nh, d), (0, 2, 3, 1))
    s = jnp.einsum('bhdl,bhel->bhde', qh, kh)
    p_att = jax.nn.softmax(s, axis=-1)
    o = jnp.einsum('bhde,bhel->bhdl', p_att, vh).reshape(b, c, L)
    return jnp.transpose(o, (0, 2, 1)).astype(jnp.bfloat16)


# ----------------------------------------------------------------------------- lowering probes
def _probe(fn):
    try:
        jax.block_until_ready(fn())
        return True
    except Exception:
        return False


# Probe the two configurations of the fused 3x3 conv used by this model (patch-embed
# proj and the reconstruction head at full resolution).  Fallback: tap-sliced matmul.
_FUSED_CONV_OK = (
    _probe(lambda: _convk_call(1, 18, 18, 3, 8, 3, 16, 16)(
        jnp.zeros((1, 18, 18, 3), jnp.float32), jnp.zeros((9, 3, 8), jnp.bfloat16)))
    and _probe(lambda: _convk_call(1, 18, 18, 8, 3, 3, 16, 16)(
        jnp.zeros((1, 18, 18, 8), jnp.float32), jnp.zeros((9, 8, 3), jnp.bfloat16))))


def _attn_probe_one(L, c):
    return _probe(lambda: _attn_call(1, L, c, HEADS)(
        jnp.zeros((c, 1), jnp.float32),
        jnp.zeros((1, c, L), jnp.bfloat16),
        jnp.zeros((1, L, c), jnp.bfloat16),
        jnp.zeros((1, L, c), jnp.bfloat16)))


_ATTN_KERNEL_OK = all(_attn_probe_one(L, c) for (L, c) in ((64, 8), (16, 16), (4, 32)))


# ----------------------------------------------------------------------------- conv wrappers (NHWC)
def conv1x1_multi(xs, ws, b=None):
    """1x1 conv of several channel groups (== conv of their concat), no concat in HBM."""
    sh = xs[0].shape
    O = int(ws[0].shape[1])
    y = matmul_fused([t.reshape(-1, t.shape[-1]) for t in xs], list(ws), bias=b)
    return y.reshape(sh[:-1] + (O,))


def conv1x1(x, w, b=None):
    return conv1x1_multi([x], [w], b)


def _conv_taps(x, w, stride):
    """3x3 conv (pad 1, given stride) via wrapper tap slices + fused multi-matmul."""
    N, H, W, C = x.shape
    O = int(w.shape[2])
    Ho = (H - 1) // stride + 1
    Wo = (W - 1) // stride + 1
    xp = jnp.pad(x, ((0, 0), (1, 1), (1, 1), (0, 0)))
    a_list, b_list = [], []
    for di in range(3):
        for dj in range(3):
            tap = xp[:, di:di + (Ho - 1) * stride + 1:stride,
                     dj:dj + (Wo - 1) * stride + 1:stride, :]
            a_list.append(tap.reshape(-1, C))
            b_list.append(w[di * 3 + dj])
    return matmul_fused(a_list, b_list).reshape(N, Ho, Wo, O)


def conv3x3(x, w):
    """3x3, stride 1, pad 1, groups=1.  Fused window-gather kernel when available."""
    N, H, W, C = x.shape
    O = int(w.shape[2])
    if _FUSED_CONV_OK:
        xp = jnp.pad(x, ((0, 0), (1, 1), (1, 1), (0, 0))).astype(jnp.float32)
        y = _convk_call(N, H + 2, W + 2, C, O, 3, H, W)(xp, w)
        return y.reshape(N, H, W, O)
    return _conv_taps(x, w, stride=1)


def dwconv(x, w, b=None):
    """Depthwise conv, stride 1, pad k//2.  w: (k*k, C) f32; taps gathered in-kernel."""
    N, H, W, C = x.shape
    k = int(round(math.sqrt(int(w.shape[0]))))
    p = k // 2
    xp = jnp.pad(x.astype(jnp.float32), ((0, 0), (p, p), (p, p), (0, 0)))
    out = _dw_call(N, H + 2 * p, W + 2 * p, C, k, H, W)(xp, w)
    if b is not None:
        out = out + b
    return out


def conv_transpose_subpixel(x, shift_ws):
    """ConvTranspose2d (k=3, s=2, p=1, op=1, no bias) via sub-pixel decomposition.

    shift_ws: 4 matrices (Cin, 4*Cout) for the shifts [id, +w, +h, +hw]; phase columns
    ordered [(0,0),(0,1),(1,0),(1,1)].
    """
    N, H, W, C = x.shape
    Cout = int(shift_ws[0].shape[1]) // 4
    xs_w = jnp.pad(x[:, :, 1:, :], ((0, 0), (0, 0), (0, 1), (0, 0)))
    xs_h = jnp.pad(x[:, 1:, :, :], ((0, 0), (0, 1), (0, 0), (0, 0)))
    xs_hw = jnp.pad(x[:, 1:, 1:, :], ((0, 0), (0, 1), (0, 1), (0, 0)))
    a_list = [t.reshape(-1, C) for t in (x, xs_w, xs_h, xs_hw)]
    y4 = matmul_fused(a_list, list(shift_ws))                    # (N*H*W, 4*Cout)
    y4 = y4.reshape(N, H, W, 2, 2, Cout)
    return jnp.transpose(y4, (0, 1, 3, 2, 4, 5)).reshape(N, 2 * H, 2 * W, Cout)


def bilinear_resize(x, scale):
    """nn.Upsample(mode='bilinear', align_corners=False) equivalent, NHWC."""
    N, H, W, C = x.shape
    Ho = int(math.floor(H * scale + 1e-9))
    Wo = int(math.floor(W * scale + 1e-9))

    def idx(in_size, out_size):
        ratio = in_size / out_size
        src = (np.arange(out_size) + 0.5) * ratio - 0.5
        src = np.clip(src, 0.0, None)
        i0 = np.minimum(np.floor(src).astype(np.int32), in_size - 1)
        i1 = np.minimum(i0 + 1, in_size - 1)
        frac = (src - i0).astype(np.float32)
        return i0, i1, frac

    r0, r1, rf = idx(H, Ho)
    c0, c1, cf = idx(W, Wo)
    rf = jnp.asarray(rf)[None, :, None, None]
    cf = jnp.asarray(cf)[None, None, :, None]
    top = x[:, r0, :, :] * (1.0 - rf) + x[:, r1, :, :] * rf
    return top[:, :, c0, :] * (1.0 - cf) + top[:, :, c1, :] * cf


def attention(tvec, qT, kf, vf, nh):
    if _ATTN_KERNEL_OK:
        b, L, c = kf.shape
        return _attn_call(int(b), int(L), int(c), nh)(tvec, qT, kf, vf)
    return _attn_reference(tvec, qT, kf, vf, nh)


# ----------------------------------------------------------------------------- wavelet glue (NHWC)
def dwt2(x):
    b, h, w, c = x.shape
    t = x.reshape(b, h // 2, 2, w // 2, 2, c)
    x1 = t[:, :, 0, :, 0, :] * 0.5
    x2 = t[:, :, 1, :, 0, :] * 0.5
    x3 = t[:, :, 0, :, 1, :] * 0.5
    x4 = t[:, :, 1, :, 1, :] * 0.5
    LL = x1 + x2 + x3 + x4
    HL = -x1 - x2 + x3 + x4
    LH = -x1 + x2 - x3 + x4
    HH = x1 - x2 - x3 + x4
    return LL, HL, LH, HH


def iwt2(x):
    b, h, w, c4 = x.shape
    oc = c4 // 4
    x1 = x[..., 0:oc] * 0.5
    x2 = x[..., oc:2 * oc] * 0.5
    x3 = x[..., 2 * oc:3 * oc] * 0.5
    x4 = x[..., 3 * oc:] * 0.5
    p00 = x1 - x2 - x3 + x4       # (even row, even col)
    p10 = x1 - x2 + x3 - x4       # (odd row,  even col)
    p01 = x1 + x2 - x3 - x4       # (even row, odd col)
    p11 = x1 + x2 + x3 + x4       # (odd row,  odd col)
    r0 = jnp.stack([p00, p01], axis=3)        # (b, h, w, 2(pw), oc)
    r1 = jnp.stack([p10, p11], axis=3)
    t = jnp.stack([r0, r1], axis=2)           # (b, h, 2(ph), w, 2(pw), oc)
    return t.reshape(b, 2 * h, 2 * w, oc)


# ----------------------------------------------------------------------------- module forwards
def prelu(x, alpha):
    return jnp.where(x >= 0, x, alpha * x)


def layernorm(p, x):
    mu = jnp.mean(x, axis=-1, keepdims=True)
    xc = x - mu
    var = jnp.mean(xc * xc, axis=-1, keepdims=True)
    return xc * lax.rsqrt(var + 1e-5) * p['g'] + p['b']


def eca_apply(p, x):
    c = x.shape[-1]
    y = jnp.mean(x, axis=(1, 2))                              # adaptive avg pool -> (b, c)
    yp = jnp.pad(y, ((0, 0), (1, 1)))
    w = p['w']
    z = w[:, 0] * yp[:, 0:c] + w[:, 1] * yp[:, 1:c + 1] + w[:, 2] * yp[:, 2:c + 2]
    return x * jax.nn.sigmoid(z)[:, None, None, :]


def hfe_apply(p, hf):
    b, h, w, c3 = hf.shape
    c = c3 // 3
    hx = hf.reshape(b, h, w, 3, c)
    G0 = jnp.einsum('bhwpc,cp->bhwc', hx, p['hf_agg'])        # grouped Conv3d (3,1,1)
    G1 = dwconv(G0, p['g1'])                                  # 3x3 Gaussian, depthwise
    G2 = dwconv(G0, p['g2'])                                  # 5x5 Gaussian, depthwise
    D = p['detail_agg']
    det = D[:, 0] * G0 + D[:, 1] * (G0 - G1) + D[:, 2] * (G1 - G2)
    return conv1x1(det, p['fa']['w'], p['fa']['b'])


def fd_apply(p, x):
    hidden = int(p['pout']['w'].shape[0])
    y = dwconv(conv1x1(x, p['pin']['w']), p['conv'])
    x1 = y[..., :hidden]
    x2 = y[..., hidden:]
    return conv1x1(jax.nn.gelu(x1, approximate=False) * x2, p['pout']['w'])


def w_att_apply(p, x):
    b, h, w, c = x.shape
    LL, HL, LH, HH = dwt2(x)
    low_e = eca_apply(p['eca'], LL)
    high_e = hfe_apply(p['hfe'], jnp.concatenate([HL, LH, HH], axis=-1))
    restored = iwt2(jnp.concatenate([low_e, high_e], axis=-1))         # (b, h, w, c)

    kv = dwconv(conv1x1(x, p['qkv']['w']), p['qkv_conv'])
    k = kv[..., :c]
    v = kv[..., c:]

    nh = int(p['temp'].shape[0])
    d = c // nh
    L = h * w
    tvec = jnp.repeat(p['temp'], d).reshape(c, 1)                      # per-channel temperature
    qT = jnp.transpose(restored.reshape(b, L, c), (0, 2, 1)).astype(jnp.bfloat16)
    kf = k.reshape(b, L, c).astype(jnp.bfloat16)
    vf = v.reshape(b, L, c).astype(jnp.bfloat16)
    out = attention(tvec, qT, kf, vf, nh).reshape(b, h, w, c)          # bf16
    return conv1x1(out, p['proj']['w'])


def transformer_block(p, x):
    x_ = x
    x = x + w_att_apply(p['watt'], layernorm(p['n1'], x))
    x = x + fd_apply(p['ffn'], layernorm(p['n2'], x))
    LL, HL, LH, HH = dwt2(x_)
    low_e = eca_apply(p['eca'], LL)
    high_e = hfe_apply(p['hfe'], jnp.concatenate([HL, LH, HH], axis=-1))
    restored = iwt2(jnp.concatenate([low_e, high_e], axis=-1))
    # fuse conv over cat([restored, x]) as a 2-operand fused matmul (no concat in HBM)
    return conv1x1_multi([restored, x], [p['conv']['w_r'], p['conv']['w_x']])


def patch_embed_apply(p, x_nchw):
    x = jnp.transpose(x_nchw, (0, 2, 3, 1))                            # -> NHWC, done once
    f = conv3x3(x, p['proj']['w'])
    bf = conv1x1(dwconv(f, p['sb']['dw'], p['sb']['dwb']),
                 p['sb']['pw']['w'], p['sb']['pw']['b'])
    rf = conv1x1(dwconv(f, p['sr']['dw'], p['sr']['dwb']),
                 p['sr']['pw']['w'], p['sr']['pw']['b'])
    return bf, rf


def rrb_apply(p, xb, xr):
    recon_B = conv3x3(xb, p['B']['w'])
    recon_R = conv3x3(xr, p['R']['w'])
    to_nchw = lambda t: jnp.transpose(t, (0, 3, 1, 2))
    return to_nchw(recon_B), to_nchw(recon_B + recon_R), to_nchw(recon_R)


# ----------------------------------------------------------------------------- jitted stages
# Block-level jit keeps compile time bounded: repeated transformer blocks at the same
# (channels, resolution) reuse one executable, and all glue fuses inside each jit.
_jit_tb = jax.jit(transformer_block)
_jit_patch_embed = jax.jit(patch_embed_apply)
_jit_rrb = jax.jit(rrb_apply)


@jax.jit
def _tad_pre(p_down, alpha, xR):
    return prelu(_conv_taps(xR, p_down['w'], stride=2), alpha)


@jax.jit
def _tad_post(p_lfsfb, alpha, r0, r):
    res = prelu(conv1x1(r0, p_lfsfb['fs']['w']), alpha)
    return prelu(conv_transpose_subpixel(r + res, p_lfsfb['ffu']['shifts']), alpha)


@functools.partial(jax.jit, static_argnames=('scale',))
def _resize_conv(w, x, scale):
    return conv1x1(bilinear_resize(x, scale), w)


@jax.jit
def _fuse_conv(pc, x0, x1, x2):
    return conv1x1_multi([x0, x1, x2], [pc['w0'], pc['w1'], pc['w2']], pc['b'])


def tad_apply(p, alpha, xB, xR):
    r0 = _tad_pre(p['down_R'], alpha, xR)
    r = r0
    for tbp in p['body']:
        r = _jit_tb(tbp, r)
    return xB, _tad_post(p['lfsfb'], alpha, r0, r)


def model_forward(P, x):
    alpha = P['alpha']
    B_fea, R_fea = _jit_patch_embed(P['patch_embed'], x)

    outB0, outR0 = tad_apply(P['crb_0'], alpha, B_fea, R_fea)

    Bd1 = _resize_conv(P['down0_1']['B']['w'], B_fea, scale=0.5)
    Rd1 = _resize_conv(P['down0_1']['R']['w'], R_fea, scale=0.5)
    outB1, outR1 = tad_apply(P['crb_1'], alpha, Bd1, Rd1)
    Bu10 = _resize_conv(P['up1_0']['B']['w'], outB1, scale=2.0)
    Ru10 = _resize_conv(P['up1_0']['R']['w'], outR1, scale=2.0)

    Bd2 = _resize_conv(P['down0_2']['B']['w'], B_fea, scale=0.25)
    Rd2 = _resize_conv(P['down0_2']['R']['w'], R_fea, scale=0.25)
    outB2, outR2 = tad_apply(P['crb_2'], alpha, Bd2, Rd2)
    Bu20 = _resize_conv(P['up2_0']['B']['w'], outB2, scale=4.0)
    Ru20 = _resize_conv(P['up2_0']['R']['w'], outR2, scale=4.0)

    Bfuse = _fuse_conv(P['point_conv_B'], outB0, Bu10, Bu20)
    # NOTE: the original forward (re)uses point_conv_B for the R branch too.
    Rfuse = _fuse_conv(P['point_conv_B'], outR0, Ru10, Ru20)

    xb, xr = Bfuse, Rfuse
    for tp in P['crb_3']:
        xb, xr = tad_apply(tp, alpha, xb, xr)

    return _jit_rrb(P['rrb'], xb, xr)   # (img_B, img_R, streak), NCHW


# ----------------------------------------------------------------------------- deterministic parameter init
class Rng:
    def __init__(self, seed):
        self._key = jax.random.PRNGKey(seed)

    def next(self):
        self._key, sub = jax.random.split(self._key)
        return sub


def _normal(rng, shape, scale):
    return scale * jax.random.normal(rng.next(), shape, jnp.float32)


def conv1x1_p(rng, cin, cout, bias):
    p = {'w': _normal(rng, (cin, cout), 1.0 / math.sqrt(cin)).astype(jnp.bfloat16)}
    if bias:
        p['b'] = _normal(rng, (1, cout), 0.02)
    return p


def conv3x3_p(rng, cin, cout):
    # tap-major layout (k*k, Cin, Cout) shared by the fused kernel and the tap fallback
    w = _normal(rng, (9, cin, cout), 1.0 / math.sqrt(cin * 9))
    return {'w': w.astype(jnp.bfloat16)}


def dw_p(rng, c, k):
    return _normal(rng, (k * k, c), 1.0 / k)


def dsc_p(rng, cin, cout):
    return {'dw': dw_p(rng, cin, 3), 'dwb': _normal(rng, (cin,), 0.02),
            'pw': conv1x1_p(rng, cin, cout, True)}


def eca_p(rng, c):
    return {'w': _normal(rng, (c, 3), 0.5)}


def gauss2d(k, sigma):
    ax = np.arange(k, dtype=np.float64) - (k - 1) / 2.0
    g = np.exp(-(ax ** 2) / (2.0 * sigma * sigma))
    g /= g.sum()
    return np.outer(g, g).astype(np.float32)


def hfe_p(rng, c):
    s = 2.0 ** (1.0 / 3.0)
    sigma = 1.6
    g1 = np.repeat(gauss2d(3, sigma * s).reshape(9, 1), c, axis=1)
    g2 = np.repeat(gauss2d(5, sigma * s * s).reshape(25, 1), c, axis=1)
    return {'hf_agg': _normal(rng, (c, 3), 1.0 / math.sqrt(3)),
            'g1': jnp.asarray(g1, jnp.float32), 'g2': jnp.asarray(g2, jnp.float32),
            'detail_agg': _normal(rng, (c, 3), 1.0 / math.sqrt(3)),
            'fa': conv1x1_p(rng, c, 3 * c, True)}


def fd_p(rng, c):
    h = int(c * 2.66)
    return {'pin': conv1x1_p(rng, c, 2 * h, False),
            'conv': dw_p(rng, 2 * h, 3),
            'pout': conv1x1_p(rng, h, c, False)}


def watt_p(rng, c):
    return {'temp': jnp.ones((HEADS,), jnp.float32),
            'qkv': conv1x1_p(rng, c, 2 * c, False),
            'qkv_conv': dw_p(rng, 2 * c, 3),
            'proj': conv1x1_p(rng, c, c, False),
            'eca': eca_p(rng, c),
            'hfe': hfe_p(rng, c)}


def ffu_p(rng, c):
    # ConvTranspose2d weight (Cin, Cout, 3, 3) re-packed into sub-pixel shift matrices.
    w = _normal(rng, (c, c, 3, 3), 1.0 / math.sqrt(c * 9))
    Z = jnp.zeros((c, c), jnp.float32)
    blk = lambda kh, kw: w[:, :, kh, kw]
    shifts = [
        jnp.concatenate([blk(1, 1), blk(1, 2), blk(2, 1), blk(2, 2)], axis=1),  # x[m,   l  ]
        jnp.concatenate([Z, blk(1, 0), Z, blk(2, 0)], axis=1),                  # x[m,   l+1]
        jnp.concatenate([Z, Z, blk(0, 1), blk(0, 2)], axis=1),                  # x[m+1, l  ]
        jnp.concatenate([Z, Z, Z, blk(0, 0)], axis=1),                          # x[m+1, l+1]
    ]
    return {'shifts': [s.astype(jnp.bfloat16) for s in shifts]}


def tb_p(rng, c):
    return {'n1': {'g': jnp.ones((c,), jnp.float32), 'b': jnp.zeros((c,), jnp.float32)},
            'n2': {'g': jnp.ones((c,), jnp.float32), 'b': jnp.zeros((c,), jnp.float32)},
            'watt': watt_p(rng, c),
            'ffn': fd_p(rng, c),
            'eca': eca_p(rng, c),
            'hfe': hfe_p(rng, c),
            'conv': {'w_r': _normal(rng, (c, c), 1.0 / math.sqrt(2 * c)).astype(jnp.bfloat16),
                     'w_x': _normal(rng, (c, c), 1.0 / math.sqrt(2 * c)).astype(jnp.bfloat16)}}


def tad_p(rng, c, num_rb):
    return {'down_R': conv3x3_p(rng, c, c),
            'body': [tb_p(rng, c) for _ in range(num_rb)],
            'lfsfb': {'fs': conv1x1_p(rng, c, c, False), 'ffu': ffu_p(rng, c)}}


def init_model(rng, in_c, n_feat):
    nf = n_feat
    P = {}
    P['alpha'] = jnp.float32(0.25)   # shared nn.PReLU() instance
    P['patch_embed'] = {'proj': conv3x3_p(rng, in_c, nf),
                        'sb': dsc_p(rng, nf, nf),
                        'sr': dsc_p(rng, nf, nf)}
    P['down0_1'] = {'B': conv1x1_p(rng, nf, 2 * nf, False), 'R': conv1x1_p(rng, nf, 2 * nf, False)}
    P['down0_2'] = {'B': conv1x1_p(rng, nf, 4 * nf, False), 'R': conv1x1_p(rng, nf, 4 * nf, False)}
    P['crb_0'] = tad_p(rng, nf, 8)
    P['crb_1'] = tad_p(rng, 2 * nf, 4)
    P['crb_2'] = tad_p(rng, 4 * nf, 4)
    P['crb_3'] = [tad_p(rng, nf, 4) for _ in range(3)]
    P['up1_0'] = {'B': conv1x1_p(rng, 2 * nf, nf, False), 'R': conv1x1_p(rng, 2 * nf, nf, False)}
    P['up2_0'] = {'B': conv1x1_p(rng, 4 * nf, nf, False), 'R': conv1x1_p(rng, 4 * nf, nf, False)}
    sc = 1.0 / math.sqrt(3 * nf)
    P['point_conv_B'] = {'w0': _normal(rng, (nf, nf), sc).astype(jnp.bfloat16),
                         'w1': _normal(rng, (nf, nf), sc).astype(jnp.bfloat16),
                         'w2': _normal(rng, (nf, nf), sc).astype(jnp.bfloat16),
                         'b': _normal(rng, (1, nf), 0.02)}
    # point_conv_R exists in __init__ but is never used by MODEL.forward (original bug kept).
    P['rrb'] = {'B': conv3x3_p(rng, nf, 3), 'R': conv3x3_p(rng, nf, 3)}
    return P


# ----------------------------------------------------------------------------- main
if __name__ == "__main__":
    rng = Rng(0)
    in_c, n_feat = 3, 8
    params = init_model(rng, in_c, n_feat)

    x = jax.random.normal(jax.random.PRNGKey(0), (2, in_c, 16, 16), jnp.float32)

    img_B, img_R, streak = model_forward(params, x)
    jax.block_until_ready((img_B, img_R, streak))

    assert img_B.shape == (2, 3, 16, 16)
    assert img_R.shape == (2, 3, 16, 16)
    assert streak.shape == (2, 3, 16, 16)
    print("KERNEL_OK")
</pallas_src>

<mosaic_0001>
module attributes {stable_mosaic.version = 11 : i64} {
  func.func @_convk_kernel(%arg0: i32, %arg1: memref<1x18x18x3xf32, #tpu.memory_space<vmem>>, %arg2: memref<9x3x8xbf16, #tpu.memory_space<vmem>>, %arg3: memref<1x256x8xf32, #tpu.memory_space<vmem>>) attributes {dimension_semantics = [#tpu.dimension_semantics<parallel>], iteration_bounds = array<i64: 1>, scalar_prefetch = 0 : i64, scratch_operands = 0 : i64, tpu.core_type = #tpu.core_type<tc>, window_params = [{transform_indices = @transform_0, window_bounds = array<i64: 1, 18, 18, 3>}, {pipeline_mode = #tpu.pipeline_mode<synchronous>, transform_indices = @transform_1, window_bounds = array<i64: 9, 3, 8>}, {transform_indices = @transform_2, window_bounds = array<i64: 1, 256, 8>}]} {
    %c0 = arith.constant 0 : index
    %c0_0 = arith.constant 0 : index
    %c0_1 = arith.constant 0 : index
    %c0_2 = arith.constant 0 : index
    %0 = vector.load %arg1[%c0, %c0_0, %c0_1, %c0_2] : memref<1x18x18x3xf32, #tpu.memory_space<vmem>>, vector<1x16x16x3xf32>
    %1 = vector.shape_cast %0 : vector<1x16x16x3xf32> to vector<16x16x3xf32>
    %2 = vector.shape_cast %1 : vector<16x16x3xf32> to vector<256x3xf32>
    %3 = arith.truncf %2 : vector<256x3xf32> to vector<256x3xbf16>
    %c0_3 = arith.constant 0 : index
    %c0_4 = arith.constant 0 : index
    %c0_5 = arith.constant 0 : index
    %4 = vector.load %arg2[%c0_3, %c0_4, %c0_5] : memref<9x3x8xbf16, #tpu.memory_space<vmem>>, vector<1x3x8xbf16>
    %5 = vector.shape_cast %4 : vector<1x3x8xbf16> to vector<3x8xbf16>
    %cst = arith.constant dense<0.000000e+00> : vector<256x8xf32>
    %6 = tpu.matmul %3, %5, %cst {dimension_numbers = #tpu.dot_dimension_numbers<[1], [0], [0], [1], [0, 0, 1, 1], [], []>} : vector<256x3xbf16>, vector<3x8xbf16>, vector<256x8xf32> -> vector<256x8xf32>
    %c0_6 = arith.constant 0 : index
    %c0_7 = arith.constant 0 : index
    %c1 = arith.constant 1 : index
    %c0_8 = arith.constant 0 : index
    %7 = vector.load %arg1[%c0_6, %c0_7, %c1, %c0_8] : memref<1x18x18x3xf32, #tpu.memory_space<vmem>>, vector<1x16x16x3xf32>
    %8 = vector.shape_cast %7 : vector<1x16x16x3xf32> to vector<16x16x3xf32>
    %9 = vector.shape_cast %8 : vector<16x16x3xf32> to vector<256x3xf32>
    %10 = arith.truncf %9 : vector<256x3xf32> to vector<256x3xbf16>
    %c1_9 = arith.constant 1 : index
    %c0_10 = arith.constant 0 : index
    %c0_11 = arith.constant 0 : index
    %11 = vector.load %arg2[%c1_9, %c0_10, %c0_11] : memref<9x3x8xbf16, #tpu.memory_space<vmem>>, vector<1x3x8xbf16>
    %12 = vector.shape_cast %11 : vector<1x3x8xbf16> to vector<3x8xbf16>
    %cst_12 = arith.constant dense<0.000000e+00> : vector<256x8xf32>
    %13 = tpu.matmul %10, %12, %cst_12 {dimension_numbers = #tpu.dot_dimension_numbers<[1], [0], [0], [1], [0, 0, 1, 1], [], []>} : vector<256x3xbf16>, vector<3x8xbf16>, vector<256x8xf32> -> vector<256x8xf32>
    %14 = arith.addf %6, %13 : vector<256x8xf32>
    %c0_13 = arith.constant 0 : index
    %c0_14 = arith.constant 0 : index
    %c2 = arith.constant 2 : index
    %c0_15 = arith.constant 0 : index
    %15 = vector.load %arg1[%c0_13, %c0_14, %c2, %c0_15] : memref<1x18x18x3xf32, #tpu.memory_space<vmem>>, vector<1x16x16x3xf32>
    %16 = vector.shape_cast %15 : vector<1x16x16x3xf32> to vector<16x16x3xf32>
    %17 = vector.shape_cast %16 : vector<16x16x3xf32> to vector<256x3xf32>
    %18 = arith.truncf %17 : vector<256x3xf32> to vector<256x3xbf16>
    %c2_16 = arith.constant 2 : index
    %c0_17 = arith.constant 0 : index
    %c0_18 = arith.constant 0 : index
    %19 = vector.load %arg2[%c2_16, %c0_17, %c0_18] : memref<9x3x8xbf16, #tpu.memory_space<vmem>>, vector<1x3x8xbf16>
    %20 = vector.shape_cast %19 : vector<1x3x8xbf16> to vector<3x8xbf16>
    %cst_19 = arith.constant dense<0.000000e+00> : vector<256x8xf32>
    %21 = tpu.matmul %18, %20, %cst_19 {dimension_numbers = #tpu.dot_dimension_numbers<[1], [0], [0], [1], [0, 0, 1, 1], [], []>} : vector<256x3xbf16>, vector<3x8xbf16>, vector<256x8xf32> -> vector<256x8xf32>
    %22 = arith.addf %14, %21 : vector<256x8xf32>
    %c0_20 = arith.constant 0 : index
    %c1_21 = arith.constant 1 : index
    %c0_22 = arith.constant 0 : index
    %c0_23 = arith.constant 0 : index
    %23 = vector.load %arg1[%c0_20, %c1_21, %c0_22, %c0_23] : memref<1x18x18x3xf32, #tpu.memory_space<vmem>>, vector<1x16x16x3xf32>
    %24 = vector.shape_cast %23 : vector<1x16x16x3xf32> to vector<16x16x3xf32>
    %25 = vector.shape_cast %24 : vector<16x16x3xf32> to vector<256x3xf32>
    %26 = arith.truncf %25 : vector<256x3xf32> to vector<256x3xbf16>
    %c3 = arith.constant 3 : index
    %c0_24 = arith.constant 0 : index
    %c0_25 = arith.constant 0 : index
    %27 = vector.load %arg2[%c3, %c0_24, %c0_25] : memref<9x3x8xbf16, #tpu.memory_space<vmem>>, vector<1x3x8xbf16>
    %28 = vector.shape_cast %27 : vector<1x3x8xbf16> to vector<3x8xbf16>
    %cst_26 = arith.constant dense<0.000000e+00> : vector<256x8xf32>
    %29 = tpu.matmul %26, %28, %cst_26 {dimension_numbers = #tpu.dot_dimension_numbers<[1], [0], [0], [1], [0, 0, 1, 1], [], []>} : vector<256x3xbf16>, vector<3x8xbf16>, vector<256x8xf32> -> vector<256x8xf32>
    %30 = arith.addf %22, %29 : vector<256x8xf32>
    %c0_27 = arith.constant 0 : index
    %c1_28 = arith.constant 1 : index
    %c1_29 = arith.constant 1 : index
    %c0_30 = arith.constant 0 : index
    %31 = vector.load %arg1[%c0_27, %c1_28, %c1_29, %c0_30] : memref<1x18x18x3xf32, #tpu.memory_space<vmem>>, vector<1x16x16x3xf32>
    %32 = vector.shape_cast %31 : vector<1x16x16x3xf32> to vector<16x16x3xf32>
    %33 = vector.shape_cast %32 : vector<16x16x3xf32> to vector<256x3xf32>
    %34 = arith.truncf %33 : vector<256x3xf32> to vector<256x3xbf16>
    %c4 = arith.constant 4 : index
    %c0_31 = arith.constant 0 : index
    %c0_32 = arith.constant 0 : index
    %35 = vector.load %arg2[%c4, %c0_31, %c0_32] : memref<9x3x8xbf16, #tpu.memory_space<vmem>>, vector<1x3x8xbf16>
    %36 = vector.shape_cast %35 : vector<1x3x8xbf16> to vector<3x8xbf16>
    %cst_33 = arith.constant dense<0.000000e+00> : vector<256x8xf32>
    %37 = tpu.matmul %34, %36, %cst_33 {dimension_numbers = #tpu.dot_dimension_numbers<[1], [0], [0], [1], [0, 0, 1, 1], [], []>} : vector<256x3xbf16>, vector<3x8xbf16>, vector<256x8xf32> -> vector<256x8xf32>
    %38 = arith.addf %30, %37 : vector<256x8xf32>
    %c0_34 = arith.constant 0 : index
    %c1_35 = arith.constant 1 : index
    %c2_36 = arith.constant 2 : index
    %c0_37 = arith.constant 0 : index
    %39 = vector.load %arg1[%c0_34, %c1_35, %c2_36, %c0_37] : memref<1x18x18x3xf32, #tpu.memory_space<vmem>>, vector<1x16x16x3xf32>
    %40 = vector.shape_cast %39 : vector<1x16x16x3xf32> to vector<16x16x3xf32>
    %41 = vector.shape_cast %40 : vector<16x16x3xf32> to vector<256x3xf32>
    %42 = arith.truncf %41 : vector<256x3xf32> to vector<256x3xbf16>
    %c5 = arith.constant 5 : index
    %c0_38 = arith.constant 0 : index
    %c0_39 = arith.constant 0 : index
    %43 = vector.load %arg2[%c5, %c0_38, %c0_39] : memref<9x3x8xbf16, #tpu.memory_space<vmem>>, vector<1x3x8xbf16>
    %44 = vector.shape_cast %43 : vector<1x3x8xbf16> to vector<3x8xbf16>
    %cst_40 = arith.constant dense<0.000000e+00> : vector<256x8xf32>
    %45 = tpu.matmul %42, %44, %cst_40 {dimension_numbers = #tpu.dot_dimension_numbers<[1], [0], [0], [1], [0, 0, 1, 1], [], []>} : vector<256x3xbf16>, vector<3x8xbf16>, vector<256x8xf32> -> vector<256x8xf32>
    %46 = arith.addf %38, %45 : vector<256x8xf32>
    %c0_41 = arith.constant 0 : index
    %c2_42 = arith.constant 2 : index
    %c0_43 = arith.constant 0 : index
    %c0_44 = arith.constant 0 : index
    %47 = vector.load %arg1[%c0_41, %c2_42, %c0_43, %c0_44] : memref<1x18x18x3xf32, #tpu.memory_space<vmem>>, vector<1x16x16x3xf32>
    %48 = vector.shape_cast %47 : vector<1x16x16x3xf32> to vector<16x16x3xf32>
    %49 = vector.shape_cast %48 : vector<16x16x3xf32> to vector<256x3xf32>
    %50 = arith.truncf %49 : vector<256x3xf32> to vector<256x3xbf16>
    %c6 = arith.constant 6 : index
    %c0_45 = arith.constant 0 : index
    %c0_46 = arith.constant 0 : index
    %51 = vector.load %arg2[%c6, %c0_45, %c0_46] : memref<9x3x8xbf16, #tpu.memory_space<vmem>>, vector<1x3x8xbf16>
    %52 = vector.shape_cast %51 : vector<1x3x8xbf16> to vector<3x8xbf16>
    %cst_47 = arith.constant dense<0.000000e+00> : vector<256x8xf32>
    %53 = tpu.matmul %50, %52, %cst_47 {dimension_numbers = #tpu.dot_dimension_numbers<[1], [0], [0], [1], [0, 0, 1, 1], [], []>} : vector<256x3xbf16>, vector<3x8xbf16>, vector<256x8xf32> -> vector<256x8xf32>
    %54 = arith.addf %46, %53 : vector<256x8xf32>
    %c0_48 = arith.constant 0 : index
    %c2_49 = arith.constant 2 : index
    %c1_50 = arith.constant 1 : index
    %c0_51 = arith.constant 0 : index
    %55 = vector.load %arg1[%c0_48, %c2_49, %c1_50, %c0_51] : memref<1x18x18x3xf32, #tpu.memory_space<vmem>>, vector<1x16x16x3xf32>
    %56 = vector.shape_cast %55 : vector<1x16x16x3xf32> to vector<16x16x3xf32>
    %57 = vector.shape_cast %56 : vector<16x16x3xf32> to vector<256x3xf32>
    %58 = arith.truncf %57 : vector<256x3xf32> to vector<256x3xbf16>
    %c7 = arith.constant 7 : index
    %c0_52 = arith.constant 0 : index
    %c0_53 = arith.constant 0 : index
    %59 = vector.load %arg2[%c7, %c0_52, %c0_53] : memref<9x3x8xbf16, #tpu.memory_space<vmem>>, vector<1x3x8xbf16>
    %60 = vector.shape_cast %59 : vector<1x3x8xbf16> to vector<3x8xbf16>
    %cst_54 = arith.constant dense<0.000000e+00> : vector<256x8xf32>
    %61 = tpu.matmul %58, %60, %cst_54 {dimension_numbers = #tpu.dot_dimension_numbers<[1], [0], [0], [1], [0, 0, 1, 1], [], []>} : vector<256x3xbf16>, vector<3x8xbf16>, vector<256x8xf32> -> vector<256x8xf32>
    %62 = arith.addf %54, %61 : vector<256x8xf32>
    %c0_55 = arith.constant 0 : index
    %c2_56 = arith.constant 2 : index
    %c2_57 = arith.constant 2 : index
    %c0_58 = arith.constant 0 : index
    %63 = vector.load %arg1[%c0_55, %c2_56, %c2_57, %c0_58] : memref<1x18x18x3xf32, #tpu.memory_space<vmem>>, vector<1x16x16x3xf32>
    %64 = vector.shape_cast %63 : vector<1x16x16x3xf32> to vector<16x16x3xf32>
    %65 = vector.shape_cast %64 : vector<16x16x3xf32> to vector<256x3xf32>
    %66 = arith.truncf %65 : vector<256x3xf32> to vector<256x3xbf16>
    %c8 = arith.constant 8 : index
    %c0_59 = arith.constant 0 : index
    %c0_60 = arith.constant 0 : index
    %67 = vector.load %arg2[%c8, %c0_59, %c0_60] : memref<9x3x8xbf16, #tpu.memory_space<vmem>>, vector<1x3x8xbf16>
    %68 = vector.shape_cast %67 : vector<1x3x8xbf16> to vector<3x8xbf16>
    %cst_61 = arith.constant dense<0.000000e+00> : vector<256x8xf32>
    %69 = tpu.matmul %66, %68, %cst_61 {dimension_numbers = #tpu.dot_dimension_numbers<[1], [0], [0], [1], [0, 0, 1, 1], [], []>} : vector<256x3xbf16>, vector<3x8xbf16>, vector<256x8xf32> -> vector<256x8xf32>
    %70 = arith.addf %62, %69 : vector<256x8xf32>
    %c0_62 = arith.constant 0 : index
    %c0_63 = arith.constant 0 : index
    %c0_64 = arith.constant 0 : index
    %71 = vector.load %arg3[%c0_62, %c0_63, %c0_64] : memref<1x256x8xf32, #tpu.memory_space<vmem>>, vector<1x256x8xf32>
    %72 = vector.shape_cast %71 : vector<1x256x8xf32> to vector<256x8xf32>
    %73 = vector.shape_cast %70 : vector<256x8xf32> to vector<1x256x8xf32>
    tpu.vector_store %arg3[%c0_62, %c0_63, %c0_64], %73 {strides = array<i32>} : memref<1x256x8xf32, #tpu.memory_space<vmem>>, vector<1x256x8xf32>,
    return
  }
  func.func @transform_0(%arg0: i32) -> (i32, i32, i32, i32) {
    %c0_i32 = arith.constant 0 : i32
    %c0_i32_0 = arith.constant 0 : i32
    %c0_i32_1 = arith.constant 0 : i32
    %c0_i32_2 = arith.constant 0 : i32
    return %arg0, %c0_i32, %c0_i32_0, %c0_i32_1 : i32, i32, i32, i32
  }
  func.func @transform_1(%arg0: i32) -> (i32, i32, i32) {
    %c0_i32 = arith.constant 0 : i32
    %c0_i32_0 = arith.constant 0 : i32
    %c0_i32_1 = arith.constant 0 : i32
    %c0_i32_2 = arith.constant 0 : i32
    return %c0_i32, %c0_i32_0, %c0_i32_1 : i32, i32, i32
  }
  func.func @transform_2(%arg0: i32) -> (i32, i32, i32) {
    %c0_i32 = arith.constant 0 : i32
    %c0_i32_0 = arith.constant 0 : i32
    %c0_i32_1 = arith.constant 0 : i32
    return %arg0, %c0_i32, %c0_i32_0 : i32, i32, i32
  }
}

module attributes {stable_mosaic.version = 11 : i64} {
  func.func @_attn_kernel(%arg0: i32, %arg1: memref<8x1xf32, #tpu.memory_space<vmem>>, %arg2: memref<1x8x64xbf16, #tpu.memory_space<vmem>>, %arg3: memref<1x64x8xbf16, #tpu.memory_space<vmem>>, %arg4: memref<1x64x8xbf16, #tpu.memory_space<vmem>>, %arg5: memref<1x64x8xbf16, #tpu.memory_space<vmem>>) attributes {dimension_semantics = [#tpu.dimension_semantics<parallel>], iteration_bounds = array<i64: 1>, scalar_prefetch = 0 : i64, scratch_operands = 0 : i64, tpu.core_type = #tpu.core_type<tc>, window_params = [{pipeline_mode = #tpu.pipeline_mode<synchronous>, transform_indices = @transform_0, window_bounds = array<i64: 8, 1>}, {transform_indices = @transform_1, window_bounds = array<i64: 1, 8, 64>}, {transform_indices = @transform_2, window_bounds = array<i64: 1, 64, 8>}, {transform_indices = @transform_3, window_bounds = array<i64: 1, 64, 8>}, {transform_indices = @transform_4, window_bounds = array<i64: 1, 64, 8>}]} {
    %c0 = arith.constant 0 : index
    %c0_0 = arith.constant 0 : index
    %c0_1 = arith.constant 0 : index
    %0 = vector.load %arg2[%c0, %c0_0, %c0_1] : memref<1x8x64xbf16, #tpu.memory_space<vmem>>, vector<1x8x64xbf16>
    %1 = vector.shape_cast %0 : vector<1x8x64xbf16> to vector<8x64xbf16>
    %2 = arith.extf %1 : vector<8x64xbf16> to vector<8x64xf32>
    %c0_2 = arith.constant 0 : index
    %c0_3 = arith.constant 0 : index
    %c0_4 = arith.constant 0 : index
    %3 = vector.load %arg3[%c0_2, %c0_3, %c0_4] : memref<1x64x8xbf16, #tpu.memory_space<vmem>>, vector<1x64x8xbf16>
    %4 = vector.shape_cast %3 : vector<1x64x8xbf16> to vector<64x8xbf16>
    %5 = arith.extf %4 : vector<64x8xbf16> to vector<64x8xf32>
    %c0_5 = arith.constant 0 : index
    %c0_6 = arith.constant 0 : index
    %c0_7 = arith.constant 0 : index
    %6 = vector.load %arg4[%c0_5, %c0_6, %c0_7] : memref<1x64x8xbf16, #tpu.memory_space<vmem>>, vector<1x64x8xbf16>
    %7 = vector.shape_cast %6 : vector<1x64x8xbf16> to vector<64x8xbf16>
    %8 = arith.mulf %2, %2 : vector<8x64xf32>
    %cst = arith.constant dense<0.000000e+00> : vector<8xf32>
    %9 = vector.multi_reduction <add>, %8, %cst [1] : vector<8x64xf32> to vector<8xf32>
    %10 = vector.shape_cast %9 : vector<8xf32> to vector<8x1xf32>
    %cst_8 = arith.constant 1.000000e-24 : f32
    %11 = vector.broadcast %cst_8 : f32 to vector<8x1xf32>
    %12 = arith.maximumf %10, %11 : vector<8x1xf32>
    %13 = math.rsqrt %12 : vector<8x1xf32>
    %14 = vector.broadcast %13 : vector<8x1xf32> to vector<8x64xf32>
    %15 = arith.mulf %2, %14 : vector<8x64xf32>
    %16 = arith.mulf %5, %5 : vector<64x8xf32>
    %cst_9 = arith.constant dense<0.000000e+00> : vector<8xf32>
    %17 = vector.multi_reduction <add>, %16, %cst_9 [0] : vector<64x8xf32> to vector<8xf32>
    %18 = vector.shape_cast %17 : vector<8xf32> to vector<1x8xf32>
    %cst_10 = arith.constant 1.000000e-24 : f32
    %19 = vector.broadcast %cst_10 : f32 to vector<1x8xf32>
    %20 = arith.maximumf %18, %19 : vector<1x8xf32>
    %21 = math.rsqrt %20 : vector<1x8xf32>
    %22 = vector.broadcast %21 : vector<1x8xf32> to vector<64x8xf32>
    %23 = arith.mulf %5, %22 : vector<64x8xf32>
    %c0_11 = arith.constant 0 : index
    %c0_12 = arith.constant 0 : index
    %24 = vector.load %arg1[%c0_11, %c0_12] : memref<8x1xf32, #tpu.memory_space<vmem>>, vector<8x1xf32>
    %25 = vector.broadcast %24 : vector<8x1xf32> to vector<8x64xf32>
    %26 = arith.mulf %15, %25 : vector<8x64xf32>
    %27 = arith.truncf %26 : vector<8x64xf32> to vector<8x64xbf16>
    %28 = arith.truncf %23 : vector<64x8xf32> to vector<64x8xbf16>
    %29 = vector.extract_strided_slice %27 {offsets = [0, 0], sizes = [4, 64], strides = [1, 1]} : vector<8x64xbf16> to vector<4x64xbf16>
    %30 = vector.extract_strided_slice %28 {offsets = [0, 0], sizes = [64, 4], strides = [1, 1]} : vector<64x8xbf16> to vector<64x4xbf16>
    %cst_13 = arith.constant dense<0.000000e+00> : vector<4x4xf32>
    %31 = tpu.matmul %29, %30, %cst_13 {dimension_numbers = #tpu.dot_dimension_numbers<[1], [0], [0], [1], [0, 0, 1, 1], [], []>} : vector<4x64xbf16>, vector<64x4xbf16>, vector<4x4xf32> -> vector<4x4xf32>
    %cst_14 = arith.constant dense<0xFF800000> : vector<4xf32>
    %32 = vector.multi_reduction <maximumf>, %31, %cst_14 [1] : vector<4x4xf32> to vector<4xf32>
    %33 = vector.shape_cast %32 : vector<4xf32> to vector<4x1xf32>
    %34 = vector.broadcast %33 : vector<4x1xf32> to vector<4x4xf32>
    %35 = arith.subf %31, %34 : vector<4x4xf32>
    %36 = math.exp %35 : vector<4x4xf32>
    %cst_15 = arith.constant dense<0.000000e+00> : vector<4xf32>
    %37 = vector.multi_reduction <add>, %36, %cst_15 [1] : vector<4x4xf32> to vector<4xf32>
    %38 = vector.shape_cast %37 : vector<4xf32> to vector<4x1xf32>
    %39 = tpu.reciprocal %38 {approx = true} : vector<4x1xf32> -> vector<4x1xf32>
    %40 = vector.broadcast %39 : vector<4x1xf32> to vector<4x4xf32>
    %41 = arith.mulf %36, %40 : vector<4x4xf32>
    %42 = vector.extract_strided_slice %7 {offsets = [0, 0], sizes = [64, 4], strides = [1, 1]} : vector<64x8xbf16> to vector<64x4xbf16>
    %43 = arith.truncf %41 : vector<4x4xf32> to vector<4x4xbf16>
    %cst_16 = arith.constant dense<0.000000e+00> : vector<64x4xf32>
    %44 = tpu.matmul %42, %43, %cst_16 {dimension_numbers = #tpu.dot_dimension_numbers<[1], [1], [0], [0], [0, 0, 1, 0], [], []>} : vector<64x4xbf16>, vector<4x4xbf16>, vector<64x4xf32> -> vector<64x4xf32>
    %45 = vector.extract_strided_slice %27 {offsets = [4, 0], sizes = [4, 64], strides = [1, 1]} : vector<8x64xbf16> to vector<4x64xbf16>
    %46 = vector.extract_strided_slice %28 {offsets = [0, 4], sizes = [64, 4], strides = [1, 1]} : vector<64x8xbf16> to vector<64x4xbf16>
    %cst_17 = arith.constant dense<0.000000e+00> : vector<4x4xf32>
    %47 = tpu.matmul %45, %46, %cst_17 {dimension_numbers = #tpu.dot_dimension_numbers<[1], [0], [0], [1], [0, 0, 1, 1], [], []>} : vector<4x64xbf16>, vector<64x4xbf16>, vector<4x4xf32> -> vector<4x4xf32>
    %cst_18 = arith.constant dense<0xFF800000> : vector<4xf32>
    %48 = vector.multi_reduction <maximumf>, %47, %cst_18 [1] : vector<4x4xf32> to vector<4xf32>
    %49 = vector.shape_cast %48 : vector<4xf32> to vector<4x1xf32>
    %50 = vector.broadcast %49 : vector<4x1xf32> to vector<4x4xf32>
    %51 = arith.subf %47, %50 : vector<4x4xf32>
    %52 = math.exp %51 : vector<4x4xf32>
    %cst_19 = arith.constant dense<0.000000e+00> : vector<4xf32>
    %53 = vector.multi_reduction <add>, %52, %cst_19 [1] : vector<4x4xf32> to vector<4xf32>
    %54 = vector.shape_cast %53 : vector<4xf32> to vector<4x1xf32>
    %55 = tpu.reciprocal %54 {approx = true} : vector<4x1xf32> -> vector<4x1xf32>
    %56 = vector.broadcast %55 : vector<4x1xf32> to vector<4x4xf32>
    %57 = arith.mulf %52, %56 : vector<4x4xf32>
    %58 = vector.extract_strided_slice %7 {offsets = [0, 4], sizes = [64, 4], strides = [1, 1]} : vector<64x8xbf16> to vector<64x4xbf16>
    %59 = arith.truncf %57 : vector<4x4xf32> to vector<4x4xbf16>
    %cst_20 = arith.constant dense<0.000000e+00> : vector<64x4xf32>
    %60 = tpu.matmul %58, %59, %cst_20 {dimension_numbers = #tpu.dot_dimension_numbers<[1], [1], [0], [0], [0, 0, 1, 0], [], []>} : vector<64x4xbf16>, vector<4x4xbf16>, vector<64x4xf32> -> vector<64x4xf32>
    %61 = tpu.concatenate %44, %60 in 1 : vector<64x4xf32>, vector<64x4xf32> -> vector<64x8xf32>
    %62 = arith.truncf %61 : vector<64x8xf32> to vector<64x8xbf16>
    %c0_21 = arith.constant 0 : index
    %c0_22 = arith.constant 0 : index
    %c0_23 = arith.constant 0 : index
    %63 = vector.load %arg5[%c0_21, %c0_22, %c0_23] : memref<1x64x8xbf16, #tpu.memory_space<vmem>>, vector<1x64x8xbf16>
    %64 = vector.shape_cast %63 : vector<1x64x8xbf16> to vector<64x8xbf16>
    %65 = vector.shape_cast %62 : vector<64x8xbf16> to vector<1x64x8xbf16>
    tpu.vector_store %arg5[%c0_21, %c0_22, %c0_23], %65 {strides = array<i32>} : memref<1x64x8xbf16, #tpu.memory_space<vmem>>, vector<1x64x8xbf16>,
    return
  }
  func.func @transform_0(%arg0: i32) -> (i32, i32) {
    %c0_i32 = arith.constant 0 : i32
    %c0_i32_0 = arith.constant 0 : i32
    %c0_i32_1 = arith.constant 0 : i32
    return %c0_i32, %c0_i32_0 : i32, i32
  }
  func.func @transform_1(%arg0: i32) -> (i32, i32, i32) {
    %c0_i32 = arith.constant 0 : i32
    %c0_i32_0 = arith.constant 0 : i32
    %c0_i32_1 = arith.constant 0 : i32
    return %arg0, %c0_i32, %c0_i32_0 : i32, i32, i32
  }
  func.func @transform_2(%arg0: i32) -> (i32, i32, i32) {
    %c0_i32 = arith.constant 0 : i32
    %c0_i32_0 = arith.constant 0 : i32
    %c0_i32_1 = arith.constant 0 : i32
    return %arg0, %c0_i32, %c0_i32_0 : i32, i32, i32
  }
  func.func @transform_3(%arg0: i32) -> (i32, i32, i32) {
    %c0_i32 = arith.constant 0 : i32
    %c0_i32_0 = arith.constant 0 : i32
    %c0_i32_1 = arith.constant 0 : i32
    return %arg0, %c0_i32, %c0_i32_0 : i32, i32, i32
  }
  func.func @transform_4(%arg0: i32) -> (i32, i32, i32) {
    %c0_i32 = arith.constant 0 : i32
    %c0_i32_0 = arith.constant 0 : i32
    %c0_i32_1 = arith.constant 0 : i32
    return %arg0, %c0_i32, %c0_i32_0 : i32, i32, i32
  }
}

module attributes {stable_mosaic.version = 11 : i64} {
  func.func @_dw_kernel(%arg0: i32, %arg1: memref<1x18x18x8xf32, #tpu.memory_space<vmem>>, %arg2: memref<9x8xf32, #tpu.memory_space<vmem>>, %arg3: memref<1x16x16x8xf32, #tpu.memory_space<vmem>>) attributes {dimension_semantics = [#tpu.dimension_semantics<parallel>], iteration_bounds = array<i64: 2>, scalar_prefetch = 0 : i64, scratch_operands = 0 : i64, tpu.core_type = #tpu.core_type<tc>, window_params = [{transform_indices = @transform_0, window_bounds = array<i64: 1, 18, 18, 8>}, {pipeline_mode = #tpu.pipeline_mode<synchronous>, transform_indices = @transform_1, window_bounds = array<i64: 9, 8>}, {transform_indices = @transform_2, window_bounds = array<i64: 1, 16, 16, 8>}]} {
    %c0 = arith.constant 0 : index
    %c0_0 = arith.constant 0 : index
    %c0_1 = arith.constant 0 : index
    %c0_2 = arith.constant 0 : index
    %0 = vector.load %arg1[%c0, %c0_0, %c0_1, %c0_2] : memref<1x18x18x8xf32, #tpu.memory_space<vmem>>, vector<1x16x16x8xf32>
    %1 = vector.shape_cast %0 : vector<1x16x16x8xf32> to vector<16x16x8xf32>
    %c0_3 = arith.constant 0 : index
    %c0_4 = arith.constant 0 : index
    %2 = vector.load %arg2[%c0_3, %c0_4] : memref<9x8xf32, #tpu.memory_space<vmem>>, vector<1x8xf32>
    %3 = vector.shape_cast %2 : vector<1x8xf32> to vector<1x1x8xf32>
    %4 = vector.broadcast %3 : vector<1x1x8xf32> to vector<16x16x8xf32>
    %5 = arith.mulf %1, %4 : vector<16x16x8xf32>
    %c0_5 = arith.constant 0 : index
    %c0_6 = arith.constant 0 : index
    %c1 = arith.constant 1 : index
    %c0_7 = arith.constant 0 : index
    %6 = vector.load %arg1[%c0_5, %c0_6, %c1, %c0_7] : memref<1x18x18x8xf32, #tpu.memory_space<vmem>>, vector<1x16x16x8xf32>
    %7 = vector.shape_cast %6 : vector<1x16x16x8xf32> to vector<16x16x8xf32>
    %c1_8 = arith.constant 1 : index
    %c0_9 = arith.constant 0 : index
    %8 = vector.load %arg2[%c1_8, %c0_9] : memref<9x8xf32, #tpu.memory_space<vmem>>, vector<1x8xf32>
    %9 = vector.shape_cast %8 : vector<1x8xf32> to vector<1x1x8xf32>
    %10 = vector.broadcast %9 : vector<1x1x8xf32> to vector<16x16x8xf32>
    %11 = arith.mulf %7, %10 : vector<16x16x8xf32>
    %12 = arith.addf %5, %11 : vector<16x16x8xf32>
    %c0_10 = arith.constant 0 : index
    %c0_11 = arith.constant 0 : index
    %c2 = arith.constant 2 : index
    %c0_12 = arith.constant 0 : index
    %13 = vector.load %arg1[%c0_10, %c0_11, %c2, %c0_12] : memref<1x18x18x8xf32, #tpu.memory_space<vmem>>, vector<1x16x16x8xf32>
    %14 = vector.shape_cast %13 : vector<1x16x16x8xf32> to vector<16x16x8xf32>
    %c2_13 = arith.constant 2 : index
    %c0_14 = arith.constant 0 : index
    %15 = vector.load %arg2[%c2_13, %c0_14] : memref<9x8xf32, #tpu.memory_space<vmem>>, vector<1x8xf32>
    %16 = vector.shape_cast %15 : vector<1x8xf32> to vector<1x1x8xf32>
    %17 = vector.broadcast %16 : vector<1x1x8xf32> to vector<16x16x8xf32>
    %18 = arith.mulf %14, %17 : vector<16x16x8xf32>
    %19 = arith.addf %12, %18 : vector<16x16x8xf32>
    %c0_15 = arith.constant 0 : index
    %c1_16 = arith.constant 1 : index
    %c0_17 = arith.constant 0 : index
    %c0_18 = arith.constant 0 : index
    %20 = vector.load %arg1[%c0_15, %c1_16, %c0_17, %c0_18] : memref<1x18x18x8xf32, #tpu.memory_space<vmem>>, vector<1x16x16x8xf32>
    %21 = vector.shape_cast %20 : vector<1x16x16x8xf32> to vector<16x16x8xf32>
    %c3 = arith.constant 3 : index
    %c0_19 = arith.constant 0 : index
    %22 = vector.load %arg2[%c3, %c0_19] : memref<9x8xf32, #tpu.memory_space<vmem>>, vector<1x8xf32>
    %23 = vector.shape_cast %22 : vector<1x8xf32> to vector<1x1x8xf32>
    %24 = vector.broadcast %23 : vector<1x1x8xf32> to vector<16x16x8xf32>
    %25 = arith.mulf %21, %24 : vector<16x16x8xf32>
    %26 = arith.addf %19, %25 : vector<16x16x8xf32>
    %c0_20 = arith.constant 0 : index
    %c1_21 = arith.constant 1 : index
    %c1_22 = arith.constant 1 : index
    %c0_23 = arith.constant 0 : index
    %27 = vector.load %arg1[%c0_20, %c1_21, %c1_22, %c0_23] : memref<1x18x18x8xf32, #tpu.memory_space<vmem>>, vector<1x16x16x8xf32>
    %28 = vector.shape_cast %27 : vector<1x16x16x8xf32> to vector<16x16x8xf32>
    %c4 = arith.constant 4 : index
    %c0_24 = arith.constant 0 : index
    %29 = vector.load %arg2[%c4, %c0_24] : memref<9x8xf32, #tpu.memory_space<vmem>>, vector<1x8xf32>
    %30 = vector.shape_cast %29 : vector<1x8xf32> to vector<1x1x8xf32>
    %31 = vector.broadcast %30 : vector<1x1x8xf32> to vector<16x16x8xf32>
    %32 = arith.mulf %28, %31 : vector<16x16x8xf32>
    %33 = arith.addf %26, %32 : vector<16x16x8xf32>
    %c0_25 = arith.constant 0 : index
    %c1_26 = arith.constant 1 : index
    %c2_27 = arith.constant 2 : index
    %c0_28 = arith.constant 0 : index
    %34 = vector.load %arg1[%c0_25, %c1_26, %c2_27, %c0_28] : memref<1x18x18x8xf32, #tpu.memory_space<vmem>>, vector<1x16x16x8xf32>
    %35 = vector.shape_cast %34 : vector<1x16x16x8xf32> to vector<16x16x8xf32>
    %c5 = arith.constant 5 : index
    %c0_29 = arith.constant 0 : index
    %36 = vector.load %arg2[%c5, %c0_29] : memref<9x8xf32, #tpu.memory_space<vmem>>, vector<1x8xf32>
    %37 = vector.shape_cast %36 : vector<1x8xf32> to vector<1x1x8xf32>
    %38 = vector.broadcast %37 : vector<1x1x8xf32> to vector<16x16x8xf32>
    %39 = arith.mulf %35, %38 : vector<16x16x8xf32>
    %40 = arith.addf %33, %39 : vector<16x16x8xf32>
    %c0_30 = arith.constant 0 : index
    %c2_31 = arith.constant 2 : index
    %c0_32 = arith.constant 0 : index
    %c0_33 = arith.constant 0 : index
    %41 = vector.load %arg1[%c0_30, %c2_31, %c0_32, %c0_33] : memref<1x18x18x8xf32, #tpu.memory_space<vmem>>, vector<1x16x16x8xf32>
    %42 = vector.shape_cast %41 : vector<1x16x16x8xf32> to vector<16x16x8xf32>
    %c6 = arith.constant 6 : index
    %c0_34 = arith.constant 0 : index
    %43 = vector.load %arg2[%c6, %c0_34] : memref<9x8xf32, #tpu.memory_space<vmem>>, vector<1x8xf32>
    %44 = vector.shape_cast %43 : vector<1x8xf32> to vector<1x1x8xf32>
    %45 = vector.broadcast %44 : vector<1x1x8xf32> to vector<16x16x8xf32>
    %46 = arith.mulf %42, %45 : vector<16x16x8xf32>
    %47 = arith.addf %40, %46 : vector<16x16x8xf32>
    %c0_35 = arith.constant 0 : index
    %c2_36 = arith.constant 2 : index
    %c1_37 = arith.constant 1 : index
    %c0_38 = arith.constant 0 : index
    %48 = vector.load %arg1[%c0_35, %c2_36, %c1_37, %c0_38] : memref<1x18x18x8xf32, #tpu.memory_space<vmem>>, vector<1x16x16x8xf32>
    %49 = vector.shape_cast %48 : vector<1x16x16x8xf32> to vector<16x16x8xf32>
    %c7 = arith.constant 7 : index
    %c0_39 = arith.constant 0 : index
    %50 = vector.load %arg2[%c7, %c0_39] : memref<9x8xf32, #tpu.memory_space<vmem>>, vector<1x8xf32>
    %51 = vector.shape_cast %50 : vector<1x8xf32> to vector<1x1x8xf32>
    %52 = vector.broadcast %51 : vector<1x1x8xf32> to vector<16x16x8xf32>
    %53 = arith.mulf %49, %52 : vector<16x16x8xf32>
    %54 = arith.addf %47, %53 : vector<16x16x8xf32>
    %c0_40 = arith.constant 0 : index
    %c2_41 = arith.constant 2 : index
    %c2_42 = arith.constant 2 : index
    %c0_43 = arith.constant 0 : index
    %55 = vector.load %arg1[%c0_40, %c2_41, %c2_42, %c0_43] : memref<1x18x18x8xf32, #tpu.memory_space<vmem>>, vector<1x16x16x8xf32>
    %56 = vector.shape_cast %55 : vector<1x16x16x8xf32> to vector<16x16x8xf32>
    %c8 = arith.constant 8 : index
    %c0_44 = arith.constant 0 : index
    %57 = vector.load %arg2[%c8, %c0_44] : memref<9x8xf32, #tpu.memory_space<vmem>>, vector<1x8xf32>
    %58 = vector.shape_cast %57 : vector<1x8xf32> to vector<1x1x8xf32>
    %59 = vector.broadcast %58 : vector<1x1x8xf32> to vector<16x16x8xf32>
    %60 = arith.mulf %56, %59 : vector<16x16x8xf32>
    %61 = arith.addf %54, %60 : vector<16x16x8xf32>
    %c0_45 = arith.constant 0 : index
    %c0_46 = arith.constant 0 : index
    %c0_47 = arith.constant 0 : index
    %c0_48 = arith.constant 0 : index
    %62 = vector.load %arg3[%c0_45, %c0_46, %c0_47, %c0_48] : memref<1x16x16x8xf32, #tpu.memory_space<vmem>>, vector<1x16x16x8xf32>
    %63 = vector.shape_cast %62 : vector<1x16x16x8xf32> to vector<16x16x8xf32>
    %64 = vector.shape_cast %61 : vector<16x16x8xf32> to vector<1x16x16x8xf32>
    tpu.vector_store %arg3[%c0_45, %c0_46, %c0_47, %c0_48], %64 {strides = array<i32>} : memref<1x16x16x8xf32, #tpu.memory_space<vmem>>, vector<1x16x16x8xf32>,
    return
  }
  func.func @transform_0(%arg0: i32) -> (i32, i32, i32, i32) {
    %c0_i32 = arith.constant 0 : i32
    %c0_i32_0 = arith.constant 0 : i32
    %c0_i32_1 = arith.constant 0 : i32
    %c0_i32_2 = arith.constant 0 : i32
    return %arg0, %c0_i32, %c0_i32_0, %c0_i32_1 : i32, i32, i32, i32
  }
  func.func @transform_1(%arg0: i32) -> (i32, i32) {
    %c0_i32 = arith.constant 0 : i32
    %c0_i32_0 = arith.constant 0 : i32
    %c0_i32_1 = arith.constant 0 : i32
    return %c0_i32, %c0_i32_0 : i32, i32
  }
  func.func @transform_2(%arg0: i32) -> (i32, i32, i32, i32) {
    %c0_i32 = arith.constant 0 : i32
    %c0_i32_0 = arith.constant 0 : i32
    %c0_i32_1 = arith.constant 0 : i32
    %c0_i32_2 = arith.constant 0 : i32
    return %arg0, %c0_i32, %c0_i32_0, %c0_i32_1 : i32, i32, i32, i32
  }
}

module attributes {stable_mosaic.version = 11 : i64} {
  func.func @_mm_multi_kernel(%arg0: i32, %arg1: memref<512x3xbf16, #tpu.memory_space<vmem>>, %arg2: memref<512x3xbf16, #tpu.memory_space<vmem>>, %arg3: memref<512x3xbf16, #tpu.memory_space<vmem>>, %arg4: memref<512x3xbf16, #tpu.memory_space<vmem>>, %arg5: memref<512x3xbf16, #tpu.memory_space<vmem>>, %arg6: memref<512x3xbf16, #tpu.memory_space<vmem>>, %arg7: memref<512x3xbf16, #tpu.memory_space<vmem>>, %arg8: memref<512x3xbf16, #tpu.memory_space<vmem>>, %arg9: memref<512x3xbf16, #tpu.memory_space<vmem>>, %arg10: memref<3x8xbf16, #tpu.memory_space<vmem>>, %arg11: memref<3x8xbf16, #tpu.memory_space<vmem>>, %arg12: memref<3x8xbf16, #tpu.memory_space<vmem>>, %arg13: memref<3x8xbf16, #tpu.memory_space<vmem>>, %arg14: memref<3x8xbf16, #tpu.memory_space<vmem>>, %arg15: memref<3x8xbf16, #tpu.memory_space<vmem>>, %arg16: memref<3x8xbf16, #tpu.memory_space<vmem>>, %arg17: memref<3x8xbf16, #tpu.memory_space<vmem>>, %arg18: memref<3x8xbf16, #tpu.memory_space<vmem>>, %arg19: memref<512x8xf32, #tpu.memory_space<vmem>>) attributes {dimension_semantics = [#tpu.dimension_semantics<parallel>], iteration_bounds = array<i64: 1>, scalar_prefetch = 0 : i64, scratch_operands = 0 : i64, tpu.core_type = #tpu.core_type<tc>, window_params = [{transform_indices = @transform_0, window_bounds = array<i64: 512, 3>}, {transform_indices = @transform_1, window_bounds = array<i64: 512, 3>}, {transform_indices = @transform_2, window_bounds = array<i64: 512, 3>}, {transform_indices = @transform_3, window_bounds = array<i64: 512, 3>}, {transform_indices = @transform_4, window_bounds = array<i64: 512, 3>}, {transform_indices = @transform_5, window_bounds = array<i64: 512, 3>}, {transform_indices = @transform_6, window_bounds = array<i64: 512, 3>}, {transform_indices = @transform_7, window_bounds = array<i64: 512, 3>}, {transform_indices = @transform_8, window_bounds = array<i64: 512, 3>}, {pipeline_mode = #tpu.pipeline_mode<synchronous>, transform_indices = @transform_9, window_bounds = array<i64: 3, 8>}, {pipeline_mode = #tpu.pipeline_mode<synchronous>, transform_indices = @transform_10, window_bounds = array<i64: 3, 8>}, {pipeline_mode = #tpu.pipeline_mode<synchronous>, transform_indices = @transform_11, window_bounds = array<i64: 3, 8>}, {pipeline_mode = #tpu.pipeline_mode<synchronous>, transform_indices = @transform_12, window_bounds = array<i64: 3, 8>}, {pipeline_mode = #tpu.pipeline_mode<synchronous>, transform_indices = @transform_13, window_bounds = array<i64: 3, 8>}, {pipeline_mode = #tpu.pipeline_mode<synchronous>, transform_indices = @transform_14, window_bounds = array<i64: 3, 8>}, {pipeline_mode = #tpu.pipeline_mode<synchronous>, transform_indices = @transform_15, window_bounds = array<i64: 3, 8>}, {pipeline_mode = #tpu.pipeline_mode<synchronous>, transform_indices = @transform_16, window_bounds = array<i64: 3, 8>}, {pipeline_mode = #tpu.pipeline_mode<synchronous>, transform_indices = @transform_17, window_bounds = array<i64: 3, 8>}, {transform_indices = @transform_18, window_bounds = array<i64: 512, 8>}]} {
    %c0 = arith.constant 0 : index
    %c0_0 = arith.constant 0 : index
    %0 = vector.load %arg1[%c0, %c0_0] : memref<512x3xbf16, #tpu.memory_space<vmem>>, vector<512x3xbf16>
    %c0_1 = arith.constant 0 : index
    %c0_2 = arith.constant 0 : index
    %1 = vector.load %arg10[%c0_1, %c0_2] : memref<3x8xbf16, #tpu.memory_space<vmem>>, vector<3x8xbf16>
    %cst = arith.constant dense<0.000000e+00> : vector<512x8xf32>
    %2 = tpu.matmul %0, %1, %cst {dimension_numbers = #tpu.dot_dimension_numbers<[1], [0], [0], [1], [0, 0, 1, 1], [], []>} : vector<512x3xbf16>, vector<3x8xbf16>, vector<512x8xf32> -> vector<512x8xf32>
    %c0_3 = arith.constant 0 : index
    %c0_4 = arith.constant 0 : index
    %3 = vector.load %arg2[%c0_3, %c0_4] : memref<512x3xbf16, #tpu.memory_space<vmem>>, vector<512x3xbf16>
    %c0_5 = arith.constant 0 : index
    %c0_6 = arith.constant 0 : index
    %4 = vector.load %arg11[%c0_5, %c0_6] : memref<3x8xbf16, #tpu.memory_space<vmem>>, vector<3x8xbf16>
    %cst_7 = arith.constant dense<0.000000e+00> : vector<512x8xf32>
    %5 = tpu.matmul %3, %4, %cst_7 {dimension_numbers = #tpu.dot_dimension_numbers<[1], [0], [0], [1], [0, 0, 1, 1], [], []>} : vector<512x3xbf16>, vector<3x8xbf16>, vector<512x8xf32> -> vector<512x8xf32>
    %6 = arith.addf %2, %5 : vector<512x8xf32>
    %c0_8 = arith.constant 0 : index
    %c0_9 = arith.constant 0 : index
    %7 = vector.load %arg3[%c0_8, %c0_9] : memref<512x3xbf16, #tpu.memory_space<vmem>>, vector<512x3xbf16>
    %c0_10 = arith.constant 0 : index
    %c0_11 = arith.constant 0 : index
    %8 = vector.load %arg12[%c0_10, %c0_11] : memref<3x8xbf16, #tpu.memory_space<vmem>>, vector<3x8xbf16>
    %cst_12 = arith.constant dense<0.000000e+00> : vector<512x8xf32>
    %9 = tpu.matmul %7, %8, %cst_12 {dimension_numbers = #tpu.dot_dimension_numbers<[1], [0], [0], [1], [0, 0, 1, 1], [], []>} : vector<512x3xbf16>, vector<3x8xbf16>, vector<512x8xf32> -> vector<512x8xf32>
    %10 = arith.addf %6, %9 : vector<512x8xf32>
    %c0_13 = arith.constant 0 : index
    %c0_14 = arith.constant 0 : index
    %11 = vector.load %arg4[%c0_13, %c0_14] : memref<512x3xbf16, #tpu.memory_space<vmem>>, vector<512x3xbf16>
    %c0_15 = arith.constant 0 : index
    %c0_16 = arith.constant 0 : index
    %12 = vector.load %arg13[%c0_15, %c0_16] : memref<3x8xbf16, #tpu.memory_space<vmem>>, vector<3x8xbf16>
    %cst_17 = arith.constant dense<0.000000e+00> : vector<512x8xf32>
    %13 = tpu.matmul %11, %12, %cst_17 {dimension_numbers = #tpu.dot_dimension_numbers<[1], [0], [0], [1], [0, 0, 1, 1], [], []>} : vector<512x3xbf16>, vector<3x8xbf16>, vector<512x8xf32> -> vector<512x8xf32>
    %14 = arith.addf %10, %13 : vector<512x8xf32>
    %c0_18 = arith.constant 0 : index
    %c0_19 = arith.constant 0 : index
    %15 = vector.load %arg5[%c0_18, %c0_19] : memref<512x3xbf16, #tpu.memory_space<vmem>>, vector<512x3xbf16>
    %c0_20 = arith.constant 0 : index
    %c0_21 = arith.constant 0 : index
    %16 = vector.load %arg14[%c0_20, %c0_21] : memref<3x8xbf16, #tpu.memory_space<vmem>>, vector<3x8xbf16>
    %cst_22 = arith.constant dense<0.000000e+00> : vector<512x8xf32>
    %17 = tpu.matmul %15, %16, %cst_22 {dimension_numbers = #tpu.dot_dimension_numbers<[1], [0], [0], [1], [0, 0, 1, 1], [], []>} : vector<512x3xbf16>, vector<3x8xbf16>, vector<512x8xf32> -> vector<512x8xf32>
    %18 = arith.addf %14, %17 : vector<512x8xf32>
    %c0_23 = arith.constant 0 : index
    %c0_24 = arith.constant 0 : index
    %19 = vector.load %arg6[%c0_23, %c0_24] : memref<512x3xbf16, #tpu.memory_space<vmem>>, vector<512x3xbf16>
    %c0_25 = arith.constant 0 : index
    %c0_26 = arith.constant 0 : index
    %20 = vector.load %arg15[%c0_25, %c0_26] : memref<3x8xbf16, #tpu.memory_space<vmem>>, vector<3x8xbf16>
    %cst_27 = arith.constant dense<0.000000e+00> : vector<512x8xf32>
    %21 = tpu.matmul %19, %20, %cst_27 {dimension_numbers = #tpu.dot_dimension_numbers<[1], [0], [0], [1], [0, 0, 1, 1], [], []>} : vector<512x3xbf16>, vector<3x8xbf16>, vector<512x8xf32> -> vector<512x8xf32>
    %22 = arith.addf %18, %21 : vector<512x8xf32>
    %c0_28 = arith.constant 0 : index
    %c0_29 = arith.constant 0 : index
    %23 = vector.load %arg7[%c0_28, %c0_29] : memref<512x3xbf16, #tpu.memory_space<vmem>>, vector<512x3xbf16>
    %c0_30 = arith.constant 0 : index
    %c0_31 = arith.constant 0 : index
    %24 = vector.load %arg16[%c0_30, %c0_31] : memref<3x8xbf16, #tpu.memory_space<vmem>>, vector<3x8xbf16>
    %cst_32 = arith.constant dense<0.000000e+00> : vector<512x8xf32>
    %25 = tpu.matmul %23, %24, %cst_32 {dimension_numbers = #tpu.dot_dimension_numbers<[1], [0], [0], [1], [0, 0, 1, 1], [], []>} : vector<512x3xbf16>, vector<3x8xbf16>, vector<512x8xf32> -> vector<512x8xf32>
    %26 = arith.addf %22, %25 : vector<512x8xf32>
    %c0_33 = arith.constant 0 : index
    %c0_34 = arith.constant 0 : index
    %27 = vector.load %arg8[%c0_33, %c0_34] : memref<512x3xbf16, #tpu.memory_space<vmem>>, vector<512x3xbf16>
    %c0_35 = arith.constant 0 : index
    %c0_36 = arith.constant 0 : index
    %28 = vector.load %arg17[%c0_35, %c0_36] : memref<3x8xbf16, #tpu.memory_space<vmem>>, vector<3x8xbf16>
    %cst_37 = arith.constant dense<0.000000e+00> : vector<512x8xf32>
    %29 = tpu.matmul %27, %28, %cst_37 {dimension_numbers = #tpu.dot_dimension_numbers<[1], [0], [0], [1], [0, 0, 1, 1], [], []>} : vector<512x3xbf16>, vector<3x8xbf16>, vector<512x8xf32> -> vector<512x8xf32>
    %30 = arith.addf %26, %29 : vector<512x8xf32>
    %c0_38 = arith.constant 0 : index
    %c0_39 = arith.constant 0 : index
    %31 = vector.load %arg9[%c0_38, %c0_39] : memref<512x3xbf16, #tpu.memory_space<vmem>>, vector<512x3xbf16>
    %c0_40 = arith.constant 0 : index
    %c0_41 = arith.constant 0 : index
    %32 = vector.load %arg18[%c0_40, %c0_41] : memref<3x8xbf16, #tpu.memory_space<vmem>>, vector<3x8xbf16>
    %cst_42 = arith.constant dense<0.000000e+00> : vector<512x8xf32>
    %33 = tpu.matmul %31, %32, %cst_42 {dimension_numbers = #tpu.dot_dimension_numbers<[1], [0], [0], [1], [0, 0, 1, 1], [], []>} : vector<512x3xbf16>, vector<3x8xbf16>, vector<512x8xf32> -> vector<512x8xf32>
    %34 = arith.addf %30, %33 : vector<512x8xf32>
    %c0_43 = arith.constant 0 : index
    %c0_44 = arith.constant 0 : index
    %35 = vector.load %arg19[%c0_43, %c0_44] : memref<512x8xf32, #tpu.memory_space<vmem>>, vector<512x8xf32>
    tpu.vector_store %arg19[%c0_43, %c0_44], %34 {strides = array<i32>} : memref<512x8xf32, #tpu.memory_space<vmem>>, vector<512x8xf32>,
    return
  }
  func.func @transform_0(%arg0: i32) -> (i32, i32) {
    %c0_i32 = arith.constant 0 : i32
    %c0_i32_0 = arith.constant 0 : i32
    return %arg0, %c0_i32 : i32, i32
  }
  func.func @transform_1(%arg0: i32) -> (i32, i32) {
    %c0_i32 = arith.constant 0 : i32
    %c0_i32_0 = arith.constant 0 : i32
    return %arg0, %c0_i32 : i32, i32
  }
  func.func @transform_2(%arg0: i32) -> (i32, i32) {
    %c0_i32 = arith.constant 0 : i32
    %c0_i32_0 = arith.constant 0 : i32
    return %arg0, %c0_i32 : i32, i32
  }
  func.func @transform_3(%arg0: i32) -> (i32, i32) {
    %c0_i32 = arith.constant 0 : i32
    %c0_i32_0 = arith.constant 0 : i32
    return %arg0, %c0_i32 : i32, i32
  }
  func.func @transform_4(%arg0: i32) -> (i32, i32) {
    %c0_i32 = arith.constant 0 : i32
    %c0_i32_0 = arith.constant 0 : i32
    return %arg0, %c0_i32 : i32, i32
  }
  func.func @transform_5(%arg0: i32) -> (i32, i32) {
    %c0_i32 = arith.constant 0 : i32
    %c0_i32_0 = arith.constant 0 : i32
    return %arg0, %c0_i32 : i32, i32
  }
  func.func @transform_6(%arg0: i32) -> (i32, i32) {
    %c0_i32 = arith.constant 0 : i32
    %c0_i32_0 = arith.constant 0 : i32
    return %arg0, %c0_i32 : i32, i32
  }
  func.func @transform_7(%arg0: i32) -> (i32, i32) {
    %c0_i32 = arith.constant 0 : i32
    %c0_i32_0 = arith.constant 0 : i32
    return %arg0, %c0_i32 : i32, i32
  }
  func.func @transform_8(%arg0: i32) -> (i32, i32) {
    %c0_i32 = arith.constant 0 : i32
    %c0_i32_0 = arith.constant 0 : i32
    return %arg0, %c0_i32 : i32, i32
  }
  func.func @transform_9(%arg0: i32) -> (i32, i32) {
    %c0_i32 = arith.constant 0 : i32
    %c0_i32_0 = arith.constant 0 : i32
    %c0_i32_1 = arith.constant 0 : i32
    return %c0_i32, %c0_i32_0 : i32, i32
  }
  func.func @transform_10(%arg0: i32) -> (i32, i32) {
    %c0_i32 = arith.constant 0 : i32
    %c0_i32_0 = arith.constant 0 : i32
    %c0_i32_1 = arith.constant 0 : i32
    return %c0_i32, %c0_i32_0 : i32, i32
  }
  func.func @transform_11(%arg0: i32) -> (i32, i32) {
    %c0_i32 = arith.constant 0 : i32
    %c0_i32_0 = arith.constant 0 : i32
    %c0_i32_1 = arith.constant 0 : i32
    return %c0_i32, %c0_i32_0 : i32, i32
  }
  func.func @transform_12(%arg0: i32) -> (i32, i32) {
    %c0_i32 = arith.constant 0 : i32
    %c0_i32_0 = arith.constant 0 : i32
    %c0_i32_1 = arith.constant 0 : i32
    return %c0_i32, %c0_i32_0 : i32, i32
  }
  func.func @transform_13(%arg0: i32) -> (i32, i32) {
    %c0_i32 = arith.constant 0 : i32
    %c0_i32_0 = arith.constant 0 : i32
    %c0_i32_1 = arith.constant 0 : i32
    return %c0_i32, %c0_i32_0 : i32, i32
  }
  func.func @transform_14(%arg0: i32) -> (i32, i32) {
    %c0_i32 = arith.constant 0 : i32
    %c0_i32_0 = arith.constant 0 : i32
    %c0_i32_1 = arith.constant 0 : i32
    return %c0_i32, %c0_i32_0 : i32, i32
  }
  func.func @transform_15(%arg0: i32) -> (i32, i32) {
    %c0_i32 = arith.constant 0 : i32
    %c0_i32_0 = arith.constant 0 : i32
    %c0_i32_1 = arith.constant 0 : i32
    return %c0_i32, %c0_i32_0 : i32, i32
  }
  func.func @transform_16(%arg0: i32) -> (i32, i32) {
    %c0_i32 = arith.constant 0 : i32
    %c0_i32_0 = arith.constant 0 : i32
    %c0_i32_1 = arith.constant 0 : i32
    return %c0_i32, %c0_i32_0 : i32, i32
  }
  func.func @transform_17(%arg0: i32) -> (i32, i32) {
    %c0_i32 = arith.constant 0 : i32
    %c0_i32_0 = arith.constant 0 : i32
    %c0_i32_1 = arith.constant 0 : i32
    return %c0_i32, %c0_i32_0 : i32, i32
  }
  func.func @transform_18(%arg0: i32) -> (i32, i32) {
    %c0_i32 = arith.constant 0 : i32
    %c0_i32_0 = arith.constant 0 : i32
    return %arg0, %c0_i32 : i32, i32
  }
}

module attributes {stable_mosaic.version = 11 : i64} {
  func.func @_mm_multi_kernel(%arg0: i32, %arg1: memref<512x8xbf16, #tpu.memory_space<vmem>>, %arg2: memref<8x8xbf16, #tpu.memory_space<vmem>>, %arg3: memref<1x8xf32, #tpu.memory_space<vmem>>, %arg4: memref<512x8xf32, #tpu.memory_space<vmem>>) attributes {dimension_semantics = [#tpu.dimension_semantics<parallel>], iteration_bounds = array<i64: 1>, scalar_prefetch = 0 : i64, scratch_operands = 0 : i64, tpu.core_type = #tpu.core_type<tc>, window_params = [{transform_indices = @transform_0, window_bounds = array<i64: 512, 8>}, {pipeline_mode = #tpu.pipeline_mode<synchronous>, transform_indices = @transform_1, window_bounds = array<i64: 8, 8>}, {pipeline_mode = #tpu.pipeline_mode<synchronous>, transform_indices = @transform_2, window_bounds = array<i64: 1, 8>}, {transform_indices = @transform_3, window_bounds = array<i64: 512, 8>}]} {
    %c0 = arith.constant 0 : index
    %c0_0 = arith.constant 0 : index
    %0 = vector.load %arg1[%c0, %c0_0] : memref<512x8xbf16, #tpu.memory_space<vmem>>, vector<512x8xbf16>
    %c0_1 = arith.constant 0 : index
    %c0_2 = arith.constant 0 : index
    %1 = vector.load %arg2[%c0_1, %c0_2] : memref<8x8xbf16, #tpu.memory_space<vmem>>, vector<8x8xbf16>
    %cst = arith.constant dense<0.000000e+00> : vector<512x8xf32>
    %2 = tpu.matmul %0, %1, %cst {dimension_numbers = #tpu.dot_dimension_numbers<[1], [0], [0], [1], [0, 0, 1, 1], [], []>} : vector<512x8xbf16>, vector<8x8xbf16>, vector<512x8xf32> -> vector<512x8xf32>
    %c0_3 = arith.constant 0 : index
    %c0_4 = arith.constant 0 : index
    %3 = vector.load %arg3[%c0_3, %c0_4] : memref<1x8xf32, #tpu.memory_space<vmem>>, vector<1x8xf32>
    %4 = vector.broadcast %3 : vector<1x8xf32> to vector<512x8xf32>
    %5 = arith.addf %2, %4 : vector<512x8xf32>
    %c0_5 = arith.constant 0 : index
    %c0_6 = arith.constant 0 : index
    %6 = vector.load %arg4[%c0_5, %c0_6] : memref<512x8xf32, #tpu.memory_space<vmem>>, vector<512x8xf32>
    tpu.vector_store %arg4[%c0_5, %c0_6], %5 {strides = array<i32>} : memref<512x8xf32, #tpu.memory_space<vmem>>, vector<512x8xf32>,
    return
  }
  func.func @transform_0(%arg0: i32) -> (i32, i32) {
    %c0_i32 = arith.constant 0 : i32
    %c0_i32_0 = arith.constant 0 : i32
    return %arg0, %c0_i32 : i32, i32
  }
  func.func @transform_1(%arg0: i32) -> (i32, i32) {
    %c0_i32 = arith.constant 0 : i32
    %c0_i32_0 = arith.constant 0 : i32
    %c0_i32_1 = arith.constant 0 : i32
    return %c0_i32, %c0_i32_0 : i32, i32
  }
  func.func @transform_2(%arg0: i32) -> (i32, i32) {
    %c0_i32 = arith.constant 0 : i32
    %c0_i32_0 = arith.constant 0 : i32
    %c0_i32_1 = arith.constant 0 : i32
    return %c0_i32, %c0_i32_0 : i32, i32
  }
  func.func @transform_3(%arg0: i32) -> (i32, i32) {
    %c0_i32 = arith.constant 0 : i32
    %c0_i32_0 = arith.constant 0 : i32
    return %arg0, %c0_i32 : i32, i32
  }
}

</mosaic_0001>

<bundles_post_ra>
// kernel: tpu_custom_call.1
= control target key start
LH: loop header
LB: loop body
LE: loop exit
PB: predicated region body
PF: predicated region fallthrough
CT: control target
= control target key end

     0   :  { %vm160_vm0 = vcmask 1040384   ;;  %vm161_vm1 = vcmask 1041408   ;;  %v3699_v1 = vmov 65535   ;;  %vm111_vm2 = vcmask 23552   ;;  %s4597_s1 = inlined_call_operand.vmem [shape: bf16[9,3,8], index: 1, kind: input, shape index: {}]   ;;  %s4598_s0 = inlined_call_operand.vmem [shape: f32[1,18,18,3], index: 0, kind: input, shape index: {}]   ;;  %s4599_s2 = inlined_call_operand.vmem [shape: f32[1,256,8], index: 2, kind: output, shape index: {}]  }
   0x1   :  { %v2637_v0 = vld [vmem:[%s4597_s1 + $0x2] sm:$0x3]  ;;  %v162_v2 = vsel %vm160_vm0, 4294967295, %v3699_v1  ;;  %v2768_v3 = vld [vmem:[%s4597_s1 + $0x8] sm:$0x3]  ;;  %v2736_v7 = vld [vmem:[%s4598_s0 + $0x19] sm:$0xff] }
   0x2   :  { %v61_v4 = vld [vmem:[%s4598_s0 + $0x1] sm:$0xff]  ;;  %v3724_v5 = vsel %vm161_vm1, %v162_v2, 0  ;;  %v62_v6 = vld [vmem:[%s4598_s0 + $0x9] sm:$0xff]  ;;  %v2738_v14 = vld [vmem:[%s4598_s0 + $0x31] sm:$0xff]  ;;  %vm2600_vm3 = vcmask 64512  }
   0x3   :  { %v2737_v8 = vld [vmem:[%s4598_s0 + $0x21] sm:$0xff]  ;;  %v165_v9 = vand.u32 %v2637_v0, %v3724_v5  ;;  %v3737_v10 = vand.u32 %v2768_v3, %v3724_v5  ;;  %v93_v11 = vpack.c.bf16 %v62_v6, %v61_v4  ;;  %v2739_v15 = vld [vmem:[%s4598_s0 + $0x39] sm:$0xff]  ;;  %v2817_v17 = vld [vmem:[%s4597_s1 + $0xa] sm:$0x3] }
   0x4   :  { %v1161_v12 = vpack.c.bf16 %v2737_v8, %v2736_v7  ;;  %v60_v13 = vld [vmem:[%s4597_s1] sm:$0x3]  ;;  %v2740_v18 = vld [vmem:[%s4598_s0 + $0x49] sm:$0xff]  ;;  %v2741_v19 = vld [vmem:[%s4598_s0 + $0x51] sm:$0xff]  ;;  %v3759_v20 = vpack.c.bf16 %v2739_v15, %v2738_v14  ;;  %v1522_v21 = vand.u32 %v2817_v17, %v3724_v5 }
   0x5   :  { %v377_v16 = vand.u32 %v3724_v5, %v60_v13  ;;  %3134 = vmatprep.subr.bf16.mxu1 %v165_v9  ;;  %3270 = vmatprep.subr.bf16.mxu0 %v3737_v10  ;;  %v3765_v22 = vpack.c.bf16 %v2741_v19, %v2740_v18  ;;  %v2742_v23 = vld [vmem:[%s4598_s0 + $0x61] sm:$0xff]  ;;  %v2743_v24 = vld [vmem:[%s4598_s0 + $0x69] sm:$0xff]  ;;  %v2744_v26 = vld [vmem:[%s4598_s0 + $0x79] sm:$0xff] }
   0x6   :  { %3135 = vmatpush3.bf16.msra.mxu1 %v165_v9  ;;  %3271 = vmatpush3.bf16.msra.mxu0 %v3737_v10  ;;  %v2866_v25 = vld [vmem:[%s4597_s1 + $0xc] sm:$0x3]  ;;  %v2745_v27 = vld [vmem:[%s4598_s0 + $0x81] sm:$0xff]  ;;  %v3790_v29 = vpack.c.bf16 %v2743_v24, %v2742_v23  ;;  %v2746_v31 = vld [vmem:[%s4598_s0 + $0x91] sm:$0xff] }
   0x7   :  { %3136 = vmatprep.mubr.msk.bf16.mxu1 %vm111_vm2, %v93_v11  ;;  %3272 = vmatprep.mubr.msk.bf16.mxu0 %vm111_vm2, %v1161_v12  ;;  %v1817_v28 = vand.u32 %v2866_v25, %v3724_v5  ;;  %v3792_v30 = vpack.c.bf16 %v2745_v27, %v2744_v26  ;;  %v2747_v32 = vld [vmem:[%s4598_s0 + $0x99] sm:$0xff]  ;;  %v2748_v33 = vld [vmem:[%s4598_s0 + $0xa9] sm:$0xff]  ;;  %v2749_v34 = vld [vmem:[%s4598_s0 + $0xb1] sm:$0xff] }
   0x8   :  { %3168 = vmatprep.subr.bf16.mxu1 %v377_v16  ;;  %3304 = vmatprep.subr.bf16.mxu0 %v1522_v21  ;;  %v2670_v35 = vld [vmem:[%s4597_s1 + $0x4] sm:$0x3]  ;;  %v3817_v36 = vpack.c.bf16 %v2747_v32, %v2746_v31  ;;  %v3822_v38 = vpack.c.bf16 %v2749_v34, %v2748_v33  ;;  %v2751_v40 = vld [vmem:[%s4598_s0 + $0xc9] sm:$0xff]  ;;  %v2785_v41 = vld [vmem:[%s4598_s0 + $0x1a] sm:$0xff] }
   0x9   :  { %3137 = vmatmul.mubr.msk.bf16.vlgmr.msra.gmra.mrb[0].mxu1 %vm111_vm2, %v1161_v12  ;;  %3273 = vmatmul.mubr.msk.bf16.vlgmr.msra.gmra.mrb[0].mxu0 %vm111_vm2, %v3759_v20  ;;  %v3820_v37 = vand.u32 %v2670_v35, %v3724_v5  ;;  %v2750_v39 = vld [vmem:[%s4598_s0 + $0xc1] sm:$0xff]  ;;  %v79_v45 = vld [vmem:[%s4598_s0 + $0xd9] sm:$0xff]  ;;  %v81_v49 = vld [vmem:[%s4598_s0 + $0xf1] sm:$0xff] }
   0xa   :  { %3169 = vmatpush3.bf16.msra.mxu1 %v377_v16  ;;  %3305 = vmatpush3.bf16.msra.mxu0 %v1522_v21  ;;  %v2786_v42 = vld [vmem:[%s4598_s0 + $0x22] sm:$0xff]  ;;  %v3845_v43 = vpack.c.bf16 %v2751_v40, %v2750_v39  ;;  %v2787_v47 = vld [vmem:[%s4598_s0 + $0x32] sm:$0xff]  ;;  %v2788_v48 = vld [vmem:[%s4598_s0 + $0x3a] sm:$0xff] }
   0xb   :  { %3140 = vmatprep.mubr.msk.bf16.mxu1 %vm111_vm2, %v3759_v20  ;;  %3276 = vmatprep.mubr.msk.bf16.mxu0 %vm111_vm2, %v3765_v22  ;;  %v3847_v44 = vpack.c.bf16 %v2786_v42, %v2785_v41  ;;  %v80_v46 = vld [vmem:[%s4598_s0 + $0xe1] sm:$0xff]  ;;  %v82_v50 = vld [vmem:[%s4598_s0 + $0xf9] sm:$0xff]  ;;  %v2789_v51 = vld [vmem:[%s4598_s0 + $0x4a] sm:$0xff]  ;;  %v3889_v56 = vpack.c.bf16 %v2788_v48, %v2787_v47 }
   0xc   :  { %3338 = vmatprep.subr.bf16.mxu0 %v1817_v28  ;;  %3202 = vmatprep.subr.bf16.mxu1 %v3820_v37  ;;  %v2790_v52 = vld [vmem:[%s4598_s0 + $0x52] sm:$0xff]  ;;  %v2915_v53 = vld [vmem:[%s4597_s1 + $0xe] sm:$0x3]  ;;  %v2719_v54 = vld [vmem:[%s4597_s1 + $0x6] sm:$0x3]  ;;  %v3887_v55 = vpack.c.bf16 %v80_v46, %v79_v45  ;;  %v3894_v58 = vpack.c.bf16 %v82_v50, %v81_v49 }
   0xd   :  { %v3892_v57 = vand.u32 %v2719_v54, %v3724_v5  ;;  %v3896_v59 = vpack.c.bf16 %v2790_v52, %v2789_v51  ;;  %v3899_v60 = vand.u32 %v2915_v53, %v3724_v5  ;;  %v83_v61 = vld [vmem:[%s4598_s0 + $0x109] sm:$0xff]  ;;  %v84_v62 = vld [vmem:[%s4598_s0 + $0x111] sm:$0xff]  ;;  %v85_v2 = vld [vmem:[%s4598_s0 + $0x121] sm:$0xff] }
   0xe   :  { %v2964_v63 = vld [vmem:[%s4597_s1 + $0x10] sm:$0x3]  ;;  %v2791_v0 = vld [vmem:[%s4598_s0 + $0x62] sm:$0xff]  ;;  %v2793_v6 = vld [vmem:[%s4598_s0 + $0x7a] sm:$0xff]  ;;  %v3940_v8 = vpack.c.bf16 %v84_v62, %v83_v61 }
   0xf   :  { %v2792_v1 = vld [vmem:[%s4598_s0 + $0x6a] sm:$0xff]  ;;  %v3926_v3 = vand.u32 %v2964_v63, %v3724_v5  ;;  %v2794_v7 = vld [vmem:[%s4598_s0 + $0x82] sm:$0xff]  ;;  %v87_v12 = vld [vmem:[%s4598_s0 + $0x139] sm:$0xff] }
  0x10   :  { %v86_v4 = vld [vmem:[%s4598_s0 + $0x129] sm:$0xff]  ;;  %v3942_v5 = vpack.c.bf16 %v2792_v1, %v2791_v0  ;;  %v3946_v11 = vpack.c.bf16 %v2794_v7, %v2793_v6  ;;  %v88_v13 = vld [vmem:[%s4598_s0 + $0x141] sm:$0xff]  ;;  %v2795_v14 = vld [vmem:[%s4598_s0 + $0x92] sm:$0xff] }
  0x11   :  { %3141 = vmatmul.mubr.msk.bf16.gmra.mrb[4].mxu1 %vm111_vm2, %v3765_v22  ;;  %3277 = vmatmul.mubr.msk.bf16.gmra.mrb[4].mxu0 %vm111_vm2, %v3790_v29  ;;  %v3944_v9 = vpack.c.bf16 %v86_v4, %v85_v2  ;;  %v2796_v15 = vld [vmem:[%s4598_s0 + $0x9a] sm:$0xff]  ;;  %v89_v16 = vld [vmem:[%s4598_s0 + $0x151] sm:$0xff]  ;;  %v3980_v21 = vpack.c.bf16 %v88_v13, %v87_v12  ;;  %v91_v26 = vld [vmem:[%s4598_s0 + $0x169] sm:$0xff] }
  0x12   :  { %3144 = vmatprep.mubr.msk.bf16.mxu1 %vm111_vm2, %v3790_v29  ;;  %3280 = vmatprep.mubr.msk.bf16.mxu0 %vm111_vm2, %v3792_v30  ;;  %v90_v17 = vld [vmem:[%s4598_s0 + $0x159] sm:$0xff]  ;;  %v2797_v18 = vld [vmem:[%s4598_s0 + $0xaa] sm:$0xff]  ;;  %v3982_v23 = vpack.c.bf16 %v2796_v15, %v2795_v14  ;;  %v2802_v35 = vld [vmem:[%s4598_s0 + $0xe2] sm:$0xff] }
  0x13   :  { %v2798_v19 = vld [vmem:[%s4598_s0 + $0xb2] sm:$0xff]  ;;  %v3984_v24 = vpack.c.bf16 %v90_v17, %v89_v16  ;;  %v2800_v31 = vld [vmem:[%s4598_s0 + $0xca] sm:$0xff]  ;;  %v12_v32 = vld [vmem:[%s4598_s0] sm:$0xff] }
  0x14   :  { %v3986_v25 = vpack.c.bf16 %v2798_v19, %v2797_v18  ;;  %v92_v27 = vld [vmem:[%s4598_s0 + $0x171] sm:$0xff]  ;;  %v13_v33 = vld [vmem:[%s4598_s0 + $0x8] sm:$0xff]  ;;  %v2801_v34 = vld [vmem:[%s4598_s0 + $0xda] sm:$0xff] }
  0x15   :  { %v4020_v39 = vpack.c.bf16 %v92_v27, %v91_v26  ;;  %v44_v41 = vpack.c.bf16 %v13_v33, %v12_v32  ;;  %v4024_v42 = vpack.c.bf16 %v2802_v35, %v2801_v34  ;;  %v14_v45 = vld [vmem:[%s4598_s0 + $0x18] sm:$0xff]  ;;  %v15_v46 = vld [vmem:[%s4598_s0 + $0x20] sm:$0xff]  ;;  %v16_v49 = vld [vmem:[%s4598_s0 + $0x30] sm:$0xff] }
  0x16   :  { %v2803_v47 = vld [vmem:[%s4598_s0 + $0xf2] sm:$0xff]  ;;  %v2804_v48 = vld [vmem:[%s4598_s0 + $0xfa] sm:$0xff]  ;;  %v2805_v51 = vld [vmem:[%s4598_s0 + $0x10a] sm:$0xff]  ;;  %v4057_v53 = vpack.c.bf16 %v15_v46, %v14_v45 }
  0x17   :  { %v17_v50 = vld [vmem:[%s4598_s0 + $0x38] sm:$0xff]  ;;  %v4059_v54 = vpack.c.bf16 %v2804_v48, %v2803_v47  ;;  %v18_v63 = vld [vmem:[%s4598_s0 + $0x48] sm:$0xff]  ;;  %v19_v0 = vld [vmem:[%s4598_s0 + $0x50] sm:$0xff] }
  0x18   :  { %v2806_v52 = vld [vmem:[%s4598_s0 + $0x112] sm:$0xff]  ;;  %v4061_v61 = vpack.c.bf16 %v17_v50, %v16_v49  ;;  %v2807_v1 = vld [vmem:[%s4598_s0 + $0x122] sm:$0xff]  ;;  %v2808_v2 = vld [vmem:[%s4598_s0 + $0x12a] sm:$0xff]  ;;  %v4099_v12 = vpack.c.bf16 %v19_v0, %v18_v63 }
  0x19   :  { %3145 = vmatmul.mubr.msk.bf16.gmra.mrb[8].mxu1 %vm111_vm2, %v3792_v30  ;;  %3281 = vmatmul.mubr.msk.bf16.gmra.mrb[8].mxu0 %vm111_vm2, %v3817_v36  ;;  %v4063_v62 = vpack.c.bf16 %v2806_v52, %v2805_v51  ;;  %v20_v4 = vld [vmem:[%s4598_s0 + $0x60] sm:$0xff]  ;;  %v4101_v13 = vpack.c.bf16 %v2808_v2, %v2807_v1  ;;  %v22_v16 = vld [vmem:[%s4598_s0 + $0x78] sm:$0xff]  ;;  %v24_v26 = vld [vmem:[%s4598_s0 + $0x90] sm:$0xff] }
  0x1a   :  { %3148 = vmatprep.mubr.msk.bf16.mxu1 %vm111_vm2, %v3817_v36  ;;  %3284 = vmatprep.mubr.msk.bf16.mxu0 %vm111_vm2, %v3822_v38  ;;  %v2809_v6 = vld [vmem:[%s4598_s0 + $0x13a] sm:$0xff]  ;;  %v2810_v7 = vld [vmem:[%s4598_s0 + $0x142] sm:$0xff]  ;;  %v2811_v18 = vld [vmem:[%s4598_s0 + $0x152] sm:$0xff] }
  0x1b   :  { %v4105_v15 = vpack.c.bf16 %v2810_v7, %v2809_v6  ;;  %v23_v17 = vld [vmem:[%s4598_s0 + $0x80] sm:$0xff]  ;;  %v25_v27 = vld [vmem:[%s4598_s0 + $0x98] sm:$0xff]  ;;  %v27_v45 = vld [vmem:[%s4598_s0 + $0xb0] sm:$0xff] }
  0x1c   :  { %v2812_v19 = vld [vmem:[%s4598_s0 + $0x15a] sm:$0xff]  ;;  %v4139_v32 = vpack.c.bf16 %v23_v17, %v22_v16  ;;  %v4143_v34 = vpack.c.bf16 %v25_v27, %v24_v26  ;;  %v2815_v46 = vld [vmem:[%s4598_s0 + $0x182] sm:$0xff]  ;;  %v2816_v47 = vld [vmem:[%s4598_s0 + $0x18a] sm:$0xff] }
  0x1d   :  { %v4141_v33 = vpack.c.bf16 %v2812_v19, %v2811_v18  ;;  %v28_v48 = vld [vmem:[%s4598_s0 + $0xc0] sm:$0xff]  ;;  %v29_v49 = vld [vmem:[%s4598_s0 + $0xc8] sm:$0xff]  ;;  %v4175_v51 = vpack.c.bf16 %v2816_v47, %v2815_v46  ;;  %v30_v63 = vld [vmem:[%s4598_s0 + $0xd8] sm:$0xff] }
  0x1e   :  { %v4177_v52 = vpack.c.bf16 %v29_v49, %v28_v48  ;;  %v31_v0 = vld [vmem:[%s4598_s0 + $0xe0] sm:$0xff]  ;;  %v32_v1 = vld [vmem:[%s4598_s0 + $0xf0] sm:$0xff]  ;;  %v33_v2 = vld [vmem:[%s4598_s0 + $0xf8] sm:$0xff] }
  0x1f   :  { %v34_v6 = vld [vmem:[%s4598_s0 + $0x108] sm:$0xff]  ;;  %v35_v7 = vld [vmem:[%s4598_s0 + $0x110] sm:$0xff]  ;;  %v36_v16 = vld [vmem:[%s4598_s0 + $0x120] sm:$0xff] }
  0x20   :  { %v4225_v17 = vpack.c.bf16 %v35_v7, %v34_v6  ;;  %v38_v19 = vld [vmem:[%s4598_s0 + $0x138] sm:$0xff]  ;;  %v39_v26 = vld [vmem:[%s4598_s0 + $0x140] sm:$0xff]  ;;  %v40_v27 = vld [vmem:[%s4598_s0 + $0x150] sm:$0xff] }
  0x21   :  { %3149 = vmatmul.mubr.msk.bf16.gmra.mrb[12].mxu1 %vm111_vm2, %v3822_v38  ;;  %3285 = vmatmul.mubr.msk.bf16.gmra.mrb[12].mxu0 %vm111_vm2, %v3845_v43  ;;  %v43_v46 = vld [vmem:[%s4598_s0 + $0x170] sm:$0xff]  ;;  %v540_v47 = vld [vmem:[%s4598_s0 + $0x2] sm:$0xff] }
  0x22   :  { %3152 = vmatprep.mubr.msk.bf16.mxu1 %vm111_vm2, %v3845_v43  ;;  %3306 = vmatprep.mubr.msk.bf16.mxu0 %vm111_vm2, %v3847_v44  ;;  %v541_v48 = vld [vmem:[%s4598_s0 + $0xa] sm:$0xff] }
  0x29   :  { %3153 = vmatmul.mubr.msk.bf16.gmra.mrb[16].mxu1 %vm111_vm2, %v3887_v55  ;;  %3307 = vmatmul.mubr.msk.bf16.vlgmr.msra.gmra.mrb[0].mxu0 %vm111_vm2, %v3889_v56 }
  0x2a   :  { %3339 = vmatpush3.bf16.msra.mxu0 %v1817_v28  ;;  %3156 = vmatprep.mubr.msk.bf16.mxu1 %vm111_vm2, %v3894_v58  ;;  %v2799_v28 = vld [vmem:[%s4598_s0 + $0xc2] sm:$0xff] }
  0x2b   :  { %3310 = vmatprep.mubr.msk.bf16.mxu0 %vm111_vm2, %v3896_v59  ;;  %3372 = vmatprep.subr.bf16.mxu0 %v3899_v60  ;;  %v4022_v40 = vpack.c.bf16 %v2800_v31, %v2799_v28  ;;  %v2813_v28 = vld [vmem:[%s4598_s0 + $0x16a] sm:$0xff]  ;;  %v2814_v31 = vld [vmem:[%s4598_s0 + $0x172] sm:$0xff] }
  0x2c   :  { %v4145_v35 = vpack.c.bf16 %v2814_v31, %v2813_v28  ;;  %v41_v28 = vld [vmem:[%s4598_s0 + $0x158] sm:$0xff]  ;;  %v4249_v31 = vpack.c.bf16 %v39_v26, %v38_v19 }
  0x31   :  { %3157 = vmatmul.mubr.msk.bf16.gmra.mrb[20].mxu1 %vm111_vm2, %v3940_v8  ;;  %3311 = vmatmul.mubr.msk.bf16.gmra.mrb[4].mxu0 %vm111_vm2, %v3942_v5 }
  0x32   :  { %3160 = vmatprep.mubr.msk.bf16.mxu1 %vm111_vm2, %v3944_v9  ;;  %3314 = vmatprep.mubr.msk.bf16.mxu0 %vm111_vm2, %v3946_v11 }
  0x39   :  { %3161 = vmatmul.mubr.msk.bf16.gmra.mrb[24].mxu1 %vm111_vm2, %v3980_v21  ;;  %3315 = vmatmul.mubr.msk.bf16.gmra.mrb[8].mxu0 %vm111_vm2, %v3982_v23 }
  0x3a   :  { %3164 = vmatprep.mubr.msk.bf16.mxu1 %vm111_vm2, %v3984_v24  ;;  %3318 = vmatprep.mubr.msk.bf16.mxu0 %vm111_vm2, %v3986_v25 }
  0x41   :  { %3165 = vmatmul.mubr.msk.bf16.gmra.mrb[28].mxu1 %vm111_vm2, %v4020_v39  ;;  %3319 = vmatmul.mubr.msk.bf16.gmra.mrb[12].mxu0 %vm111_vm2, %v4022_v40 }
  0x42   :  { %3170 = vmatprep.mubr.msk.bf16.mxu1 %vm111_vm2, %v44_v41  ;;  %3322 = vmatprep.mubr.msk.bf16.mxu0 %vm111_vm2, %v4024_v42  ;;  %v26_v41 = vld [vmem:[%s4598_s0 + $0xa8] sm:$0xff] }
  0x43   :  { %v4173_v50 = vpack.c.bf16 %v27_v45, %v26_v41  ;;  %v4251_v41 = vpack.c.bf16 %v41_v28, %v40_v27  ;;  %v42_v45 = vld [vmem:[%s4598_s0 + $0x168] sm:$0xff] }
  0x44   :  { %v4273_v49 = vpack.c.bf16 %v43_v46, %v42_v45 }
  0x49   :  { %3171 = vmatmul.mubr.msk.bf16.vlgmr.msra.gmra.mrb[0].mxu1 %vm111_vm2, %v4057_v53  ;;  %3323 = vmatmul.mubr.msk.bf16.gmra.mrb[16].mxu0 %vm111_vm2, %v4059_v54 }
  0x4a   :  { %3203 = vmatpush3.bf16.msra.mxu1 %v3820_v37  ;;  %3174 = vmatprep.mubr.msk.bf16.mxu1 %vm111_vm2, %v4061_v61  ;;  %v21_v37 = vld [vmem:[%s4598_s0 + $0x68] sm:$0xff] }
  0x4b   :  { %3326 = vmatprep.mubr.msk.bf16.mxu0 %vm111_vm2, %v4063_v62  ;;  %3236 = vmatprep.subr.bf16.mxu1 %v3892_v57  ;;  %v4103_v14 = vpack.c.bf16 %v21_v37, %v20_v4  ;;  %v4199_v4 = vpack.c.bf16 %v31_v0, %v30_v63  ;;  %v4201_v37 = vpack.c.bf16 %v33_v2, %v32_v1  ;;  %v2864_v1 = vld [vmem:[%s4598_s0 + $0x198] sm:$0xff]  ;;  %v2865_v2 = vld [vmem:[%s4598_s0 + $0x1a0] sm:$0xff] }
  0x4c   :  { %v572_v63 = vpack.c.bf16 %v541_v48, %v540_v47  ;;  %v1765_v6 = vpack.c.bf16 %v2865_v2, %v2864_v1 }
  0x51   :  { %3175 = vmatmul.mubr.msk.bf16.gmra.mrb[4].mxu1 %vm111_vm2, %v4099_v12  ;;  %3327 = vmatmul.mubr.msk.bf16.gmra.mrb[20].mxu0 %vm111_vm2, %v4101_v13 }
  0x52   :  { %3178 = vmatprep.mubr.msk.bf16.mxu1 %vm111_vm2, %v4103_v14  ;;  %3330 = vmatprep.mubr.msk.bf16.mxu0 %vm111_vm2, %v4105_v15 }
  0x59   :  { %3179 = vmatmul.mubr.msk.bf16.gmra.mrb[8].mxu1 %vm111_vm2, %v4139_v32  ;;  %3331 = vmatmul.mubr.msk.bf16.gmra.mrb[24].mxu0 %vm111_vm2, %v4141_v33 }
  0x5a   :  { %3182 = vmatprep.mubr.msk.bf16.mxu1 %vm111_vm2, %v4143_v34  ;;  %3334 = vmatprep.mubr.msk.bf16.mxu0 %vm111_vm2, %v4145_v35 }
  0x61   :  { %3183 = vmatmul.mubr.msk.bf16.gmra.mrb[12].mxu1 %vm111_vm2, %v4173_v50  ;;  %3335 = vmatmul.mubr.msk.bf16.gmra.mrb[28].mxu0 %vm111_vm2, %v4175_v51 }
  0x62   :  { %3186 = vmatprep.mubr.msk.bf16.mxu1 %vm111_vm2, %v4177_v52  ;;  %3340 = vmatprep.mubr.msk.bf16.mxu0 %vm111_vm2, %v4061_v61 }
  0x69   :  { %3187 = vmatmul.mubr.msk.bf16.gmra.mrb[16].mxu1 %vm111_vm2, %v4199_v4  ;;  %3341 = vmatmul.mubr.msk.bf16.vlgmr.msra.gmra.mrb[0].mxu0 %vm111_vm2, %v4099_v12 }
  0x6a   :  { %3373 = vmatpush3.bf16.msra.mxu0 %v3899_v60  ;;  %3190 = vmatprep.mubr.msk.bf16.mxu1 %vm111_vm2, %v4201_v37  ;;  %v37_v60 = vld [vmem:[%s4598_s0 + $0x128] sm:$0xff] }
  0x6b   :  { %3344 = vmatprep.mubr.msk.bf16.mxu0 %vm111_vm2, %v4103_v14  ;;  %3406 = vmatprep.subr.bf16.mxu0 %v3926_v3  ;;  %v4227_v18 = vpack.c.bf16 %v37_v60, %v36_v16 }
  0x71   :  { %3191 = vmatmul.mubr.msk.bf16.gmra.mrb[20].mxu1 %vm111_vm2, %v4225_v17  ;;  %3345 = vmatmul.mubr.msk.bf16.gmra.mrb[4].mxu0 %vm111_vm2, %v4139_v32 }
  0x72   :  { %3194 = vmatprep.mubr.msk.bf16.mxu1 %vm111_vm2, %v4227_v18  ;;  %3348 = vmatprep.mubr.msk.bf16.mxu0 %vm111_vm2, %v4143_v34 }
  0x79   :  { %3195 = vmatmul.mubr.msk.bf16.gmra.mrb[24].mxu1 %vm111_vm2, %v4249_v31  ;;  %3349 = vmatmul.mubr.msk.bf16.gmra.mrb[8].mxu0 %vm111_vm2, %v4173_v50 }
  0x7a   :  { %3198 = vmatprep.mubr.msk.bf16.mxu1 %vm111_vm2, %v4251_v41  ;;  %3352 = vmatprep.mubr.msk.bf16.mxu0 %vm111_vm2, %v4177_v52 }
  0x81   :  { %3199 = vmatmul.mubr.msk.bf16.gmra.mrb[28].mxu1 %vm111_vm2, %v4273_v49  ;;  %3353 = vmatmul.mubr.msk.bf16.gmra.mrb[12].mxu0 %vm111_vm2, %v4199_v4 }
  0x82   :  { %3204 = vmatprep.mubr.msk.bf16.mxu1 %vm111_vm2, %v572_v63  ;;  %3356 = vmatprep.mubr.msk.bf16.mxu0 %vm111_vm2, %v4201_v37 }
  0x89   :  { %3205 = vmatmul.mubr.msk.bf16.vlgmr.msra.gmra.mrb[0].mxu1 %vm111_vm2, %v3847_v44  ;;  %3357 = vmatmul.mubr.msk.bf16.gmra.mrb[16].mxu0 %vm111_vm2, %v4225_v17  ;;  %v2862_v44 = vld [vmem:[%s4598_s0 + $0x180] sm:$0xff] }
  0x8a   :  { %3237 = vmatpush3.bf16.msra.mxu1 %v3892_v57  ;;  %3208 = vmatprep.mubr.msk.bf16.mxu1 %vm111_vm2, %v3889_v56  ;;  %v2863_v57 = vld [vmem:[%s4598_s0 + $0x188] sm:$0xff] }
  0x8b   :  { %3360 = vmatprep.mubr.msk.bf16.mxu0 %vm111_vm2, %v4227_v18  ;;  %3440 = vmatprep.subr.bf16.mxu1 %v3737_v10  ;;  %v4306_v0 = vpack.c.bf16 %v2863_v57, %v2862_v44 }
  0x91   :  { %3209 = vmatmul.mubr.msk.bf16.gmra.mrb[4].mxu1 %vm111_vm2, %v3896_v59  ;;  %3361 = vmatmul.mubr.msk.bf16.gmra.mrb[20].mxu0 %vm111_vm2, %v4249_v31 }
  0x92   :  { %3212 = vmatprep.mubr.msk.bf16.mxu1 %vm111_vm2, %v3942_v5  ;;  %3364 = vmatprep.mubr.msk.bf16.mxu0 %vm111_vm2, %v4251_v41 }
  0x99   :  { %3213 = vmatmul.mubr.msk.bf16.gmra.mrb[8].mxu1 %vm111_vm2, %v3946_v11  ;;  %3365 = vmatmul.mubr.msk.bf16.gmra.mrb[24].mxu0 %vm111_vm2, %v4273_v49 }
  0x9a   :  { %3216 = vmatprep.mubr.msk.bf16.mxu1 %vm111_vm2, %v3982_v23  ;;  %3368 = vmatprep.mubr.msk.bf16.mxu0 %vm111_vm2, %v4306_v0 }
  0xa1   :  { %3217 = vmatmul.mubr.msk.bf16.gmra.mrb[12].mxu1 %vm111_vm2, %v3986_v25  ;;  %3369 = vmatmul.mubr.msk.bf16.gmra.mrb[28].mxu0 %vm111_vm2, %v1765_v6 }
  0xa2   :  { %3220 = vmatprep.mubr.msk.bf16.mxu1 %vm111_vm2, %v4022_v40  ;;  %3374 = vmatprep.mubr.msk.bf16.mxu0 %vm111_vm2, %v3759_v20  ;;  %v2912_v20 = vld [vmem:[%s4598_s0 + $0x189] sm:$0xff] }
  0xa9   :  { %3221 = vmatmul.mubr.msk.bf16.gmra.mrb[16].mxu1 %vm111_vm2, %v4024_v42  ;;  %3375 = vmatmul.mubr.msk.bf16.vlgmr.msra.gmra.mrb[0].mxu0 %vm111_vm2, %v3765_v22 }
  0xaa   :  { %3407 = vmatpush3.bf16.msra.mxu0 %v3926_v3  ;;  %3224 = vmatprep.mubr.msk.bf16.mxu1 %vm111_vm2, %v4059_v54 }
  0xab   :  { %3378 = vmatprep.mubr.msk.bf16.mxu0 %vm111_vm2, %v3790_v29  ;;  %v2913_v29 = vld [vmem:[%s4598_s0 + $0x199] sm:$0xff] }
  0xb1   :  { %3225 = vmatmul.mubr.msk.bf16.gmra.mrb[20].mxu1 %vm111_vm2, %v4063_v62  ;;  %3379 = vmatmul.mubr.msk.bf16.gmra.mrb[4].mxu0 %vm111_vm2, %v3792_v30  ;;  %v2914_v30 = vld [vmem:[%s4598_s0 + $0x1a1] sm:$0xff] }
  0xb2   :  { %3228 = vmatprep.mubr.msk.bf16.mxu1 %vm111_vm2, %v4101_v13  ;;  %3382 = vmatprep.mubr.msk.bf16.mxu0 %vm111_vm2, %v3817_v36  ;;  %v2059_v36 = vpack.c.bf16 %v2914_v30, %v2913_v29 }
  0xb9   :  { %3229 = vmatmul.mubr.msk.bf16.gmra.mrb[24].mxu1 %vm111_vm2, %v4105_v15  ;;  %3383 = vmatmul.mubr.msk.bf16.gmra.mrb[8].mxu0 %vm111_vm2, %v3822_v38  ;;  %v2962_v38 = vld [vmem:[%s4598_s0 + $0x19a] sm:$0xff] }
  0xba   :  { %3232 = vmatprep.mubr.msk.bf16.mxu1 %vm111_vm2, %v4141_v33  ;;  %3386 = vmatprep.mubr.msk.bf16.mxu0 %vm111_vm2, %v3845_v43  ;;  %v2963_v43 = vld [vmem:[%s4598_s0 + $0x1a2] sm:$0xff] }
  0xc1   :  { %3233 = vmatmul.mubr.msk.bf16.gmra.mrb[28].mxu1 %vm111_vm2, %v4145_v35  ;;  %3387 = vmatmul.mubr.msk.bf16.gmra.mrb[12].mxu0 %vm111_vm2, %v3887_v55 }
  0xc2   :  { %3238 = vmatprep.mubr.msk.bf16.mxu1 %vm111_vm2, %v4057_v53  ;;  %3390 = vmatprep.mubr.msk.bf16.mxu0 %vm111_vm2, %v3894_v58 }
  0xc9   :  { %3239 = vmatmul.mubr.msk.bf16.vlgmr.msra.gmra.mrb[0].mxu1 %vm111_vm2, %v4061_v61  ;;  %3391 = vmatmul.mubr.msk.bf16.gmra.mrb[16].mxu0 %vm111_vm2, %v3940_v8 }
  0xca   :  { %3441 = vmatpush3.bf16.msra.mxu1 %v3737_v10  ;;  %3242 = vmatprep.mubr.msk.bf16.mxu1 %vm111_vm2, %v4099_v12  ;;  %v2911_v10 = vld [vmem:[%s4598_s0 + $0x181] sm:$0xff] }
  0xcb   :  { %3394 = vmatprep.mubr.msk.bf16.mxu0 %vm111_vm2, %v3944_v9  ;;  %v2058_v22 = vpack.c.bf16 %v2912_v20, %v2911_v10 }
  0xd1   :  { %3243 = vmatmul.mubr.msk.bf16.gmra.mrb[4].mxu1 %vm111_vm2, %v4103_v14  ;;  %3395 = vmatmul.mubr.msk.bf16.gmra.mrb[20].mxu0 %vm111_vm2, %v3980_v21 }
  0xd2   :  { %3246 = vmatprep.mubr.msk.bf16.mxu1 %vm111_vm2, %v4139_v32  ;;  %3398 = vmatprep.mubr.msk.bf16.mxu0 %vm111_vm2, %v3984_v24 }
  0xd9   :  { %3247 = vmatmul.mubr.msk.bf16.gmra.mrb[8].mxu1 %vm111_vm2, %v4143_v34  ;;  %3399 = vmatmul.mubr.msk.bf16.gmra.mrb[24].mxu0 %vm111_vm2, %v4020_v39 }
  0xda   :  { %3250 = vmatprep.mubr.msk.bf16.mxu1 %vm111_vm2, %v4173_v50  ;;  %3402 = vmatprep.mubr.msk.bf16.mxu0 %vm111_vm2, %v2058_v22 }
  0xe1   :  { %3251 = vmatmul.mubr.msk.bf16.gmra.mrb[12].mxu1 %vm111_vm2, %v4177_v52  ;;  %3403 = vmatmul.mubr.msk.bf16.gmra.mrb[28].mxu0 %vm111_vm2, %v2059_v36 }
  0xe2   :  { %3254 = vmatprep.mubr.msk.bf16.mxu1 %vm111_vm2, %v4199_v4  ;;  %3408 = vmatprep.mubr.msk.bf16.mxu0 %vm111_vm2, %v3889_v56 }
  0xe9   :  { %3255 = vmatmul.mubr.msk.bf16.gmra.mrb[16].mxu1 %vm111_vm2, %v4201_v37  ;;  %3409 = vmatmul.mubr.msk.bf16.vlgmr.msra.gmra.mrb[0].mxu0 %vm111_vm2, %v3896_v59 }
  0xea   :  { %3258 = vmatprep.mubr.msk.bf16.mxu1 %vm111_vm2, %v4225_v17  ;;  %3412 = vmatprep.mubr.msk.bf16.mxu0 %vm111_vm2, %v3942_v5 }
  0xf1   :  { %3259 = vmatmul.mubr.msk.bf16.gmra.mrb[20].mxu1 %vm111_vm2, %v4227_v18  ;;  %3413 = vmatmul.mubr.msk.bf16.gmra.mrb[4].mxu0 %vm111_vm2, %v3946_v11 }
  0xf2   :  { %3262 = vmatprep.mubr.msk.bf16.mxu1 %vm111_vm2, %v4249_v31  ;;  %3416 = vmatprep.mubr.msk.bf16.mxu0 %vm111_vm2, %v3982_v23 }
  0xf9   :  { %3263 = vmatmul.mubr.msk.bf16.gmra.mrb[24].mxu1 %vm111_vm2, %v4251_v41  ;;  %3417 = vmatmul.mubr.msk.bf16.gmra.mrb[8].mxu0 %vm111_vm2, %v3986_v25 }
  0xfa   :  { %3266 = vmatprep.mubr.msk.bf16.mxu1 %vm111_vm2, %v4273_v49  ;;  %3420 = vmatprep.mubr.msk.bf16.mxu0 %vm111_vm2, %v4022_v40 }
 0x101   :  { %3267 = vmatmul.mubr.msk.bf16.gmra.mrb[28].mxu1 %vm111_vm2, %v4306_v0  ;;  %3421 = vmatmul.mubr.msk.bf16.gmra.mrb[12].mxu0 %vm111_vm2, %v4024_v42 }
 0x102   :  { %3288 = vmatprep.mubr.msk.bf16.mxu1 %vm111_vm2, %v3887_v55  ;;  %3424 = vmatprep.mubr.msk.bf16.mxu0 %vm111_vm2, %v4059_v54  ;;  %v2353_v55 = vpack.c.bf16 %v2963_v43, %v2962_v38 }
 0x109   :  { %3289 = vmatmul.mubr.msk.bf16.vlgmr.msra.gmra.mrb[16].mxu1 %vm111_vm2, %v3894_v58  ;;  %3425 = vmatmul.mubr.msk.bf16.gmra.mrb[16].mxu0 %vm111_vm2, %v4063_v62 }
 0x10a   :  { %3292 = vmatprep.mubr.msk.bf16.mxu1 %vm111_vm2, %v3940_v8  ;;  %3428 = vmatprep.mubr.msk.bf16.mxu0 %vm111_vm2, %v4101_v13 }
 0x111   :  { %3293 = vmatmul.mubr.msk.bf16.gmra.mrb[20].mxu1 %vm111_vm2, %v3944_v9  ;;  %3429 = vmatmul.mubr.msk.bf16.gmra.mrb[20].mxu0 %vm111_vm2, %v4105_v15 }
 0x112   :  { %3296 = vmatprep.mubr.msk.bf16.mxu1 %vm111_vm2, %v3980_v21  ;;  %3432 = vmatprep.mubr.msk.bf16.mxu0 %vm111_vm2, %v4141_v33 }
 0x119   :  { %3297 = vmatmul.mubr.msk.bf16.gmra.mrb[24].mxu1 %vm111_vm2, %v3984_v24  ;;  %3433 = vmatmul.mubr.msk.bf16.gmra.mrb[24].mxu0 %vm111_vm2, %v4145_v35 }
 0x11a   :  { %3300 = vmatprep.mubr.msk.bf16.mxu1 %vm111_vm2, %v4020_v39  ;;  %3436 = vmatprep.mubr.msk.bf16.mxu0 %vm111_vm2, %v4175_v51 }
 0x121   :  { %3301 = vmatmul.mubr.msk.bf16.gmra.mrb[28].mxu1 %vm111_vm2, %v2058_v22  ;;  %3437 = vmatmul.mubr.msk.bf16.gmra.mrb[28].mxu0 %vm111_vm2, %v2353_v55 }
 0x19c   :  { %v3240_v56 = vpop.f32.mrb[0].mxu1 }
 0x19d   :  { %v970_v58 = vpop.f32.mrb[1].mxu1 }
 0x19e   :  { %v3241_v59 = vpop.f32.mrb[2].mxu1 }
 0x19f   :  { %v973_v3 = vpop.f32.mrb[3].mxu1 }
 0x1a4   :  { %v3244_v8 = vpop.f32.mrb[4].mxu1 }
 0x1a5   :  { %v986_v5 = vpop.f32.mrb[5].mxu1 }
 0x1a6   :  { %v3245_v9 = vpop.f32.mrb[6].mxu1 }
 0x1a7   :  { %v989_v11 = vpop.f32.mrb[7].mxu1 }
 0x1ac   :  { %v3248_v21 = vpop.f32.mrb[8].mxu1 }
 0x1ad   :  { %v1002_v23 = vpop.f32.mrb[9].mxu1 }
 0x1ae   :  { %v3249_v24 = vpop.f32.mrb[10].mxu1 }
 0x1af   :  { %v1005_v25 = vpop.f32.mrb[11].mxu1 }
 0x1b4   :  { %v3252_v39 = vpop.f32.mrb[12].mxu1 }
 0x1b5   :  { %v1018_v40 = vpop.f32.mrb[13].mxu1 }
 0x1b6   :  { %v3253_v42 = vpop.f32.mrb[14].mxu1 }
 0x1b7   :  { %v1021_v53 = vpop.f32.mrb[15].mxu1 }
 0x1bc   :  { %v3410_v54 = vpop.f32.mrb[0].mxu0 }
 0x1bd   :  { %v3442_v61 = vadd.f32 %v3410_v54, %v3240_v56  ;;  %v2441_v62 = vpop.f32.mrb[1].mxu0 }
 0x1be   :  { %v3443_v12 = vadd.f32 %v2441_v62, %v970_v58  ;;  %v3411_v13 = vpop.f32.mrb[2].mxu0 }
 0x1bf   :  { %2603 = vst.msk [vmem:[%s4599_s2 + $0x10] sm:$0xff] %vm2600_vm3, %v3442_v61  ;;  %v3444_v14 = vadd.f32 %v3411_v13, %v3241_v59  ;;  %v2444_v15 = vpop.f32.mrb[3].mxu0 }
 0x1c0   :  { %2601 = vst.msk [vmem:[%s4599_s2] sm:$0xff] %vm2600_vm3, %v3443_v12  ;;  %v3445_v32 = vadd.f32 %v2444_v15, %v973_v3 }
 0x1c1   :  { %2604 = vst.msk [vmem:[%s4599_s2 + $0x18] sm:$0xff] %vm2600_vm3, %v3444_v14 }
 0x1c2   :  { %2602 = vst.msk [vmem:[%s4599_s2 + $0x8] sm:$0xff] %vm2600_vm3, %v3445_v32 }
 0x1c4   :  { %v3414_v33 = vpop.f32.mrb[4].mxu0 }
 0x1c5   :  { %v3446_v34 = vadd.f32 %v3414_v33, %v3244_v8  ;;  %v2457_v35 = vpop.f32.mrb[5].mxu0 }
 0x1c6   :  { %v3447_v50 = vadd.f32 %v2457_v35, %v986_v5  ;;  %v3415_v51 = vpop.f32.mrb[6].mxu0 }
 0x1c7   :  { %2607 = vst.msk [vmem:[%s4599_s2 + $0x30] sm:$0xff] %vm2600_vm3, %v3446_v34  ;;  %v3448_v52 = vadd.f32 %v3415_v51, %v3245_v9  ;;  %v2460_v4 = vpop.f32.mrb[7].mxu0 }
 0x1c8   :  { %2605 = vst.msk [vmem:[%s4599_s2 + $0x20] sm:$0xff] %vm2600_vm3, %v3447_v50  ;;  %v3449_v37 = vadd.f32 %v2460_v4, %v989_v11 }
 0x1c9   :  { %2608 = vst.msk [vmem:[%s4599_s2 + $0x38] sm:$0xff] %vm2600_vm3, %v3448_v52 }
 0x1ca   :  { %2606 = vst.msk [vmem:[%s4599_s2 + $0x28] sm:$0xff] %vm2600_vm3, %v3449_v37 }
 0x1cc   :  { %v3418_v7 = vpop.f32.mrb[8].mxu0 }
 0x1cd   :  { %v3450_v16 = vadd.f32 %v3418_v7, %v3248_v21  ;;  %v2473_v60 = vpop.f32.mrb[9].mxu0 }
 0x1ce   :  { %v3451_v17 = vadd.f32 %v2473_v60, %v1002_v23  ;;  %v3419_v18 = vpop.f32.mrb[10].mxu0 }
 0x1cf   :  { %2611 = vst.msk [vmem:[%s4599_s2 + $0x50] sm:$0xff] %vm2600_vm3, %v3450_v16  ;;  %v3452_v19 = vadd.f32 %v3419_v18, %v3249_v24  ;;  %v2476_v26 = vpop.f32.mrb[11].mxu0 }
 0x1d0   :  { %2609 = vst.msk [vmem:[%s4599_s2 + $0x40] sm:$0xff] %vm2600_vm3, %v3451_v17  ;;  %v3453_v27 = vadd.f32 %v2476_v26, %v1005_v25 }
 0x1d1   :  { %2612 = vst.msk [vmem:[%s4599_s2 + $0x58] sm:$0xff] %vm2600_vm3, %v3452_v19 }
 0x1d2   :  { %2610 = vst.msk [vmem:[%s4599_s2 + $0x48] sm:$0xff] %vm2600_vm3, %v3453_v27 }
 0x1d4   :  { %v3422_v28 = vpop.f32.mrb[12].mxu0 }
 0x1d5   :  { %v3454_v31 = vadd.f32 %v3422_v28, %v3252_v39  ;;  %v2489_v41 = vpop.f32.mrb[13].mxu0 }
 0x1d6   :  { %v3455_v45 = vadd.f32 %v2489_v41, %v1018_v40  ;;  %v3423_v46 = vpop.f32.mrb[14].mxu0 }
 0x1d7   :  { %2615 = vst.msk [vmem:[%s4599_s2 + $0x70] sm:$0xff] %vm2600_vm3, %v3454_v31  ;;  %v3456_v47 = vadd.f32 %v3423_v46, %v3253_v42  ;;  %v2492_v48 = vpop.f32.mrb[15].mxu0 }
 0x1d8   :  { %2613 = vst.msk [vmem:[%s4599_s2 + $0x60] sm:$0xff] %vm2600_vm3, %v3455_v45  ;;  %v3457_v49 = vadd.f32 %v2492_v48, %v1021_v53 }
 0x1d9   :  { %2616 = vst.msk [vmem:[%s4599_s2 + $0x78] sm:$0xff] %vm2600_vm3, %v3456_v47 }
 0x1da   :  { %2614 = vst.msk [vmem:[%s4599_s2 + $0x68] sm:$0xff] %vm2600_vm3, %v3457_v49 }
 0x1dc   :  { %v3290_v63 = vpop.f32.mrb[16].mxu1  ;;  %v3426_v44 = vpop.f32.mrb[16].mxu0 }
 0x1dd   :  { %v3458_v57 = vadd.f32 %v3426_v44, %v3290_v63  ;;  %v1328_v0 = vpop.f32.mrb[17].mxu1  ;;  %v2505_v1 = vpop.f32.mrb[17].mxu0 }
 0x1de   :  { %v3459_v2 = vadd.f32 %v2505_v1, %v1328_v0  ;;  %v3291_v6 = vpop.f32.mrb[18].mxu1  ;;  %v3427_v10 = vpop.f32.mrb[18].mxu0 }
 0x1df   :  { %2619 = vst.msk [vmem:[%s4599_s2 + $0x90] sm:$0xff] %vm2600_vm3, %v3458_v57  ;;  %v3460_v20 = vadd.f32 %v3427_v10, %v3291_v6  ;;  %v1331_v22 = vpop.f32.mrb[19].mxu1  ;;  %v2508_v29 = vpop.f32.mrb[19].mxu0 }
 0x1e0   :  { %2617 = vst.msk [vmem:[%s4599_s2 + $0x80] sm:$0xff] %vm2600_vm3, %v3459_v2  ;;  %v3461_v30 = vadd.f32 %v2508_v29, %v1331_v22 }
 0x1e1   :  { %2620 = vst.msk [vmem:[%s4599_s2 + $0x98] sm:$0xff] %vm2600_vm3, %v3460_v20 }
 0x1e2   :  { %2618 = vst.msk [vmem:[%s4599_s2 + $0x88] sm:$0xff] %vm2600_vm3, %v3461_v30 }
 0x1e4   :  { %v3294_v36 = vpop.f32.mrb[20].mxu1  ;;  %v3430_v38 = vpop.f32.mrb[20].mxu0 }
 0x1e5   :  { %v3462_v43 = vadd.f32 %v3430_v38, %v3294_v36  ;;  %v1344_v55 = vpop.f32.mrb[21].mxu1  ;;  %v2521_v56 = vpop.f32.mrb[21].mxu0 }
 0x1e6   :  { %v3463_v58 = vadd.f32 %v2521_v56, %v1344_v55  ;;  %v3295_v59 = vpop.f32.mrb[22].mxu1  ;;  %v3431_v3 = vpop.f32.mrb[22].mxu0 }
 0x1e7   :  { %2623 = vst.msk [vmem:[%s4599_s2 + $0xb0] sm:$0xff] %vm2600_vm3, %v3462_v43  ;;  %v3464_v8 = vadd.f32 %v3431_v3, %v3295_v59  ;;  %v1347_v5 = vpop.f32.mrb[23].mxu1  ;;  %v2524_v9 = vpop.f32.mrb[23].mxu0 }
 0x1e8   :  { %2621 = vst.msk [vmem:[%s4599_s2 + $0xa0] sm:$0xff] %vm2600_vm3, %v3463_v58  ;;  %v3465_v11 = vadd.f32 %v2524_v9, %v1347_v5 }
 0x1e9   :  { %2624 = vst.msk [vmem:[%s4599_s2 + $0xb8] sm:$0xff] %vm2600_vm3, %v3464_v8 }
 0x1ea   :  { %2622 = vst.msk [vmem:[%s4599_s2 + $0xa8] sm:$0xff] %vm2600_vm3, %v3465_v11 }
 0x1ec   :  { %v3298_v21 = vpop.f32.mrb[24].mxu1  ;;  %v3434_v23 = vpop.f32.mrb[24].mxu0 }
 0x1ed   :  { %v3466_v24 = vadd.f32 %v3434_v23, %v3298_v21  ;;  %v1360_v25 = vpop.f32.mrb[25].mxu1  ;;  %v2537_v39 = vpop.f32.mrb[25].mxu0 }
 0x1ee   :  { %v3467_v40 = vadd.f32 %v2537_v39, %v1360_v25  ;;  %v3299_v42 = vpop.f32.mrb[26].mxu1  ;;  %v3435_v53 = vpop.f32.mrb[26].mxu0 }
 0x1ef   :  { %2627 = vst.msk [vmem:[%s4599_s2 + $0xd0] sm:$0xff] %vm2600_vm3, %v3466_v24  ;;  %v3468_v54 = vadd.f32 %v3435_v53, %v3299_v42  ;;  %v1363_v61 = vpop.f32.mrb[27].mxu1  ;;  %v2540_v62 = vpop.f32.mrb[27].mxu0 }
 0x1f0   :  { %2625 = vst.msk [vmem:[%s4599_s2 + $0xc0] sm:$0xff] %vm2600_vm3, %v3467_v40  ;;  %v3469_v12 = vadd.f32 %v2540_v62, %v1363_v61 }
 0x1f1   :  { %2628 = vst.msk [vmem:[%s4599_s2 + $0xd8] sm:$0xff] %vm2600_vm3, %v3468_v54 }
 0x1f2   :  { %2626 = vst.msk [vmem:[%s4599_s2 + $0xc8] sm:$0xff] %vm2600_vm3, %v3469_v12 }
 0x1f4   :  { %v3302_v13 = vpop.f32.mrb[28].mxu1  ;;  %v3438_v14 = vpop.f32.mrb[28].mxu0 }
 0x1f5   :  { %v3470_v15 = vadd.f32 %v3438_v14, %v3302_v13  ;;  %v1376_v32 = vpop.f32.mrb[29].mxu1  ;;  %v2553_v33 = vpop.f32.mrb[29].mxu0 }
 0x1f6   :  { %v3471_v34 = vadd.f32 %v2553_v33, %v1376_v32  ;;  %v3303_v35 = vpop.f32.mrb[30].mxu1  ;;  %v3439_v50 = vpop.f32.mrb[30].mxu0 }
 0x1f7   :  { %2631 = vst.msk [vmem:[%s4599_s2 + $0xf0] sm:$0xff] %vm2600_vm3, %v3470_v15  ;;  %v3472_v51 = vadd.f32 %v3439_v50, %v3303_v35  ;;  %v1379_v52 = vpop.f32.mrb[31].mxu1  ;;  %v2556_v4 = vpop.f32.mrb[31].mxu0 }
 0x1f8   :  { %2629 = vst.msk [vmem:[%s4599_s2 + $0xe0] sm:$0xff] %vm2600_vm3, %v3471_v34  ;;  %v3473_v37 = vadd.f32 %v2556_v4, %v1379_v52 }
 0x1f9   :  { %2632 = vst.msk [vmem:[%s4599_s2 + $0xf8] sm:$0xff] %vm2600_vm3, %v3472_v51 }
 0x1fa   :  { %2630 = vst.msk [vmem:[%s4599_s2 + $0xe8] sm:$0xff] %vm2600_vm3, %v3473_v37 }

// kernel: tpu_custom_call.1
= control target key start
LH: loop header
LB: loop body
LE: loop exit
PB: predicated region body
PF: predicated region fallthrough
CT: control target
= control target key end

     0   :  { %v664_v1 = vmov 0   ;;  %vm45_vm0 = vcmask 523264   ;;  %vm60_vm1 = vcmask 64512   ;;  %v665_v41 = vmov 0.0   ;;  %s840_s1 = inlined_call_operand.vmem [shape: bf16[1,8,64], index: 1, kind: input, shape index: {}]   ;;  %s841_s2 = inlined_call_operand.vmem [shape: bf16[1,64,8], index: 2, kind: input, shape index: {}]   ;;  %s842_s0 = inlined_call_operand.vmem [shape: f32[8,1], index: 0, kind: input, shape index: {}]   ;;  %s843_s3 = inlined_call_operand.vmem [shape: bf16[1,64,8], index: 3, kind: input, shape index: {}]   ;;  %s844_s4 = inlined_call_operand.vmem [shape: bf16[1,64,8], index: 4, kind: output, shape index: {}]  }
   0x1   :  { %v18_v0 = vld [vmem:[%s840_s1] sm:$0xf]  ;;  %627 = vset.pattern.permute.xlu0 %v664_v1  ;;  %v553_v6 = vld [vmem:[%s841_s2 + $0x8] sm:$0xff]   ;;  %v554_v7 = vld [vmem:[%s841_s2 + $0x10] sm:$0xff]   ;;  %576 = vmatprep.subr.bf16.mxu0 %v665_v41  ;;  %vm666_vm2 = vmmov 0   ;;  %vm147_vm3 = vcmask 27648  }
   0x2   :  { %v538_v2 = vld [vmem:[%s841_s2] sm:$0xff]   ;;  %v700_v3 = vunpack.c.l.bf16 %v18_v0  ;;  %v543_v8 = vunpack.c.l.bf16 %v553_v6  ;;  %v544_v9 = vunpack.c.h.bf16 %v553_v6  ;;  %v547_v10 = vunpack.c.l.bf16 %v554_v7  ;;  %v555_v11 = vld [vmem:[%s841_s2 + $0x18] sm:$0xff]   ;;  %584 = vmatprep.mubr.msk.bf16.mxu0 %vm666_vm2, %v665_v41 }
   0x3   :  { %v539_v4 = vunpack.c.l.bf16 %v538_v2  ;;  %v540_v5 = vunpack.c.h.bf16 %v538_v2  ;;  %v548_v14 = vunpack.c.h.bf16 %v554_v7  ;;  %v551_v19 = vunpack.c.l.bf16 %v555_v11  ;;  %v92_v43 = vld [vmem:[%s842_s0] sm:$0xff]  ;;  %s667_s0 = smov 124  }
   0x4   :  { %v44_v12 = vmul.f32 %v700_v3, %v700_v3  ;;  %v54_v16 = vmul.f32 %v543_v8, %v543_v8  ;;  %v55_v17 = vmul.f32 %v544_v9, %v544_v9  ;;  %v56_v20 = vmul.f32 %v547_v10, %v547_v10 }
   0x5   :  { %v52_v13 = vmul.f32 %v539_v4, %v539_v4  ;;  %v53_v15 = vmul.f32 %v540_v5, %v540_v5  ;;  %v552_v25 = vunpack.c.h.bf16 %v555_v11  ;;  %v57_v26 = vmul.f32 %v548_v14, %v548_v14 }
   0x6   :  { %v46_v18 = vsel %vm45_vm0, %v44_v12, 0.0  ;;  %v64_v23 = vsel %vm60_vm1, %v54_v16, 0.0  ;;  %v66_v27 = vsel %vm60_vm1, %v55_v17, 0.0  ;;  %v58_v29 = vmul.f32 %v551_v19, %v551_v19 }
   0x7   :  { %47 = vadd.xlane.f32.xlu0 %v46_v18  ;;  %v61_v21 = vsel %vm60_vm1, %v52_v13, 0.0  ;;  %v62_v22 = vsel %vm60_vm1, %v53_v15, 0.0  ;;  %v68_v30 = vsel %vm60_vm1, %v56_v20, 0.0  ;;  %v59_v32 = vmul.f32 %v552_v25, %v552_v25 }
   0x8   :  { %v63_v24 = vadd.f32 %v62_v22, %v61_v21  ;;  %v70_v33 = vsel %vm60_vm1, %v57_v26, 0.0  ;;  %v72_v35 = vsel %vm60_vm1, %v58_v29, 0.0  ;;  %vm180_vm4 = vcmask 31744   ;;  %v649_v22 = vld [vmem:[%s843_s3 + $0x8] sm:$0xff]  }
   0x9   :  { %v74_v37 = vsel %vm60_vm1, %v59_v32, 0.0  ;;  %vm494_vm5 = vcmask 60416  }
   0xa   :  { %v65_v28 = vadd.f32 %v64_v23, %v63_v24  ;;  %v650_v23 = vld [vmem:[%s843_s3 + $0x10] sm:$0xff]  }
   0xc   :  { %v67_v31 = vadd.f32 %v66_v27, %v65_v28 }
   0xe   :  { %v69_v34 = vadd.f32 %v68_v30, %v67_v31 }
  0x10   :  { %v71_v36 = vadd.f32 %v70_v33, %v69_v34 }
  0x12   :  { %v73_v38 = vadd.f32 %v72_v35, %v71_v36 }
  0x14   :  { %v75_v39 = vadd.f32 %v74_v37, %v73_v38 }
  0x16   :  { %v76_v40 = vrot.slane %v75_v39, 4 }
  0x18   :  { %v77_v42 = vadd.f32 %v76_v40, %v75_v39 }
  0x1a   :  { %v78_v44 = vrot.slane %v77_v42, 2 }
  0x1c   :  { %v79_v45 = vadd.f32 %v78_v44, %v77_v42 }
  0x1d   :  { %95 = vperm.xlu0 %627, %v92_v43  }
  0x1e   :  { %v80_v46 = vrot.slane %v79_v45, 1 }
  0x20   :  { %v81_v47 = vadd.f32 %v80_v46, %v79_v45 }
  0x22   :  { %v82_v48 = vmax.f32 %v81_v47, 1e-24 }
  0x24   :  { %652 = vrsqrt.f32 %v82_v48 }
  0x2e   :  { %v653_v49 = vpop.eup %652 }
  0x2f   :  { %v84_v50 = vmul.f32 %v653_v49, %v539_v4  ;;  %v85_v51 = vmul.f32 %v653_v49, %v540_v5  ;;  %v86_v52 = vmul.f32 %v653_v49, %v543_v8  ;;  %v87_v53 = vmul.f32 %v653_v49, %v544_v9 }
  0x30   :  { %v88_v56 = vmul.f32 %v653_v49, %v547_v10  ;;  %v89_v57 = vmul.f32 %v653_v49, %v548_v14  ;;  %v90_v59 = vmul.f32 %v653_v49, %v551_v19  ;;  %v91_v60 = vmul.f32 %v653_v49, %v552_v25  ;;  %v651_v25 = vld [vmem:[%s843_s3 + $0x18] sm:$0xff]  }
  0x31   :  { %v100_v54 = vpack.c.bf16 %v85_v51, %v84_v50  ;;  %v101_v55 = vpack.c.bf16 %v87_v53, %v86_v52 }
  0x32   :  { %v102_v58 = vpack.c.bf16 %v89_v57, %v88_v56  ;;  %v103_v61 = vpack.c.bf16 %v91_v60, %v90_v59 }
  0x33   :  { %577 = vmatpush3.bf16.msra.mxu0 %v100_v54 }
  0x34   :  { %578 = vmatprep.subr.bf16.mxu0 %v665_v41 }
  0x37   :  { %579 = vmatpush3.bf16.msra.mxu0 %v101_v55 }
  0x38   :  { %580 = vmatprep.subr.bf16.mxu0 %v665_v41 }
  0x3b   :  { %581 = vmatpush3.bf16.msra.mxu0 %v102_v58 }
  0x3c   :  { %582 = vmatprep.subr.bf16.mxu0 %v665_v41 }
  0x3f   :  { %583 = vmatpush3.bf16.msra.mxu0 %v103_v61 }
  0x94   :  { %v48_v62 = vpop.xlane.xlu0 %47 }
  0x95   :  { %v49_v63 = vmax.f32 %v48_v62, 1e-24 }
  0x97   :  { %654 = vrsqrt.f32 %v49_v63 }
  0x9c   :  { %v96_v1 = vpop.permute.xlu0 %95 }
  0xa1   :  { %v655_v0 = vpop.eup %654 }
  0xa2   :  { %v51_v2 = vmul.f32 %v655_v0, %v700_v3  ;;  %v648_v3 = vld [vmem:[%s843_s3] sm:$0xff]   ;;  %s668_s3 = smov 4  }
  0xa3   :  { %590 = vmatprep.mubr.msk.bf16.mxu1 %vm180_vm4, %v648_v3 }
  0xa4   :  { %v98_v4 = vmul.f32 %v96_v1, %v51_v2 }
  0xa6   :  { %v99_v5 = vpack.c.bf16 %v98_v4, %v98_v4 }
  0xa8   :  { %585 = vmatmul.mubr.msk.bf16.vlgmr.msra.gmra.mrb[0].mxu0 %vm45_vm0, %v99_v5  ;;  %v262_v28 = vrot.slane %v99_v5, 2 }
 0x17b   :  { %v141_v6 = vpop.f32.mrb[0].mxu0 }
 0x17c   :  { %v586_v7 = vpop.f32.mrb[1].mxu0  ;;  %v148_v8 = vsel %vm147_vm3, %v141_v6, -inf }
 0x17d   :  { %149 = vmax.xlane.f32.xlu1 %v148_v8  ;;  %v144_v9 = vpop.f32.mrb[2].mxu0 }
 0x17e   :  { %v587_v10 = vpop.f32.mrb[3].mxu0 }
 0x20a   :  { %v150_v11 = vpop.xlane.xlu1 %149 }
 0x20b   :  { %v151_v12 = vsub.f32 %v141_v6, %v150_v11 }
 0x20d   :  { %v152_v13 = vmul.f32 1.442695, %v151_v12 }
 0x20f   :  { %656 = vpow2.f32 %v152_v13 }
 0x219   :  { %v657_v14 = vpop.eup %656 }
 0x21a   :  { %v154_v15 = vsel %vm147_vm3, %v657_v14, 0.0 }
 0x21b   :  { %155 = vadd.xlane.f32.xlu1 %v154_v15 }
 0x22c   :  { %267 = vrot.lane.b32.xlu1 %v100_v54, %s667_s0 }
 0x230   :  { %269 = vrot.lane.b32.xlu1 %v101_v55, %s667_s0 }
 0x234   :  { %271 = vrot.lane.b32.xlu1 %v102_v58, %s667_s0 }
 0x238   :  { %273 = vrot.lane.b32.xlu1 %v103_v61, %s667_s0 }
 0x2a8   :  { %v156_v16 = vpop.xlane.xlu1 %155 }
 0x2a9   :  { %658 = vrcp.f32 %v156_v16 }
 0x2ac   :  { %v268_v21 = vpop.permute.xlu1 %267 }
 0x2b0   :  { %v270_v24 = vpop.permute.xlu1 %269 }
 0x2b3   :  { %v659_v17 = vpop.eup %658 }
 0x2b4   :  { %v158_v18 = vmul.f32 %v659_v17, %v657_v14  ;;  %v272_v26 = vpop.permute.xlu1 %271 }
 0x2b6   :  { %v159_v19 = vpack.c.bf16 %v158_v18, %v158_v18 }
 0x2b8   :  { %620 = vmatprep.subr.msk.bf16.mxu1 %vm180_vm4, %v159_v19  ;;  %v194_v20 = vsel %vm180_vm4, %v159_v19, 0  ;;  %v274_v27 = vpop.permute.xlu1 %273 }
 0x2b9   :  { %589 = vmatpush3.bf16.xpose.msra.mxu1 %v194_v20 }
 0x2ba   :  { %598 = vmatprep.subr.bf16.mxu1 %v665_v41 }
 0x2c0   :  { %591 = vmatmul.mubr.msk.bf16.vlgmr.msra.gmra.mrb[0].mxu1 %vm180_vm4, %v649_v22 }
 0x2c1   :  { %599 = vmatpush3.bf16.msra.mxu1 %v268_v21  ;;  %594 = vmatprep.mubr.msk.bf16.mxu1 %vm180_vm4, %v650_v23 }
 0x2c2   :  { %600 = vmatprep.subr.bf16.mxu1 %v665_v41 }
 0x2c5   :  { %601 = vmatpush3.bf16.msra.mxu1 %v270_v24 }
 0x2c6   :  { %602 = vmatprep.subr.bf16.mxu1 %v665_v41 }
 0x2c8   :  { %595 = vmatmul.mubr.msk.bf16.gmra.mrb[4].mxu1 %vm180_vm4, %v651_v25 }
 0x2c9   :  { %603 = vmatpush3.bf16.msra.mxu1 %v272_v26  ;;  %606 = vmatprep.mubr.msk.bf16.mxu1 %vm666_vm2, %v665_v41 }
 0x2ca   :  { %604 = vmatprep.subr.bf16.mxu1 %v665_v41 }
 0x2cd   :  { %605 = vmatpush3.bf16.msra.mxu1 %v274_v27 }
 0x2d0   :  { %607 = vmatmul.mubr.msk.bf16.vlgmr.msra.gmra.mrb[8].mxu1 %vm45_vm0, %v262_v28 }
 0x393   :  { %v764_v29 = vpop.f32.mrb[0].mxu1 }
 0x394   :  { %v766_v30 = vpop.f32.mrb[1].mxu1 }
 0x395   :  { %v768_v31 = vpop.f32.mrb[2].mxu1 }
 0x396   :  { %v770_v32 = vpop.f32.mrb[3].mxu1 }
 0x39b   :  { %v772_v33 = vpop.f32.mrb[4].mxu1 }
 0x39c   :  { %v774_v34 = vpop.f32.mrb[5].mxu1 }
 0x39d   :  { %v776_v35 = vpop.f32.mrb[6].mxu1 }
 0x39e   :  { %v778_v36 = vpop.f32.mrb[7].mxu1 }
 0x3a3   :  { %v316_v37 = vpop.f32.mrb[8].mxu1 }
 0x3a4   :  { %v608_v38 = vpop.f32.mrb[9].mxu1  ;;  %v322_v39 = vsel %vm147_vm3, %v316_v37, -inf }
 0x3a5   :  { %323 = vmax.xlane.f32.xlu1 %v322_v39  ;;  %v319_v40 = vpop.f32.mrb[10].mxu1 }
 0x3a6   :  { %v609_v41 = vpop.f32.mrb[11].mxu1 }
 0x3b6   :  { %334 = vrot.lane.b32.xlu1 %v648_v3, %s667_s0 }
 0x3ba   :  { %338 = vrot.lane.b32.xlu1 %v650_v23, %s667_s0 }
 0x3be   :  { %340 = vrot.lane.b32.xlu1 %v651_v25, %s667_s0 }
 0x432   :  { %v324_v42 = vpop.xlane.xlu1 %323 }
 0x433   :  { %v325_v43 = vsub.f32 %v316_v37, %v324_v42 }
 0x435   :  { %v326_v44 = vmul.f32 1.442695, %v325_v43 }
 0x436   :  { %v335_v47 = vpop.permute.xlu1 %334 }
 0x437   :  { %660 = vpow2.f32 %v326_v44  ;;  %612 = vmatprep.mubr.msk.bf16.mxu0 %vm180_vm4, %v335_v47 }
 0x43a   :  { %v339_v54 = vpop.permute.xlu1 %338 }
 0x43e   :  { %v341_v55 = vpop.permute.xlu1 %340 }
 0x441   :  { %v661_v45 = vpop.eup %660 }
 0x442   :  { %v328_v46 = vsel %vm147_vm3, %v661_v45, 0.0 }
 0x443   :  { %329 = vadd.xlane.f32.xlu0 %v328_v46 }
 0x459   :  { %336 = vrot.lane.b32.xlu0 %v649_v22, %s667_s0 }
 0x4d0   :  { %v330_v48 = vpop.xlane.xlu0 %329 }
 0x4d1   :  { %662 = vrcp.f32 %v330_v48 }
 0x4d4   :  { %v337_v53 = vpop.permute.xlu0 %336 }
 0x4db   :  { %v663_v49 = vpop.eup %662 }
 0x4dc   :  { %v332_v50 = vmul.f32 %v663_v49, %v661_v45 }
 0x4de   :  { %v333_v51 = vpack.c.bf16 %v332_v50, %v332_v50 }
 0x4e0   :  { %621 = vmatprep.subr.msk.bf16.mxu0 %vm180_vm4, %v333_v51  ;;  %v355_v52 = vsel %vm180_vm4, %v333_v51, 0 }
 0x4e1   :  { %611 = vmatpush3.bf16.xpose.msra.mxu0 %v355_v52 }
 0x4e8   :  { %613 = vmatmul.mubr.msk.bf16.vlgmr.msra.gmra.mrb[4].mxu0 %vm180_vm4, %v337_v53 }
 0x4e9   :  { %616 = vmatprep.mubr.msk.bf16.mxu0 %vm180_vm4, %v339_v54 }
 0x4f0   :  { %617 = vmatmul.mubr.msk.bf16.gmra.mrb[8].mxu0 %vm180_vm4, %v341_v55 }
 0x5bb   :  { %v614_v56 = vpop.f32.mrb[4].mxu0 }
 0x5bc   :  { %v391_v57 = vpop.f32.mrb[5].mxu0 }
 0x5bd   :  { %v615_v58 = vpop.f32.mrb[6].mxu0 }
 0x5be   :  { %v628_v59 = vpack.i.bf16 %v615_v58, %v614_v56  ;;  %v394_v60 = vpop.f32.mrb[7].mxu0 }
 0x5bf   :  { %v633_v61 = vpack.i.bf16 %v394_v60, %v391_v57 }
 0x5c0   :  { %629 = vrot.lane.b32.xlu0 %v628_v59, %s668_s3 }
 0x5c1   :  { %634 = vrot.lane.b32.xlu1 %v633_v61, %s668_s3 }
 0x5c3   :  { %v618_v62 = vpop.f32.mrb[8].mxu0 }
 0x5c4   :  { %v407_v63 = vpop.f32.mrb[9].mxu0 }
 0x5c5   :  { %v619_v0 = vpop.f32.mrb[10].mxu0 }
 0x5c6   :  { %v643_v1 = vpack.i.bf16 %v619_v0, %v618_v62  ;;  %v410_v2 = vpop.f32.mrb[11].mxu0 }
 0x5c7   :  { %v638_v4 = vpack.i.bf16 %v410_v2, %v407_v63 }
 0x5c8   :  { %644 = vrot.lane.b32.xlu0 %v643_v1, %s668_s3 }
 0x5c9   :  { %639 = vrot.lane.b32.xlu1 %v638_v4, %s668_s3 }
 0x632   :  { %v630_v5 = vpop.permute.xlu0 %629 }
 0x633   :  { %v632_v6 = vunpack.i.h.bf16 %v630_v5  ;;  %v631_v7 = vunpack.i.l.bf16 %v630_v5  ;;  %v635_v8 = vpop.permute.xlu1 %634 }
 0x634   :  { %v637_v9 = vunpack.i.h.bf16 %v635_v8  ;;  %v636_v10 = vunpack.i.l.bf16 %v635_v8 }
 0x635   :  { %v457_v11 = vsel %vm180_vm4, %v768_v31, %v632_v6  ;;  %v456_v12 = vsel %vm180_vm4, %v764_v29, %v631_v7 }
 0x636   :  { %v532_v13 = vpack.c.bf16 %v457_v11, %v457_v11  ;;  %v531_v14 = vpack.c.bf16 %v456_v12, %v456_v12  ;;  %v455_v15 = vsel %vm180_vm4, %v770_v32, %v637_v9  ;;  %v454_v3 = vsel %vm180_vm4, %v766_v30, %v636_v10 }
 0x637   :  { %v530_v16 = vpack.c.bf16 %v455_v15, %v455_v15  ;;  %v529_v17 = vpack.c.bf16 %v454_v3, %v454_v3 }
 0x638   :  { %498 = vst.msk [vmem:[%s844_s4 + $0xc] sm:$0xf] %vm494_vm5, %v532_v13  ;;  %497 = vst.msk [vmem:[%s844_s4 + $0x8] sm:$0xf] %vm494_vm5, %v531_v14 }
 0x639   :  { %496 = vst.msk [vmem:[%s844_s4 + $0x4] sm:$0xf] %vm494_vm5, %v530_v16  ;;  %495 = vst.msk [vmem:[%s844_s4] sm:$0xf] %vm494_vm5, %v529_v17 }
 0x63a   :  { %v645_v18 = vpop.permute.xlu0 %644 }
 0x63b   :  { %v647_v19 = vunpack.i.h.bf16 %v645_v18  ;;  %v646_v20 = vunpack.i.l.bf16 %v645_v18  ;;  %v640_v21 = vpop.permute.xlu1 %639 }
 0x63c   :  { %v642_v22 = vunpack.i.h.bf16 %v640_v21  ;;  %v641_v23 = vunpack.i.l.bf16 %v640_v21 }
 0x63d   :  { %v461_v24 = vsel %vm180_vm4, %v776_v35, %v647_v19  ;;  %v460_v25 = vsel %vm180_vm4, %v772_v33, %v646_v20 }
 0x63e   :  { %v536_v26 = vpack.c.bf16 %v461_v24, %v461_v24  ;;  %v535_v27 = vpack.c.bf16 %v460_v25, %v460_v25  ;;  %v459_v28 = vsel %vm180_vm4, %v778_v36, %v642_v22  ;;  %v458_v29 = vsel %vm180_vm4, %v774_v34, %v641_v23 }
 0x63f   :  { %v534_v30 = vpack.c.bf16 %v459_v28, %v459_v28  ;;  %v533_v31 = vpack.c.bf16 %v458_v29, %v458_v29 }
 0x640   :  { %502 = vst.msk [vmem:[%s844_s4 + $0x1c] sm:$0xf] %vm494_vm5, %v536_v26  ;;  %501 = vst.msk [vmem:[%s844_s4 + $0x18] sm:$0xf] %vm494_vm5, %v535_v27 }
 0x641   :  { %500 = vst.msk [vmem:[%s844_s4 + $0x14] sm:$0xf] %vm494_vm5, %v534_v30  ;;  %499 = vst.msk [vmem:[%s844_s4 + $0x10] sm:$0xf] %vm494_vm5, %v533_v31 }

// kernel: patch_embed_apply.7
= control target key start
LH: loop header
LB: loop body
LE: loop exit
PB: predicated region body
PF: predicated region fallthrough
CT: control target
= control target key end

     0   :  { %vm344_vm0 = vcmask 1043456   ;;  %vm247_vm1 = vcmask 64512   ;;  %s1381_s1 = inlined_call_operand.vmem [shape: bf16[8,8], index: 1, kind: input, shape index: {}]   ;;  %s1382_s0 = inlined_call_operand.vmem [shape: bf16[512,8], index: 0, kind: input, shape index: {}]   ;;  %s1383_s2 = inlined_call_operand.vmem [shape: f32[1,8], index: 2, kind: input, shape index: {}]   ;;  %s1384_s3 = inlined_call_operand.vmem [shape: f32[512,8], index: 3, kind: output, shape index: {}]  }
   0x1   :  { %v79_v0 = vld [vmem:[%s1381_s1] sm:$0xf]  ;;  %v875_v4 = vld [vmem:[%s1382_s0 + $0x8] sm:$0xff]   ;;  %v877_v6 = vld [vmem:[%s1382_s0 + $0x10] sm:$0xff]  }
   0x2   :  { %871 = vmatprep.subr.msk.bf16.mxu0 %vm344_vm0, %v79_v0  ;;  %872 = vmatprep.subr.msk.bf16.mxu1 %vm344_vm0, %v79_v0  ;;  %v346_v1 = vsel %vm344_vm0, %v79_v0, 0  ;;  %v873_v2 = vld [vmem:[%s1382_s0] sm:$0xff]   ;;  %v876_v5 = vld [vmem:[%s1382_s0 + $0x88] sm:$0xff]   ;;  %v878_v7 = vld [vmem:[%s1382_s0 + $0x90] sm:$0xff]  }
   0x3   :  { %804 = vmatpush3.bf16.msra.mxu0 %v346_v1  ;;  %870 = vmatpush3.bf16.msra.mxu1 %v346_v1  ;;  %v874_v3 = vld [vmem:[%s1382_s0 + $0x80] sm:$0xff]   ;;  %v879_v8 = vld [vmem:[%s1382_s0 + $0x18] sm:$0xff]   ;;  %v883_v12 = vld [vmem:[%s1382_s0 + $0x28] sm:$0xff]  }
   0x4   :  { %805 = vmatprep.mubr.msk.bf16.mxu0 %vm247_vm1, %v873_v2  ;;  %837 = vmatprep.mubr.msk.bf16.mxu1 %vm247_vm1, %v874_v3  ;;  %v880_v9 = vld [vmem:[%s1382_s0 + $0x98] sm:$0xff]   ;;  %v881_v10 = vld [vmem:[%s1382_s0 + $0x20] sm:$0xff]   ;;  %v884_v13 = vld [vmem:[%s1382_s0 + $0xa8] sm:$0xff]  }
   0x5   :  { %v882_v11 = vld [vmem:[%s1382_s0 + $0xa0] sm:$0xff]   ;;  %v885_v14 = vld [vmem:[%s1382_s0 + $0x30] sm:$0xff]   ;;  %v887_v16 = vld [vmem:[%s1382_s0 + $0x38] sm:$0xff]  }
   0x6   :  { %806 = vmatmul.mubr.msk.bf16.vlgmr.msra.gmra.mrb[0].mxu0 %vm247_vm1, %v875_v4  ;;  %838 = vmatmul.mubr.msk.bf16.vlgmr.msra.gmra.mrb[0].mxu1 %vm247_vm1, %v876_v5  ;;  %v886_v15 = vld [vmem:[%s1382_s0 + $0xb0] sm:$0xff]   ;;  %v888_v17 = vld [vmem:[%s1382_s0 + $0xb8] sm:$0xff]   ;;  %v889_v18 = vld [vmem:[%s1382_s0 + $0x40] sm:$0xff]  }
   0x7   :  { %809 = vmatprep.mubr.msk.bf16.mxu0 %vm247_vm1, %v877_v6  ;;  %841 = vmatprep.mubr.msk.bf16.mxu1 %vm247_vm1, %v878_v7  ;;  %v890_v19 = vld [vmem:[%s1382_s0 + $0xc0] sm:$0xff]   ;;  %v891_v20 = vld [vmem:[%s1382_s0 + $0x48] sm:$0xff]   ;;  %v893_v22 = vld [vmem:[%s1382_s0 + $0x50] sm:$0xff]  }
   0x8   :  { %v892_v21 = vld [vmem:[%s1382_s0 + $0xc8] sm:$0xff]   ;;  %v894_v23 = vld [vmem:[%s1382_s0 + $0xd0] sm:$0xff]   ;;  %v895_v24 = vld [vmem:[%s1382_s0 + $0x58] sm:$0xff]  }
   0x9   :  { %v896_v25 = vld [vmem:[%s1382_s0 + $0xd8] sm:$0xff]   ;;  %v897_v26 = vld [vmem:[%s1382_s0 + $0x60] sm:$0xff]   ;;  %v899_v28 = vld [vmem:[%s1382_s0 + $0x68] sm:$0xff]  }
   0xa   :  { %v898_v27 = vld [vmem:[%s1382_s0 + $0xe0] sm:$0xff]   ;;  %v900_v29 = vld [vmem:[%s1382_s0 + $0xe8] sm:$0xff]   ;;  %v901_v30 = vld [vmem:[%s1382_s0 + $0x70] sm:$0xff]  }
   0xb   :  { %v902_v31 = vld [vmem:[%s1382_s0 + $0xf0] sm:$0xff]   ;;  %v903_v32 = vld [vmem:[%s1382_s0 + $0x78] sm:$0xff]   ;;  %v1059_v34 = vld [vmem:[%s1383_s2] ss:$0 sm:$0xff] }
   0xc   :  { %v904_v33 = vld [vmem:[%s1382_s0 + $0xf8] sm:$0xff]  }
   0xe   :  { %810 = vmatmul.mubr.msk.bf16.gmra.mrb[4].mxu0 %vm247_vm1, %v879_v8  ;;  %842 = vmatmul.mubr.msk.bf16.gmra.mrb[4].mxu1 %vm247_vm1, %v880_v9 }
   0xf   :  { %813 = vmatprep.mubr.msk.bf16.mxu0 %vm247_vm1, %v881_v10  ;;  %845 = vmatprep.mubr.msk.bf16.mxu1 %vm247_vm1, %v882_v11 }
  0x16   :  { %814 = vmatmul.mubr.msk.bf16.gmra.mrb[8].mxu0 %vm247_vm1, %v883_v12  ;;  %846 = vmatmul.mubr.msk.bf16.gmra.mrb[8].mxu1 %vm247_vm1, %v884_v13 }
  0x17   :  { %817 = vmatprep.mubr.msk.bf16.mxu0 %vm247_vm1, %v885_v14  ;;  %849 = vmatprep.mubr.msk.bf16.mxu1 %vm247_vm1, %v886_v15 }
  0x1e   :  { %818 = vmatmul.mubr.msk.bf16.gmra.mrb[12].mxu0 %vm247_vm1, %v887_v16  ;;  %850 = vmatmul.mubr.msk.bf16.gmra.mrb[12].mxu1 %vm247_vm1, %v888_v17 }
  0x1f   :  { %821 = vmatprep.mubr.msk.bf16.mxu0 %vm247_vm1, %v889_v18  ;;  %853 = vmatprep.mubr.msk.bf16.mxu1 %vm247_vm1, %v890_v19 }
  0x26   :  { %822 = vmatmul.mubr.msk.bf16.gmra.mrb[16].mxu0 %vm247_vm1, %v891_v20  ;;  %854 = vmatmul.mubr.msk.bf16.gmra.mrb[16].mxu1 %vm247_vm1, %v892_v21 }
  0x27   :  { %825 = vmatprep.mubr.msk.bf16.mxu0 %vm247_vm1, %v893_v22  ;;  %857 = vmatprep.mubr.msk.bf16.mxu1 %vm247_vm1, %v894_v23 }
  0x2e   :  { %826 = vmatmul.mubr.msk.bf16.gmra.mrb[20].mxu0 %vm247_vm1, %v895_v24  ;;  %858 = vmatmul.mubr.msk.bf16.gmra.mrb[20].mxu1 %vm247_vm1, %v896_v25 }
  0x2f   :  { %829 = vmatprep.mubr.msk.bf16.mxu0 %vm247_vm1, %v897_v26  ;;  %861 = vmatprep.mubr.msk.bf16.mxu1 %vm247_vm1, %v898_v27 }
  0x36   :  { %830 = vmatmul.mubr.msk.bf16.gmra.mrb[24].mxu0 %vm247_vm1, %v899_v28  ;;  %862 = vmatmul.mubr.msk.bf16.gmra.mrb[24].mxu1 %vm247_vm1, %v900_v29 }
  0x37   :  { %833 = vmatprep.mubr.msk.bf16.mxu0 %vm247_vm1, %v901_v30  ;;  %865 = vmatprep.mubr.msk.bf16.mxu1 %vm247_vm1, %v902_v31 }
  0x3e   :  { %834 = vmatmul.mubr.msk.bf16.gmra.mrb[28].mxu0 %vm247_vm1, %v903_v32  ;;  %866 = vmatmul.mubr.msk.bf16.gmra.mrb[28].mxu1 %vm247_vm1, %v904_v33 }
  0xd9   :  { %v807_v35 = vpop.f32.mrb[0].mxu0  ;;  %v839_v37 = vpop.f32.mrb[0].mxu1 }
  0xda   :  { %v391_v36 = vadd.f32 %v807_v35, %v1059_v34  ;;  %v382_v38 = vpop.f32.mrb[1].mxu0  ;;  %v519_v39 = vadd.f32 %v839_v37, %v1059_v34  ;;  %v510_v41 = vpop.f32.mrb[1].mxu1 }
  0xdb   :  { %v383_v40 = vadd.f32 %v1059_v34, %v382_v38  ;;  %v808_v42 = vpop.f32.mrb[2].mxu0  ;;  %v511_v43 = vadd.f32 %v1059_v34, %v510_v41  ;;  %v840_v45 = vpop.f32.mrb[2].mxu1 }
  0xdc   :  { %639 = vst.msk [vmem:[%s1384_s3 + $0x10] sm:$0xff] %vm247_vm1, %v391_v36  ;;  %v394_v44 = vadd.f32 %v808_v42, %v1059_v34  ;;  %v385_v46 = vpop.f32.mrb[3].mxu0  ;;  %671 = vst.msk [vmem:[%s1384_s3 + $0x110] sm:$0xff] %vm247_vm1, %v519_v39  ;;  %v522_v47 = vadd.f32 %v840_v45, %v1059_v34  ;;  %v513_v49 = vpop.f32.mrb[3].mxu1 }
  0xdd   :  { %637 = vst.msk [vmem:[%s1384_s3] sm:$0xff] %vm247_vm1, %v383_v40  ;;  %v386_v48 = vadd.f32 %v1059_v34, %v385_v46  ;;  %669 = vst.msk [vmem:[%s1384_s3 + $0x100] sm:$0xff] %vm247_vm1, %v511_v43  ;;  %v514_v50 = vadd.f32 %v1059_v34, %v513_v49 }
  0xde   :  { %640 = vst.msk [vmem:[%s1384_s3 + $0x18] sm:$0xff] %vm247_vm1, %v394_v44  ;;  %672 = vst.msk [vmem:[%s1384_s3 + $0x118] sm:$0xff] %vm247_vm1, %v522_v47 }
  0xdf   :  { %638 = vst.msk [vmem:[%s1384_s3 + $0x8] sm:$0xff] %vm247_vm1, %v386_v48  ;;  %670 = vst.msk [vmem:[%s1384_s3 + $0x108] sm:$0xff] %vm247_vm1, %v514_v50 }
  0xe1   :  { %v811_v51 = vpop.f32.mrb[4].mxu0  ;;  %v843_v53 = vpop.f32.mrb[4].mxu1 }
  0xe2   :  { %v407_v52 = vadd.f32 %v811_v51, %v1059_v34  ;;  %v398_v54 = vpop.f32.mrb[5].mxu0  ;;  %v535_v55 = vadd.f32 %v843_v53, %v1059_v34  ;;  %v526_v57 = vpop.f32.mrb[5].mxu1 }
  0xe3   :  { %v399_v56 = vadd.f32 %v1059_v34, %v398_v54  ;;  %v812_v58 = vpop.f32.mrb[6].mxu0  ;;  %v527_v59 = vadd.f32 %v1059_v34, %v526_v57  ;;  %v844_v61 = vpop.f32.mrb[6].mxu1 }
  0xe4   :  { %643 = vst.msk [vmem:[%s1384_s3 + $0x30] sm:$0xff] %vm247_vm1, %v407_v52  ;;  %v410_v60 = vadd.f32 %v812_v58, %v1059_v34  ;;  %v401_v62 = vpop.f32.mrb[7].mxu0  ;;  %675 = vst.msk [vmem:[%s1384_s3 + $0x130] sm:$0xff] %vm247_vm1, %v535_v55  ;;  %v538_v63 = vadd.f32 %v844_v61, %v1059_v34  ;;  %v529_v1 = vpop.f32.mrb[7].mxu1 }
  0xe5   :  { %641 = vst.msk [vmem:[%s1384_s3 + $0x20] sm:$0xff] %vm247_vm1, %v399_v56  ;;  %v402_v0 = vadd.f32 %v1059_v34, %v401_v62  ;;  %673 = vst.msk [vmem:[%s1384_s3 + $0x120] sm:$0xff] %vm247_vm1, %v527_v59  ;;  %v530_v2 = vadd.f32 %v1059_v34, %v529_v1 }
  0xe6   :  { %644 = vst.msk [vmem:[%s1384_s3 + $0x38] sm:$0xff] %vm247_vm1, %v410_v60  ;;  %676 = vst.msk [vmem:[%s1384_s3 + $0x138] sm:$0xff] %vm247_vm1, %v538_v63 }
  0xe7   :  { %642 = vst.msk [vmem:[%s1384_s3 + $0x28] sm:$0xff] %vm247_vm1, %v402_v0  ;;  %674 = vst.msk [vmem:[%s1384_s3 + $0x128] sm:$0xff] %vm247_vm1, %v530_v2 }
  0xe9   :  { %v815_v3 = vpop.f32.mrb[8].mxu0  ;;  %v847_v5 = vpop.f32.mrb[8].mxu1 }
  0xea   :  { %v423_v4 = vadd.f32 %v815_v3, %v1059_v34  ;;  %v414_v6 = vpop.f32.mrb[9].mxu0  ;;  %v551_v7 = vadd.f32 %v847_v5, %v1059_v34  ;;  %v542_v9 = vpop.f32.mrb[9].mxu1 }
  0xeb   :  { %v415_v8 = vadd.f32 %v1059_v34, %v414_v6  ;;  %v816_v10 = vpop.f32.mrb[10].mxu0  ;;  %v543_v11 = vadd.f32 %v1059_v34, %v542_v9  ;;  %v848_v13 = vpop.f32.mrb[10].mxu1 }
  0xec   :  { %647 = vst.msk [vmem:[%s1384_s3 + $0x50] sm:$0xff] %vm247_vm1, %v423_v4  ;;  %v426_v12 = vadd.f32 %v816_v10, %v1059_v34  ;;  %v417_v14 = vpop.f32.mrb[11].mxu0  ;;  %679 = vst.msk [vmem:[%s1384_s3 + $0x150] sm:$0xff] %vm247_vm1, %v551_v7  ;;  %v554_v15 = vadd.f32 %v848_v13, %v1059_v34  ;;  %v545_v17 = vpop.f32.mrb[11].mxu1 }
  0xed   :  { %645 = vst.msk [vmem:[%s1384_s3 + $0x40] sm:$0xff] %vm247_vm1, %v415_v8  ;;  %v418_v16 = vadd.f32 %v1059_v34, %v417_v14  ;;  %677 = vst.msk [vmem:[%s1384_s3 + $0x140] sm:$0xff] %vm247_vm1, %v543_v11  ;;  %v546_v18 = vadd.f32 %v1059_v34, %v545_v17 }
  0xee   :  { %648 = vst.msk [vmem:[%s1384_s3 + $0x58] sm:$0xff] %vm247_vm1, %v426_v12  ;;  %680 = vst.msk [vmem:[%s1384_s3 + $0x158] sm:$0xff] %vm247_vm1, %v554_v15 }
  0xef   :  { %646 = vst.msk [vmem:[%s1384_s3 + $0x48] sm:$0xff] %vm247_vm1, %v418_v16  ;;  %678 = vst.msk [vmem:[%s1384_s3 + $0x148] sm:$0xff] %vm247_vm1, %v546_v18 }
  0xf1   :  { %v819_v19 = vpop.f32.mrb[12].mxu0  ;;  %v851_v21 = vpop.f32.mrb[12].mxu1 }
  0xf2   :  { %v439_v20 = vadd.f32 %v819_v19, %v1059_v34  ;;  %v430_v22 = vpop.f32.mrb[13].mxu0  ;;  %v567_v23 = vadd.f32 %v851_v21, %v1059_v34  ;;  %v558_v25 = vpop.f32.mrb[13].mxu1 }
  0xf3   :  { %v431_v24 = vadd.f32 %v1059_v34, %v430_v22  ;;  %v820_v26 = vpop.f32.mrb[14].mxu0  ;;  %v559_v27 = vadd.f32 %v1059_v34, %v558_v25  ;;  %v852_v29 = vpop.f32.mrb[14].mxu1 }
  0xf4   :  { %651 = vst.msk [vmem:[%s1384_s3 + $0x70] sm:$0xff] %vm247_vm1, %v439_v20  ;;  %v442_v28 = vadd.f32 %v820_v26, %v1059_v34  ;;  %v433_v30 = vpop.f32.mrb[15].mxu0  ;;  %683 = vst.msk [vmem:[%s1384_s3 + $0x170] sm:$0xff] %vm247_vm1, %v567_v23  ;;  %v570_v31 = vadd.f32 %v852_v29, %v1059_v34  ;;  %v561_v33 = vpop.f32.mrb[15].mxu1 }
  0xf5   :  { %649 = vst.msk [vmem:[%s1384_s3 + $0x60] sm:$0xff] %vm247_vm1, %v431_v24  ;;  %v434_v32 = vadd.f32 %v1059_v34, %v433_v30  ;;  %681 = vst.msk [vmem:[%s1384_s3 + $0x160] sm:$0xff] %vm247_vm1, %v559_v27  ;;  %v562_v35 = vadd.f32 %v1059_v34, %v561_v33 }
  0xf6   :  { %652 = vst.msk [vmem:[%s1384_s3 + $0x78] sm:$0xff] %vm247_vm1, %v442_v28  ;;  %684 = vst.msk [vmem:[%s1384_s3 + $0x178] sm:$0xff] %vm247_vm1, %v570_v31 }
  0xf7   :  { %650 = vst.msk [vmem:[%s1384_s3 + $0x68] sm:$0xff] %vm247_vm1, %v434_v32  ;;  %682 = vst.msk [vmem:[%s1384_s3 + $0x168] sm:$0xff] %vm247_vm1, %v562_v35 }
  0xf9   :  { %v823_v36 = vpop.f32.mrb[16].mxu0  ;;  %v855_v38 = vpop.f32.mrb[16].mxu1 }
  0xfa   :  { %v455_v37 = vadd.f32 %v823_v36, %v1059_v34  ;;  %v446_v39 = vpop.f32.mrb[17].mxu0  ;;  %v583_v40 = vadd.f32 %v855_v38, %v1059_v34  ;;  %v574_v42 = vpop.f32.mrb[17].mxu1 }
  0xfb   :  { %v447_v41 = vadd.f32 %v1059_v34, %v446_v39  ;;  %v824_v43 = vpop.f32.mrb[18].mxu0  ;;  %v575_v44 = vadd.f32 %v1059_v34, %v574_v42  ;;  %v856_v46 = vpop.f32.mrb[18].mxu1 }
  0xfc   :  { %655 = vst.msk [vmem:[%s1384_s3 + $0x90] sm:$0xff] %vm247_vm1, %v455_v37  ;;  %v458_v45 = vadd.f32 %v824_v43, %v1059_v34  ;;  %v449_v47 = vpop.f32.mrb[19].mxu0  ;;  %687 = vst.msk [vmem:[%s1384_s3 + $0x190] sm:$0xff] %vm247_vm1, %v583_v40  ;;  %v586_v48 = vadd.f32 %v856_v46, %v1059_v34  ;;  %v577_v50 = vpop.f32.mrb[19].mxu1 }
  0xfd   :  { %653 = vst.msk [vmem:[%s1384_s3 + $0x80] sm:$0xff] %vm247_vm1, %v447_v41  ;;  %v450_v49 = vadd.f32 %v1059_v34, %v449_v47  ;;  %685 = vst.msk [vmem:[%s1384_s3 + $0x180] sm:$0xff] %vm247_vm1, %v575_v44  ;;  %v578_v51 = vadd.f32 %v1059_v34, %v577_v50 }
  0xfe   :  { %656 = vst.msk [vmem:[%s1384_s3 + $0x98] sm:$0xff] %vm247_vm1, %v458_v45  ;;  %688 = vst.msk [vmem:[%s1384_s3 + $0x198] sm:$0xff] %vm247_vm1, %v586_v48 }
  0xff   :  { %654 = vst.msk [vmem:[%s1384_s3 + $0x88] sm:$0xff] %vm247_vm1, %v450_v49  ;;  %686 = vst.msk [vmem:[%s1384_s3 + $0x188] sm:$0xff] %vm247_vm1, %v578_v51 }
 0x101   :  { %v827_v52 = vpop.f32.mrb[20].mxu0  ;;  %v859_v54 = vpop.f32.mrb[20].mxu1 }
 0x102   :  { %v471_v53 = vadd.f32 %v827_v52, %v1059_v34  ;;  %v462_v55 = vpop.f32.mrb[21].mxu0  ;;  %v599_v56 = vadd.f32 %v859_v54, %v1059_v34  ;;  %v590_v58 = vpop.f32.mrb[21].mxu1 }
 0x103   :  { %v463_v57 = vadd.f32 %v1059_v34, %v462_v55  ;;  %v828_v59 = vpop.f32.mrb[22].mxu0  ;;  %v591_v60 = vadd.f32 %v1059_v34, %v590_v58  ;;  %v860_v62 = vpop.f32.mrb[22].mxu1 }
 0x104   :  { %659 = vst.msk [vmem:[%s1384_s3 + $0xb0] sm:$0xff] %vm247_vm1, %v471_v53  ;;  %v474_v61 = vadd.f32 %v828_v59, %v1059_v34  ;;  %v465_v63 = vpop.f32.mrb[23].mxu0  ;;  %691 = vst.msk [vmem:[%s1384_s3 + $0x1b0] sm:$0xff] %vm247_vm1, %v599_v56  ;;  %v602_v0 = vadd.f32 %v860_v62, %v1059_v34  ;;  %v593_v2 = vpop.f32.mrb[23].mxu1 }
 0x105   :  { %657 = vst.msk [vmem:[%s1384_s3 + $0xa0] sm:$0xff] %vm247_vm1, %v463_v57  ;;  %v466_v1 = vadd.f32 %v1059_v34, %v465_v63  ;;  %689 = vst.msk [vmem:[%s1384_s3 + $0x1a0] sm:$0xff] %vm247_vm1, %v591_v60  ;;  %v594_v3 = vadd.f32 %v1059_v34, %v593_v2 }
 0x106   :  { %660 = vst.msk [vmem:[%s1384_s3 + $0xb8] sm:$0xff] %vm247_vm1, %v474_v61  ;;  %692 = vst.msk [vmem:[%s1384_s3 + $0x1b8] sm:$0xff] %vm247_vm1, %v602_v0 }
 0x107   :  { %658 = vst.msk [vmem:[%s1384_s3 + $0xa8] sm:$0xff] %vm247_vm1, %v466_v1  ;;  %690 = vst.msk [vmem:[%s1384_s3 + $0x1a8] sm:$0xff] %vm247_vm1, %v594_v3 }
 0x109   :  { %v831_v4 = vpop.f32.mrb[24].mxu0  ;;  %v863_v6 = vpop.f32.mrb[24].mxu1 }
 0x10a   :  { %v487_v5 = vadd.f32 %v831_v4, %v1059_v34  ;;  %v478_v7 = vpop.f32.mrb[25].mxu0  ;;  %v615_v8 = vadd.f32 %v863_v6, %v1059_v34  ;;  %v606_v10 = vpop.f32.mrb[25].mxu1 }
 0x10b   :  { %v479_v9 = vadd.f32 %v1059_v34, %v478_v7  ;;  %v832_v11 = vpop.f32.mrb[26].mxu0  ;;  %v607_v12 = vadd.f32 %v1059_v34, %v606_v10  ;;  %v864_v14 = vpop.f32.mrb[26].mxu1 }
 0x10c   :  { %663 = vst.msk [vmem:[%s1384_s3 + $0xd0] sm:$0xff] %vm247_vm1, %v487_v5  ;;  %v490_v13 = vadd.f32 %v832_v11, %v1059_v34  ;;  %v481_v15 = vpop.f32.mrb[27].mxu0  ;;  %695 = vst.msk [vmem:[%s1384_s3 + $0x1d0] sm:$0xff] %vm247_vm1, %v615_v8  ;;  %v618_v16 = vadd.f32 %v864_v14, %v1059_v34  ;;  %v609_v18 = vpop.f32.mrb[27].mxu1 }
 0x10d   :  { %661 = vst.msk [vmem:[%s1384_s3 + $0xc0] sm:$0xff] %vm247_vm1, %v479_v9  ;;  %v482_v17 = vadd.f32 %v1059_v34, %v481_v15  ;;  %693 = vst.msk [vmem:[%s1384_s3 + $0x1c0] sm:$0xff] %vm247_vm1, %v607_v12  ;;  %v610_v19 = vadd.f32 %v1059_v34, %v609_v18 }
 0x10e   :  { %664 = vst.msk [vmem:[%s1384_s3 + $0xd8] sm:$0xff] %vm247_vm1, %v490_v13  ;;  %696 = vst.msk [vmem:[%s1384_s3 + $0x1d8] sm:$0xff] %vm247_vm1, %v618_v16 }
 0x10f   :  { %662 = vst.msk [vmem:[%s1384_s3 + $0xc8] sm:$0xff] %vm247_vm1, %v482_v17  ;;  %694 = vst.msk [vmem:[%s1384_s3 + $0x1c8] sm:$0xff] %vm247_vm1, %v610_v19 }
 0x111   :  { %v835_v20 = vpop.f32.mrb[28].mxu0  ;;  %v867_v22 = vpop.f32.mrb[28].mxu1 }
 0x112   :  { %v503_v21 = vadd.f32 %v835_v20, %v1059_v34  ;;  %v494_v23 = vpop.f32.mrb[29].mxu0  ;;  %v631_v24 = vadd.f32 %v867_v22, %v1059_v34  ;;  %v622_v26 = vpop.f32.mrb[29].mxu1 }
 0x113   :  { %v495_v25 = vadd.f32 %v1059_v34, %v494_v23  ;;  %v836_v27 = vpop.f32.mrb[30].mxu0  ;;  %v623_v28 = vadd.f32 %v1059_v34, %v622_v26  ;;  %v868_v30 = vpop.f32.mrb[30].mxu1 }
 0x114   :  { %667 = vst.msk [vmem:[%s1384_s3 + $0xf0] sm:$0xff] %vm247_vm1, %v503_v21  ;;  %v506_v29 = vadd.f32 %v836_v27, %v1059_v34  ;;  %v497_v31 = vpop.f32.mrb[31].mxu0  ;;  %699 = vst.msk [vmem:[%s1384_s3 + $0x1f0] sm:$0xff] %vm247_vm1, %v631_v24  ;;  %v634_v32 = vadd.f32 %v868_v30, %v1059_v34  ;;  %v625_v35 = vpop.f32.mrb[31].mxu1 }
 0x115   :  { %665 = vst.msk [vmem:[%s1384_s3 + $0xe0] sm:$0xff] %vm247_vm1, %v495_v25  ;;  %v498_v33 = vadd.f32 %v1059_v34, %v497_v31  ;;  %697 = vst.msk [vmem:[%s1384_s3 + $0x1e0] sm:$0xff] %vm247_vm1, %v623_v28  ;;  %v626_v36 = vadd.f32 %v1059_v34, %v625_v35 }
 0x116   :  { %668 = vst.msk [vmem:[%s1384_s3 + $0xf8] sm:$0xff] %vm247_vm1, %v506_v29  ;;  %700 = vst.msk [vmem:[%s1384_s3 + $0x1f8] sm:$0xff] %vm247_vm1, %v634_v32 }
 0x117   :  { %666 = vst.msk [vmem:[%s1384_s3 + $0xe8] sm:$0xff] %vm247_vm1, %v498_v33  ;;  %698 = vst.msk [vmem:[%s1384_s3 + $0x1e8] sm:$0xff] %vm247_vm1, %v626_v36 }

// kernel: patch_embed_apply.6
= control target key start
LH: loop header
LB: loop body
LE: loop exit
PB: predicated region body
PF: predicated region fallthrough
CT: control target
= control target key end

     0   :  { %s1364_s9 = smov 0   ;;  %s1944_s0 = inlined_call_operand.vmem [shape: f32[2,18,18,8], index: 0, kind: input, shape index: {}]   ;;  %s1945_s1 = inlined_call_operand.vmem [shape: f32[9,8], index: 1, kind: input, shape index: {}]   ;;  %s1946_s2 = inlined_call_operand.vmem [shape: f32[2,16,16,8], index: 2, kind: output, shape index: {}]  }
   0x1 LB: > { %s1111_s10 = sadd.s32 4294967295, %s1347_s9   ;;  %p1115_p0 = scmp.ge.s32.totalorder %s1347_s9, 1  ;;  %s1347_s9 = sphi %s1364_s9, %s12_s9  }
   0x2   : > { %p112_p1 = scmp.lt.s32.totalorder %s1347_s9, 3 }
   0x4   : > { %p113_p2 = pnand %p1115_p0, %p112_p1 }
   0x5   : > { %p134_p3 = scmp.lt.s32.totalorder (!%p113_p2), %s1111_s10, 1  ;;  %v1378_v0 = vld [vmem:[%s1945_s1] ss:$0 sm:$0xff] (!%p113_p2)  ;;  %v1383_v1 = vld [vmem:[%s1945_s1 + $0x1] ss:$0 sm:$0xff] (!%p113_p2)  ;;  %vm1023_vm0 = vcmask (!%p113_p2), 64512  }
   0x6   : > { %116 = sbr.rel (%p113_p2) target bundleno = 164 (0xa4), region = 28  ;;  %v1388_v2 = vld [vmem:[%s1945_s1 + $0x2] ss:$0 sm:$0xff] (!%p113_p2)  ;;  %v1398_v3 = vld [vmem:[%s1945_s1 + $0x3] ss:$0 sm:$0xff] (!%p113_p2) }
   0x7   : > { %v1403_v4 = vld [vmem:[%s1945_s1 + $0x4] ss:$0 sm:$0xff] (!%p113_p2)  ;;  %v1416_v13 = vld [vmem:[%s1945_s1 + $0x5] ss:$0 sm:$0xff] (!%p113_p2)  ;;  %v1421_v14 = vld [vmem:[%s1945_s1 + $0x6] ss:$0 sm:$0xff] (!%p113_p2) }
   0x8   : > { %v1426_v15 = vld [vmem:[%s1945_s1 + $0x7] ss:$0 sm:$0xff] (!%p113_p2)  ;;  %v1431_v16 = vld [vmem:[%s1945_s1 + $0x8] ss:$0 sm:$0xff] (!%p113_p2) }
   0xd   : > { %s1948_s10 = smov (!%p134_p3, %s1111_s10), 1 }
   0xe   : > { %s1323_s11 = smul.u32 432, %s1948_s10  ;;  %s1322_s5 = sshll.u32 %s1948_s10, 8 }
   0xf   : > { %s1489_s8 = scalar_lea.vmem %s1946_s2, %s1322_s5 }
  0x10   : > { %s1393_s20 = scalar_lea.vmem %s1944_s0, %s1323_s11 }
  0x11   : > { %v144_v5 = vld [vmem:[%s1393_s20] sm:$0xff]  ;;  %v1122_v11 = vld [vmem:[%s1393_s20 + $0x18] sm:$0xff]  ;;  %v145_v20 = vld [vmem:[%s1393_s20 + $0x8] sm:$0xff] }
  0x12   : > { %v213_v6 = vld [vmem:[%s1393_s20 + $0x1] sm:$0xff]  ;;  %v181_v8 = vmul.f32 %v1378_v0, %v144_v5  ;;  %v1155_v12 = vld [vmem:[%s1393_s20 + $0x19] sm:$0xff]  ;;  %v453_v18 = vmul.f32 %v1398_v3, %v1122_v11  ;;  %v214_v21 = vld [vmem:[%s1393_s20 + $0x9] sm:$0xff]  ;;  %v183_v23 = vmul.f32 %v1122_v11, %v1378_v0  ;;  %v182_v27 = vmul.f32 %v1378_v0, %v145_v20 }
  0x13   : > { %v314_v7 = vld [vmem:[%s1393_s20 + $0x2] sm:$0xff]  ;;  %v250_v9 = vmul.f32 %v1383_v1, %v213_v6  ;;  %v554_v19 = vmul.f32 %v1403_v4, %v1155_v12  ;;  %v315_v22 = vld [vmem:[%s1393_s20 + $0xa] sm:$0xff]  ;;  %v1188_v24 = vld [vmem:[%s1393_s20 + $0x1a] sm:$0xff]  ;;  %v251_v28 = vmul.f32 %v1383_v1, %v214_v21  ;;  %v252_v30 = vmul.f32 %v1155_v12, %v1383_v1 }
  0x14   : > { %v351_v10 = vmul.f32 %v1388_v2, %v314_v7  ;;  %v1221_v25 = vld [vmem:[%s1393_s20 + $0x30] sm:$0xff]  ;;  %v352_v29 = vmul.f32 %v1388_v2, %v315_v22  ;;  %v655_v32 = vmul.f32 %v1416_v13, %v1188_v24  ;;  %v1123_v36 = vld [vmem:[%s1393_s20 + $0x20] sm:$0xff]  ;;  %v1222_v44 = vld [vmem:[%s1393_s20 + $0x38] sm:$0xff]  ;;  %v353_v47 = vmul.f32 %v1188_v24, %v1388_v2 }
  0x15   : > { %v282_v17 = vadd.f32 %v250_v9, %v181_v8  ;;  %v1254_v26 = vld [vmem:[%s1393_s20 + $0x31] sm:$0xff]  ;;  %v757_v33 = vmul.f32 %v1421_v14, %v1221_v25  ;;  %v1156_v37 = vld [vmem:[%s1393_s20 + $0x21] sm:$0xff]  ;;  %v283_v39 = vadd.f32 %v251_v28, %v182_v27  ;;  %v454_v40 = vmul.f32 %v1398_v3, %v1123_v36  ;;  %v1255_v45 = vld [vmem:[%s1393_s20 + $0x39] sm:$0xff] }
  0x16   : > { %v858_v34 = vmul.f32 %v1426_v15, %v1254_v26  ;;  %v1287_v35 = vld [vmem:[%s1393_s20 + $0x32] sm:$0xff]  ;;  %v555_v41 = vmul.f32 %v1403_v4, %v1156_v37  ;;  %v1189_v43 = vld [vmem:[%s1393_s20 + $0x22] sm:$0xff]  ;;  %v284_v46 = vadd.f32 %v252_v30, %v183_v23  ;;  %v455_v48 = vmul.f32 %v1221_v25, %v1398_v3  ;;  %v1288_v53 = vld [vmem:[%s1393_s20 + $0x3a] sm:$0xff] }
  0x17   : > { %v383_v31 = vadd.f32 %v351_v10, %v282_v17  ;;  %v959_v38 = vmul.f32 %v1431_v16, %v1287_v35  ;;  %v384_v49 = vadd.f32 %v352_v29, %v283_v39  ;;  %v656_v50 = vmul.f32 %v1416_v13, %v1189_v43  ;;  %v1467_v59 = vld [vmem:[%s1393_s20 + $0x48] sm:$0xff] }
  0x18   : > { %v758_v51 = vmul.f32 %v1421_v14, %v1222_v44  ;;  %v859_v52 = vmul.f32 %v1426_v15, %v1255_v45  ;;  %v960_v55 = vmul.f32 %v1431_v16, %v1288_v53  ;;  %v385_v56 = vadd.f32 %v353_v47, %v284_v46  ;;  %v1256_v8 = vld [vmem:[%s1393_s20 + $0x49] sm:$0xff] }
  0x19   : > { %v485_v42 = vadd.f32 %v453_v18, %v383_v31  ;;  %v556_v57 = vmul.f32 %v1254_v26, %v1403_v4  ;;  %v486_v58 = vadd.f32 %v454_v40, %v384_v49  ;;  %v184_v60 = vmul.f32 %v1123_v36, %v1378_v0  ;;  %v1289_v11 = vld [vmem:[%s1393_s20 + $0x4a] sm:$0xff] }
  0x1a   : > { %v253_v61 = vmul.f32 %v1156_v37, %v1383_v1  ;;  %v354_v62 = vmul.f32 %v1189_v43, %v1388_v2  ;;  %v487_v5 = vadd.f32 %v455_v48, %v385_v56  ;;  %v657_v6 = vmul.f32 %v1287_v35, %v1416_v13  ;;  %v1224_v36 = vld [vmem:[%s1393_s20 + $0x50] sm:$0xff] }
  0x1b   : > { %v586_v54 = vadd.f32 %v554_v19, %v485_v42  ;;  %v759_v7 = vmul.f32 %v1421_v14, %v1467_v59  ;;  %v587_v9 = vadd.f32 %v555_v41, %v486_v58  ;;  %v860_v10 = vmul.f32 %v1426_v15, %v1256_v8  ;;  %v1257_v37 = vld [vmem:[%s1393_s20 + $0x51] sm:$0xff]  ;;  %v1225_v58 = vld [vmem:[%s1393_s20 + $0x60] sm:$0xff] }
  0x1c   : > { %v285_v12 = vadd.f32 %v253_v61, %v184_v60  ;;  %v456_v17 = vmul.f32 %v1222_v44, %v1398_v3  ;;  %v588_v19 = vadd.f32 %v556_v57, %v487_v5  ;;  %v961_v20 = vmul.f32 %v1431_v16, %v1289_v11  ;;  %v1290_v57 = vld [vmem:[%s1393_s20 + $0x52] sm:$0xff] }
  0x1d   : > { %v687_v63 = vadd.f32 %v655_v32, %v586_v54  ;;  %v557_v21 = vmul.f32 %v1255_v45, %v1403_v4  ;;  %v688_v22 = vadd.f32 %v656_v50, %v587_v9  ;;  %v185_v24 = vmul.f32 %v1221_v25, %v1378_v0 }
  0x1e   : > { %v386_v23 = vadd.f32 %v354_v62, %v285_v12  ;;  %v254_v27 = vmul.f32 %v1254_v26, %v1383_v1  ;;  %v689_v29 = vadd.f32 %v657_v6, %v588_v19  ;;  %v658_v30 = vmul.f32 %v1288_v53, %v1416_v13  ;;  %v1291_v12 = vld [vmem:[%s1393_s20 + $0x62] sm:$0xff] }
  0x1f   : > { %v789_v18 = vadd.f32 %v757_v33, %v687_v63  ;;  %v355_v31 = vmul.f32 %v1287_v35, %v1388_v2  ;;  %v790_v32 = vadd.f32 %v758_v51, %v688_v22  ;;  %v457_v25 = vmul.f32 %v1467_v59, %v1398_v3 }
  0x20   : > { %v488_v33 = vadd.f32 %v456_v17, %v386_v23  ;;  %v286_v39 = vadd.f32 %v254_v27, %v185_v24  ;;  %v760_v40 = vmul.f32 %v1421_v14, %v1224_v36  ;;  %v861_v35 = vmul.f32 %v1426_v15, %v1257_v37  ;;  %v1226_v24 = vld [vmem:[%s1393_s20 + $0x68] sm:$0xff] }
  0x21   : > { %v890_v28 = vadd.f32 %v858_v34, %v789_v18  ;;  %v791_v34 = vadd.f32 %v759_v7, %v689_v29  ;;  %v891_v41 = vadd.f32 %v859_v52, %v790_v32  ;;  %v558_v46 = vmul.f32 %v1256_v8, %v1403_v4  ;;  %v1292_v32 = vld [vmem:[%s1393_s20 + $0x6a] sm:$0xff] }
  0x22   : > { %v589_v42 = vadd.f32 %v557_v21, %v488_v33  ;;  %v387_v43 = vadd.f32 %v355_v31, %v286_v39  ;;  %v659_v48 = vmul.f32 %v1289_v11, %v1416_v13  ;;  %v255_v49 = vmul.f32 %v1255_v45, %v1383_v1  ;;  %v1259_v31 = vld [vmem:[%s1393_s20 + $0x69] sm:$0xff] }
  0x23   : > { %v991_v26 = vadd.f32 %v959_v38, %v890_v28  ;;  %v892_v47 = vadd.f32 %v860_v10, %v791_v34  ;;  %v186_v38 = vmul.f32 %v1222_v44, %v1378_v0  ;;  %v992_v50 = vadd.f32 %v960_v55, %v891_v41  ;;  %v1258_v55 = vld [vmem:[%s1393_s20 + $0x61] sm:$0xff] }
  0x24   : > { %v690_v51 = vadd.f32 %v658_v30, %v589_v42  ;;  %v489_v54 = vadd.f32 %v457_v25, %v387_v43  ;;  %v356_v52 = vmul.f32 %v1288_v53, %v1388_v2  ;;  %v458_v61 = vmul.f32 %v1224_v36, %v1398_v3  ;;  %v1227_v42 = vld [vmem:[%s1393_s20 + $0x78] sm:$0xff] }
  0x25   : > { %1024 = vst.msk [vmem:[%s1489_s8] sm:$0xff] %vm1023_vm0, %v991_v26  ;;  %v993_v56 = vadd.f32 %v961_v20, %v892_v47  ;;  %v287_v60 = vadd.f32 %v255_v49, %v186_v38  ;;  %1025 = vst.msk [vmem:[%s1489_s8 + $0x8] sm:$0xff] %vm1023_vm0, %v992_v50  ;;  %v962_v44 = vmul.f32 %v1431_v16, %v1290_v57  ;;  %v1260_v50 = vld [vmem:[%s1393_s20 + $0x79] sm:$0xff] }
  0x26   : > { %v792_v62 = vadd.f32 %v760_v40, %v690_v51  ;;  %v590_v63 = vadd.f32 %v558_v46, %v489_v54  ;;  %v761_v45 = vmul.f32 %v1421_v14, %v1225_v58  ;;  %v862_v53 = vmul.f32 %v1426_v15, %v1258_v55  ;;  %v1293_v51 = vld [vmem:[%s1393_s20 + $0x7a] sm:$0xff] }
  0x27   : > { %1026 = vst.msk [vmem:[%s1489_s8 + $0x10] sm:$0xff] %vm1023_vm0, %v993_v56  ;;  %v388_v5 = vadd.f32 %v356_v52, %v287_v60  ;;  %v559_v6 = vmul.f32 %v1257_v37, %v1403_v4  ;;  %v187_v7 = vmul.f32 %v1467_v59, %v1378_v0  ;;  %v256_v17 = vmul.f32 %v1256_v8, %v1383_v1 }
  0x28   : > { %v893_v9 = vadd.f32 %v861_v35, %v792_v62  ;;  %v691_v10 = vadd.f32 %v659_v48, %v590_v63  ;;  %v357_v18 = vmul.f32 %v1289_v11, %v1388_v2  ;;  %v963_v19 = vmul.f32 %v1431_v16, %v1291_v12  ;;  %v1228_v63 = vld [vmem:[%s1393_s20 + $0x80] sm:$0xff] }
  0x29   : > { %v490_v20 = vadd.f32 %v458_v61, %v388_v5  ;;  %v660_v21 = vmul.f32 %v1290_v57, %v1416_v13  ;;  %v288_v27 = vadd.f32 %v256_v17, %v187_v7  ;;  %v459_v59 = vmul.f32 %v1225_v58, %v1398_v3 }
  0x2a   : > { %v994_v22 = vadd.f32 %v962_v44, %v893_v9  ;;  %v793_v23 = vadd.f32 %v761_v45, %v691_v10  ;;  %v762_v29 = vmul.f32 %v1421_v14, %v1226_v24  ;;  %v560_v8 = vmul.f32 %v1258_v55, %v1403_v4 }
  0x2b   : > { %v591_v28 = vadd.f32 %v559_v6, %v490_v20  ;;  %v188_v11 = vmul.f32 %v1224_v36, %v1378_v0  ;;  %v389_v33 = vadd.f32 %v357_v18, %v288_v27  ;;  %v257_v39 = vmul.f32 %v1257_v37, %v1383_v1  ;;  %v1294_v27 = vld [vmem:[%s1393_s20 + $0x82] sm:$0xff] }
  0x2c   : > { %1027 = vst.msk [vmem:[%s1489_s8 + $0x18] sm:$0xff] %vm1023_vm0, %v994_v22  ;;  %v894_v30 = vadd.f32 %v862_v53, %v793_v23  ;;  %v358_v25 = vmul.f32 %v1290_v57, %v1388_v2  ;;  %v863_v34 = vmul.f32 %v1426_v15, %v1259_v31  ;;  %v964_v40 = vmul.f32 %v1431_v16, %v1292_v32 }
  0x2d   : > { %v692_v26 = vadd.f32 %v660_v21, %v591_v28  ;;  %v661_v36 = vmul.f32 %v1291_v12, %v1416_v13  ;;  %v491_v41 = vadd.f32 %v459_v59, %v389_v33  ;;  %v289_v43 = vadd.f32 %v257_v39, %v188_v11  ;;  %v1229_v28 = vld [vmem:[%s1393_s20 + $0x90] sm:$0xff] }
  0x2e   : > { %v995_v35 = vadd.f32 %v963_v19, %v894_v30  ;;  %v460_v46 = vmul.f32 %v1226_v24, %v1398_v3  ;;  %v763_v37 = vmul.f32 %v1421_v14, %v1227_v42  ;;  %v561_v48 = vmul.f32 %v1259_v31, %v1403_v4 }
  0x2f   : > { %v794_v47 = vadd.f32 %v762_v29, %v692_v26  ;;  %v189_v38 = vmul.f32 %v1225_v58, %v1378_v0  ;;  %v592_v49 = vadd.f32 %v560_v8, %v491_v41  ;;  %v390_v54 = vadd.f32 %v358_v25, %v289_v43  ;;  %v1262_v25 = vld [vmem:[%s1393_s20 + $0x91] sm:$0xff] }
  0x30   : > { %1028 = vst.msk [vmem:[%s1489_s8 + $0x20] sm:$0xff] %vm1023_vm0, %v995_v35  ;;  %v258_v52 = vmul.f32 %v1258_v55, %v1383_v1  ;;  %v359_v56 = vmul.f32 %v1291_v12, %v1388_v2  ;;  %v864_v60 = vmul.f32 %v1426_v15, %v1260_v50  ;;  %v965_v61 = vmul.f32 %v1431_v16, %v1293_v51  ;;  %v1261_v12 = vld [vmem:[%s1393_s20 + $0x81] sm:$0xff]  ;;  %v1295_v26 = vld [vmem:[%s1393_s20 + $0x92] sm:$0xff] }
  0x31   : > { %v895_v57 = vadd.f32 %v863_v34, %v794_v47  ;;  %v662_v62 = vmul.f32 %v1292_v32, %v1416_v13  ;;  %v693_v58 = vadd.f32 %v661_v36, %v592_v49  ;;  %v492_v44 = vadd.f32 %v460_v46, %v390_v54 }
  0x32   : > { %v290_v45 = vadd.f32 %v258_v52, %v189_v38  ;;  %v461_v53 = vmul.f32 %v1227_v42, %v1398_v3  ;;  %v764_v55 = vmul.f32 %v1421_v14, %v1228_v63  ;;  %v562_v6 = vmul.f32 %v1260_v50, %v1403_v4 }
  0x33   : > { %v996_v5 = vadd.f32 %v964_v40, %v895_v57  ;;  %v190_v7 = vmul.f32 %v1226_v24, %v1378_v0  ;;  %v795_v9 = vadd.f32 %v763_v37, %v693_v58  ;;  %v593_v10 = vadd.f32 %v561_v48, %v492_v44  ;;  %v1230_v37 = vld [vmem:[%s1393_s20 + $0x98] sm:$0xff] }
  0x34   : > { %v391_v17 = vadd.f32 %v359_v56, %v290_v45  ;;  %v259_v18 = vmul.f32 %v1259_v31, %v1383_v1  ;;  %v865_v19 = vmul.f32 %v1426_v15, %v1261_v12  ;;  %v663_v20 = vmul.f32 %v1293_v51, %v1416_v13  ;;  %v1263_v48 = vld [vmem:[%s1393_s20 + $0x99] sm:$0xff] }
  0x35   : > { %1029 = vst.msk [vmem:[%s1489_s8 + $0x28] sm:$0xff] %vm1023_vm0, %v996_v5  ;;  %v360_v21 = vmul.f32 %v1292_v32, %v1388_v2  ;;  %v462_v22 = vmul.f32 %v1228_v63, %v1398_v3  ;;  %v896_v23 = vadd.f32 %v864_v60, %v795_v9  ;;  %v694_v24 = vadd.f32 %v662_v62, %v593_v10  ;;  %v1296_v60 = vld [vmem:[%s1393_s20 + $0x9a] sm:$0xff] }
  0x36   : > { %v493_v59 = vadd.f32 %v461_v53, %v391_v17  ;;  %v291_v29 = vadd.f32 %v259_v18, %v190_v7  ;;  %v966_v8 = vmul.f32 %v1431_v16, %v1294_v27  ;;  %v765_v11 = vmul.f32 %v1421_v14, %v1229_v28 }
  0x37   : > { %v563_v30 = vmul.f32 %v1261_v12, %v1403_v4  ;;  %v191_v31 = vmul.f32 %v1227_v42, %v1378_v0  ;;  %v997_v32 = vadd.f32 %v965_v61, %v896_v23  ;;  %v796_v33 = vadd.f32 %v764_v55, %v694_v24 }
  0x38   : > { %v594_v39 = vadd.f32 %v562_v6, %v493_v59  ;;  %v392_v34 = vadd.f32 %v360_v21, %v291_v29  ;;  %v866_v40 = vmul.f32 %v1426_v15, %v1262_v25  ;;  %v967_v36 = vmul.f32 %v1431_v16, %v1295_v26  ;;  %v1264_v21 = vld [vmem:[%s1393_s20 + $0xa9] sm:$0xff] }
  0x39   : > { %v260_v35 = vmul.f32 %v1260_v50, %v1383_v1  ;;  %v361_v41 = vmul.f32 %v1293_v51, %v1388_v2  ;;  %1030 = vst.msk [vmem:[%s1489_s8 + $0x30] sm:$0xff] %vm1023_vm0, %v997_v32  ;;  %v897_v42 = vadd.f32 %v865_v19, %v796_v33  ;;  %v664_v47 = vmul.f32 %v1294_v27, %v1416_v13 }
  0x3a   : > { %v695_v43 = vadd.f32 %v663_v20, %v594_v39  ;;  %v494_v46 = vadd.f32 %v462_v22, %v392_v34  ;;  %v766_v38 = vmul.f32 %v1421_v14, %v1230_v37  ;;  %v867_v49 = vmul.f32 %v1426_v15, %v1263_v48  ;;  %v1297_v22 = vld [vmem:[%s1393_s20 + $0xaa] sm:$0xff] }
  0x3b   : > { %v292_v54 = vadd.f32 %v260_v35, %v191_v31  ;;  %v463_v50 = vmul.f32 %v1229_v28, %v1398_v3  ;;  %v998_v51 = vadd.f32 %v966_v8, %v897_v42  ;;  %v192_v57 = vmul.f32 %v1228_v63, %v1378_v0  ;;  %v1231_v63 = vld [vmem:[%s1393_s20 + $0xa8] sm:$0xff]  ;;  %v1232_v31 = vld [vmem:[%s1393_s20 + $0xb0] sm:$0xff] }
  0x3c   : > { %v797_v52 = vadd.f32 %v765_v11, %v695_v43  ;;  %v595_v56 = vadd.f32 %v563_v30, %v494_v46  ;;  %v564_v62 = vmul.f32 %v1262_v25, %v1403_v4  ;;  %v261_v58 = vmul.f32 %v1261_v12, %v1383_v1  ;;  %v1265_v35 = vld [vmem:[%s1393_s20 + $0xb1] sm:$0xff] }
  0x3d   : > { %v393_v61 = vadd.f32 %v361_v41, %v292_v54  ;;  %v362_v44 = vmul.f32 %v1294_v27, %v1388_v2  ;;  %1031 = vst.msk [vmem:[%s1489_s8 + $0x38] sm:$0xff] %vm1023_vm0, %v998_v51  ;;  %v968_v5 = vmul.f32 %v1431_v16, %v1296_v60  ;;  %v665_v55 = vmul.f32 %v1295_v26, %v1416_v13  ;;  %v1298_v54 = vld [vmem:[%s1393_s20 + $0xb2] sm:$0xff]  ;;  %v1233_v51 = vld [vmem:[%s1393_s20 + $0xc0] sm:$0xff] }
  0x3e   : > { %v898_v45 = vadd.f32 %v866_v40, %v797_v52  ;;  %v696_v53 = vadd.f32 %v664_v47, %v595_v56  ;;  %v767_v7 = vmul.f32 %v1421_v14, %v1231_v63  ;;  %v293_v9 = vadd.f32 %v261_v58, %v192_v57 }
  0x3f   : > { %v495_v6 = vadd.f32 %v463_v50, %v393_v61  ;;  %v464_v10 = vmul.f32 %v1230_v37, %v1398_v3  ;;  %v565_v18 = vmul.f32 %v1263_v48, %v1403_v4  ;;  %v193_v19 = vmul.f32 %v1229_v28, %v1378_v0 }
  0x40   : > { %v999_v12 = vadd.f32 %v967_v36, %v898_v45  ;;  %v798_v17 = vadd.f32 %v766_v38, %v696_v53  ;;  %v394_v23 = vadd.f32 %v362_v44, %v293_v9  ;;  %v262_v24 = vmul.f32 %v1262_v25, %v1383_v1  ;;  %v1266_v44 = vld [vmem:[%s1393_s20 + $0xc1] sm:$0xff] }
  0x41   : > { %v596_v20 = vadd.f32 %v564_v62, %v495_v6  ;;  %v363_v27 = vmul.f32 %v1295_v26, %v1388_v2  ;;  %v868_v29 = vmul.f32 %v1426_v15, %v1264_v21  ;;  %v969_v8 = vmul.f32 %v1431_v16, %v1297_v22  ;;  %v1299_v45 = vld [vmem:[%s1393_s20 + $0xc2] sm:$0xff] }
  0x42   : > { %1032 = vst.msk [vmem:[%s1489_s8 + $0x40] sm:$0xff] %vm1023_vm0, %v999_v12  ;;  %v899_v59 = vadd.f32 %v867_v49, %v798_v17  ;;  %v666_v11 = vmul.f32 %v1296_v60, %v1416_v13  ;;  %v496_v30 = vadd.f32 %v464_v10, %v394_v23  ;;  %v294_v32 = vadd.f32 %v262_v24, %v193_v19  ;;  %v1234_v17 = vld [vmem:[%s1393_s20 + $0xc8] sm:$0xff] }
  0x43   : > { %v697_v28 = vadd.f32 %v665_v55, %v596_v20  ;;  %v465_v33 = vmul.f32 %v1231_v63, %v1398_v3  ;;  %v768_v25 = vmul.f32 %v1421_v14, %v1232_v31  ;;  %v566_v26 = vmul.f32 %v1264_v21, %v1403_v4 }
  0x44   : > { %v1000_v39 = vadd.f32 %v968_v5, %v899_v59  ;;  %v194_v34 = vmul.f32 %v1230_v37, %v1378_v0  ;;  %v597_v36 = vadd.f32 %v565_v18, %v496_v30  ;;  %v395_v41 = vadd.f32 %v363_v27, %v294_v32  ;;  %v1267_v18 = vld [vmem:[%s1393_s20 + $0xc9] sm:$0xff] }
  0x45   : > { %v799_v40 = vadd.f32 %v767_v7, %v697_v28  ;;  %v263_v42 = vmul.f32 %v1263_v48, %v1383_v1  ;;  %v869_v43 = vmul.f32 %v1426_v15, %v1265_v35  ;;  %v667_v46 = vmul.f32 %v1297_v22, %v1416_v13 }
  0x46   : > { %1033 = vst.msk [vmem:[%s1489_s8 + $0x48] sm:$0xff] %vm1023_vm0, %v1000_v39  ;;  %v364_v47 = vmul.f32 %v1296_v60, %v1388_v2  ;;  %v466_v38 = vmul.f32 %v1232_v31, %v1398_v3  ;;  %v698_v37 = vadd.f32 %v666_v11, %v597_v36  ;;  %v497_v50 = vadd.f32 %v465_v33, %v395_v41 }
  0x47   : > { %v900_v49 = vadd.f32 %v868_v29, %v799_v40  ;;  %v295_v52 = vadd.f32 %v263_v42, %v194_v34  ;;  %v970_v48 = vmul.f32 %v1431_v16, %v1298_v54  ;;  %v769_v56 = vmul.f32 %v1421_v14, %v1233_v51  ;;  %v1300_v29 = vld [vmem:[%s1393_s20 + $0xca] sm:$0xff] }
  0x48   : > { %v567_v57 = vmul.f32 %v1265_v35, %v1403_v4  ;;  %v195_v61 = vmul.f32 %v1231_v63, %v1378_v0  ;;  %v800_v62 = vadd.f32 %v768_v25, %v698_v37  ;;  %v598_v58 = vadd.f32 %v566_v26, %v497_v50 }
  0x49   : > { %v1001_v60 = vadd.f32 %v969_v8, %v900_v49  ;;  %v396_v53 = vadd.f32 %v364_v47, %v295_v52  ;;  %v870_v5 = vmul.f32 %v1426_v15, %v1266_v44  ;;  %v971_v55 = vmul.f32 %v1431_v16, %v1299_v45  ;;  %v1268_v47 = vld [vmem:[%s1393_s20 + $0xd9] sm:$0xff] }
  0x4a   : > { %v264_v6 = vmul.f32 %v1264_v21, %v1383_v1  ;;  %v365_v7 = vmul.f32 %v1297_v22, %v1388_v2  ;;  %v901_v63 = vadd.f32 %v869_v43, %v800_v62  ;;  %v699_v9 = vadd.f32 %v667_v46, %v598_v58 }
  0x4b   : > { %1034 = vst.msk [vmem:[%s1489_s8 + $0x50] sm:$0xff] %vm1023_vm0, %v1001_v60  ;;  %v498_v10 = vadd.f32 %v466_v38, %v396_v53  ;;  %v668_v12 = vmul.f32 %v1298_v54, %v1416_v13  ;;  %v770_v19 = vmul.f32 %v1421_v14, %v1234_v17  ;;  %v871_v20 = vmul.f32 %v1426_v15, %v1267_v18  ;;  %v1301_v38 = vld [vmem:[%s1393_s20 + $0xda] sm:$0xff] }
  0x4c   : > { %v296_v23 = vadd.f32 %v264_v6, %v195_v61  ;;  %v467_v21 = vmul.f32 %v1233_v51, %v1398_v3  ;;  %v1002_v22 = vadd.f32 %v970_v48, %v901_v63  ;;  %v801_v24 = vadd.f32 %v769_v56, %v699_v9  ;;  %v1236_v61 = vld [vmem:[%s1393_s20 + $0xe0] sm:$0xff] }
  0x4d   : > { %v599_v27 = vadd.f32 %v567_v57, %v498_v10  ;;  %v196_v59 = vmul.f32 %v1232_v31, %v1378_v0  ;;  %v568_v11 = vmul.f32 %v1266_v44, %v1403_v4  ;;  %v265_v28 = vmul.f32 %v1265_v35, %v1383_v1  ;;  %v1235_v31 = vld [vmem:[%s1393_s20 + $0xd8] sm:$0xff]  ;;  %v1269_v6 = vld [vmem:[%s1393_s20 + $0xe1] sm:$0xff] }
  0x4e   : > { %v397_v8 = vadd.f32 %v365_v7, %v296_v23  ;;  %v366_v30 = vmul.f32 %v1298_v54, %v1388_v2  ;;  %1035 = vst.msk [vmem:[%s1489_s8 + $0x58] sm:$0xff] %vm1023_vm0, %v1002_v22  ;;  %v902_v32 = vadd.f32 %v870_v5, %v801_v24  ;;  %v972_v39 = vmul.f32 %v1431_v16, %v1300_v29  ;;  %v1302_v23 = vld [vmem:[%s1393_s20 + $0xe2] sm:$0xff]  ;;  %v1237_v22 = vld [vmem:[%s1393_s20 + $0xf0] sm:$0xff] }
  0x4f   : > { %v700_v33 = vadd.f32 %v668_v12, %v599_v27  ;;  %v669_v25 = vmul.f32 %v1299_v45, %v1416_v13  ;;  %v771_v34 = vmul.f32 %v1421_v14, %v1235_v31  ;;  %v297_v40 = vadd.f32 %v265_v28, %v196_v59 }
  0x50   : > { %v499_v26 = vadd.f32 %v467_v21, %v397_v8  ;;  %v468_v36 = vmul.f32 %v1234_v17, %v1398_v3  ;;  %v1003_v35 = vadd.f32 %v971_v55, %v902_v32  ;;  %v569_v42 = vmul.f32 %v1267_v18, %v1403_v4  ;;  %v1303_v32 = vld [vmem:[%s1393_s20 + $0xf2] sm:$0xff] }
  0x51   : > { %v802_v41 = vadd.f32 %v770_v19, %v700_v33  ;;  %v197_v43 = vmul.f32 %v1233_v51, %v1378_v0  ;;  %v398_v49 = vadd.f32 %v366_v30, %v297_v40  ;;  %v266_v37 = vmul.f32 %v1266_v44, %v1383_v1  ;;  %v1270_v30 = vld [vmem:[%s1393_s20 + $0xf1] sm:$0xff] }
  0x52   : > { %v600_v46 = vadd.f32 %v568_v11, %v499_v26  ;;  %v367_v54 = vmul.f32 %v1299_v45, %v1388_v2  ;;  %1036 = vst.msk [vmem:[%s1489_s8 + $0x60] sm:$0xff] %vm1023_vm0, %v1003_v35  ;;  %v872_v52 = vmul.f32 %v1426_v15, %v1268_v47  ;;  %v973_v48 = vmul.f32 %v1431_v16, %v1301_v38 }
  0x53   : > { %v903_v50 = vadd.f32 %v871_v20, %v802_v41  ;;  %v670_v56 = vmul.f32 %v1300_v29, %v1416_v13  ;;  %v500_v57 = vadd.f32 %v468_v36, %v398_v49  ;;  %v298_v60 = vadd.f32 %v266_v37, %v197_v43  ;;  %v1238_v41 = vld [vmem:[%s1393_s20 + $0xf8] sm:$0xff] }
  0x54   : > { %v701_v51 = vadd.f32 %v669_v25, %v600_v46  ;;  %v469_v62 = vmul.f32 %v1235_v31, %v1398_v3  ;;  %v772_v44 = vmul.f32 %v1421_v14, %v1236_v61  ;;  %v570_v45 = vmul.f32 %v1268_v47, %v1403_v4 }
  0x55   : > { %v1004_v58 = vadd.f32 %v972_v39, %v903_v50  ;;  %v198_v53 = vmul.f32 %v1234_v17, %v1378_v0  ;;  %v601_v55 = vadd.f32 %v569_v42, %v500_v57  ;;  %v399_v7 = vadd.f32 %v367_v54, %v298_v60  ;;  %v1271_v42 = vld [vmem:[%s1393_s20 + $0xf9] sm:$0xff] }
  0x56   : > { %v803_v5 = vadd.f32 %v771_v34, %v701_v51  ;;  %v267_v63 = vmul.f32 %v1267_v18, %v1383_v1  ;;  %v873_v9 = vmul.f32 %v1426_v15, %v1269_v6  ;;  %v671_v10 = vmul.f32 %v1301_v38, %v1416_v13 }
  0x57   : > { %1037 = vst.msk [vmem:[%s1489_s8 + $0x68] sm:$0xff] %vm1023_vm0, %v1004_v58  ;;  %v368_v12 = vmul.f32 %v1300_v29, %v1388_v2  ;;  %v470_v19 = vmul.f32 %v1236_v61, %v1398_v3  ;;  %v702_v17 = vadd.f32 %v670_v56, %v601_v55  ;;  %v501_v21 = vadd.f32 %v469_v62, %v399_v7 }
  0x58   : > { %v904_v20 = vadd.f32 %v872_v52, %v803_v5  ;;  %v299_v24 = vadd.f32 %v267_v63, %v198_v53  ;;  %v974_v18 = vmul.f32 %v1431_v16, %v1302_v23  ;;  %v773_v27 = vmul.f32 %v1421_v14, %v1237_v22  ;;  %v1304_v52 = vld [vmem:[%s1393_s20 + $0xfa] sm:$0xff] }
  0x59   : > { %v571_v59 = vmul.f32 %v1269_v6, %v1403_v4  ;;  %v199_v8 = vmul.f32 %v1235_v31, %v1378_v0  ;;  %v804_v11 = vadd.f32 %v772_v44, %v702_v17  ;;  %v602_v28 = vadd.f32 %v570_v45, %v501_v21 }
  0x5a   : > { %v1005_v29 = vadd.f32 %v973_v48, %v904_v20  ;;  %v400_v33 = vadd.f32 %v368_v12, %v299_v24  ;;  %v874_v39 = vmul.f32 %v1426_v15, %v1270_v30  ;;  %v975_v25 = vmul.f32 %v1431_v16, %v1303_v32  ;;  %v1272_v12 = vld [vmem:[%s1393_s20 + $0x109] sm:$0xff] }
  0x5b   : > { %v268_v26 = vmul.f32 %v1268_v47, %v1383_v1  ;;  %v369_v34 = vmul.f32 %v1301_v38, %v1388_v2  ;;  %v905_v31 = vadd.f32 %v873_v9, %v804_v11  ;;  %v703_v40 = vadd.f32 %v671_v10, %v602_v28 }
  0x5c   : > { %1038 = vst.msk [vmem:[%s1489_s8 + $0x70] sm:$0xff] %vm1023_vm0, %v1005_v29  ;;  %v502_v36 = vadd.f32 %v470_v19, %v400_v33  ;;  %v672_v35 = vmul.f32 %v1302_v23, %v1416_v13  ;;  %v774_v43 = vmul.f32 %v1421_v14, %v1238_v41  ;;  %v875_v46 = vmul.f32 %v1426_v15, %v1271_v42  ;;  %v1305_v19 = vld [vmem:[%s1393_s20 + $0x10a] sm:$0xff] }
  0x5d   : > { %v300_v49 = vadd.f32 %v268_v26, %v199_v8  ;;  %v471_v47 = vmul.f32 %v1237_v22, %v1398_v3  ;;  %v1006_v38 = vadd.f32 %v974_v18, %v905_v31  ;;  %v805_v37 = vadd.f32 %v773_v27, %v703_v40  ;;  %v1240_v8 = vld [vmem:[%s1393_s20 + $0x110] sm:$0xff] }
  0x5e   : > { %v603_v54 = vadd.f32 %v571_v59, %v502_v36  ;;  %v200_v50 = vmul.f32 %v1236_v61, %v1378_v0  ;;  %v572_v56 = vmul.f32 %v1270_v30, %v1403_v4  ;;  %v269_v51 = vmul.f32 %v1269_v6, %v1383_v1  ;;  %v1239_v61 = vld [vmem:[%s1393_s20 + $0x108] sm:$0xff]  ;;  %v1273_v26 = vld [vmem:[%s1393_s20 + $0x111] sm:$0xff] }
  0x5f   : > { %v401_v48 = vadd.f32 %v369_v34, %v300_v49  ;;  %v370_v57 = vmul.f32 %v1302_v23, %v1388_v2  ;;  %1039 = vst.msk [vmem:[%s1489_s8 + $0x78] sm:$0xff] %vm1023_vm0, %v1006_v38  ;;  %v906_v60 = vadd.f32 %v874_v39, %v805_v37  ;;  %v976_v58 = vmul.f32 %v1431_v16, %v1304_v52  ;;  %v1306_v49 = vld [vmem:[%s1393_s20 + $0x112] sm:$0xff]  ;;  %v1241_v38 = vld [vmem:[%s1393_s20 + $0x120] sm:$0xff] }
  0x60   : > { %v704_v62 = vadd.f32 %v672_v35, %v603_v54  ;;  %v673_v44 = vmul.f32 %v1303_v32, %v1416_v13  ;;  %v775_v53 = vmul.f32 %v1421_v14, %v1239_v61  ;;  %v301_v5 = vadd.f32 %v269_v51, %v200_v50 }
  0x61   : > { %v503_v45 = vadd.f32 %v471_v47, %v401_v48  ;;  %v472_v55 = vmul.f32 %v1238_v41, %v1398_v3  ;;  %v1007_v6 = vadd.f32 %v975_v25, %v906_v60  ;;  %v573_v63 = vmul.f32 %v1271_v42, %v1403_v4  ;;  %v1307_v60 = vld [vmem:[%s1393_s20 + $0x122] sm:$0xff] }
  0x62   : > { %v806_v7 = vadd.f32 %v774_v43, %v704_v62  ;;  %v201_v9 = vmul.f32 %v1237_v22, %v1378_v0  ;;  %v402_v20 = vadd.f32 %v370_v57, %v301_v5  ;;  %v270_v17 = vmul.f32 %v1270_v30, %v1383_v1  ;;  %v1274_v57 = vld [vmem:[%s1393_s20 + $0x121] sm:$0xff] }
  0x63   : > { %v604_v10 = vadd.f32 %v572_v56, %v503_v45  ;;  %v371_v23 = vmul.f32 %v1303_v32, %v1388_v2  ;;  %1040 = vst.msk [vmem:[%s1489_s8 + $0x80] sm:$0xff] %vm1023_vm0, %v1007_v6  ;;  %v876_v24 = vmul.f32 %v1426_v15, %v1272_v12  ;;  %v977_v18 = vmul.f32 %v1431_v16, %v1305_v19 }
  0x64   : > { %v907_v21 = vadd.f32 %v875_v46, %v806_v7  ;;  %v674_v27 = vmul.f32 %v1304_v52, %v1416_v13  ;;  %v504_v59 = vadd.f32 %v472_v55, %v402_v20  ;;  %v302_v29 = vadd.f32 %v270_v17, %v201_v9  ;;  %v1242_v7 = vld [vmem:[%s1393_s20 + $0x128] sm:$0xff] }
  0x65   : > { %v705_v22 = vadd.f32 %v673_v44, %v604_v10  ;;  %v473_v11 = vmul.f32 %v1239_v61, %v1398_v3  ;;  %v776_v30 = vmul.f32 %v1421_v14, %v1240_v8  ;;  %v574_v32 = vmul.f32 %v1272_v12, %v1403_v4 }
  0x66   : > { %v1008_v28 = vadd.f32 %v976_v58, %v907_v21  ;;  %v202_v33 = vmul.f32 %v1238_v41, %v1378_v0  ;;  %v605_v25 = vadd.f32 %v573_v63, %v504_v59  ;;  %v403_v34 = vadd.f32 %v371_v23, %v302_v29  ;;  %v1275_v63 = vld [vmem:[%s1393_s20 + $0x129] sm:$0xff] }
  0x67   : > { %v807_v39 = vadd.f32 %v775_v53, %v705_v22  ;;  %v271_v31 = vmul.f32 %v1271_v42, %v1383_v1  ;;  %v877_v40 = vmul.f32 %v1426_v15, %v1273_v26  ;;  %v675_v36 = vmul.f32 %v1305_v19, %v1416_v13 }
  0x68   : > { %1041 = vst.msk [vmem:[%s1489_s8 + $0x88] sm:$0xff] %vm1023_vm0, %v1008_v28  ;;  %v372_v35 = vmul.f32 %v1304_v52, %v1388_v2  ;;  %v474_v43 = vmul.f32 %v1240_v8, %v1398_v3  ;;  %v706_v41 = vadd.f32 %v674_v27, %v605_v25  ;;  %v505_v47 = vadd.f32 %v473_v11, %v403_v34 }
  0x69   : > { %v908_v46 = vadd.f32 %v876_v24, %v807_v39  ;;  %v303_v37 = vadd.f32 %v271_v31, %v202_v33  ;;  %v978_v42 = vmul.f32 %v1431_v16, %v1306_v49  ;;  %v777_v54 = vmul.f32 %v1421_v14, %v1241_v38  ;;  %v1308_v24 = vld [vmem:[%s1393_s20 + $0x12a] sm:$0xff] }
  0x6a   : > { %v575_v50 = vmul.f32 %v1273_v26, %v1403_v4  ;;  %v203_v48 = vmul.f32 %v1239_v61, %v1378_v0  ;;  %v808_v56 = vadd.f32 %v776_v30, %v706_v41  ;;  %v606_v51 = vadd.f32 %v574_v32, %v505_v47 }
  0x6b   : > { %v1009_v52 = vadd.f32 %v977_v18, %v908_v46  ;;  %v404_v62 = vadd.f32 %v372_v35, %v303_v37  ;;  %v878_v58 = vmul.f32 %v1426_v15, %v1274_v57  ;;  %v979_v44 = vmul.f32 %v1431_v16, %v1307_v60  ;;  %v1276_v35 = vld [vmem:[%s1393_s20 + $0x139] sm:$0xff] }
  0x6c   : > { %v272_v45 = vmul.f32 %v1272_v12, %v1383_v1  ;;  %v373_v53 = vmul.f32 %v1305_v19, %v1388_v2  ;;  %v909_v61 = vadd.f32 %v877_v40, %v808_v56  ;;  %v707_v5 = vadd.f32 %v675_v36, %v606_v51 }
  0x6d   : > { %1042 = vst.msk [vmem:[%s1489_s8 + $0x90] sm:$0xff] %vm1023_vm0, %v1009_v52  ;;  %v506_v55 = vadd.f32 %v474_v43, %v404_v62  ;;  %v676_v6 = vmul.f32 %v1306_v49, %v1416_v13  ;;  %v778_v9 = vmul.f32 %v1421_v14, %v1242_v7  ;;  %v879_v10 = vmul.f32 %v1426_v15, %v1275_v63  ;;  %v1309_v43 = vld [vmem:[%s1393_s20 + $0x13a] sm:$0xff] }
  0x6e   : > { %v304_v20 = vadd.f32 %v272_v45, %v203_v48  ;;  %v475_v12 = vmul.f32 %v1241_v38, %v1398_v3  ;;  %v1010_v19 = vadd.f32 %v978_v42, %v909_v61  ;;  %v809_v17 = vadd.f32 %v777_v54, %v707_v5  ;;  %v1792_v52 = vld [vmem:[%s1945_s1] ss:$0 sm:$0xff]  ;;  %v1799_v62 = vld [vmem:[%s1945_s1 + $0x1] ss:$0 sm:$0xff]  ;;  %v1808_v45 = vld [vmem:[%s1945_s1 + $0x5] ss:$0 sm:$0xff] }
  0x6f   : > { %v607_v23 = vadd.f32 %v575_v50, %v506_v55  ;;  %v204_v21 = vmul.f32 %v1240_v8, %v1378_v0  ;;  %v576_v27 = vmul.f32 %v1274_v57, %v1403_v4  ;;  %v273_v22 = vmul.f32 %v1273_v26, %v1383_v1  ;;  %v1243_v8 = vld [vmem:[%s1393_s20 + $0x138] sm:$0xff]  ;;  %v1814_v61 = vld [vmem:[%s1945_s1 + $0x2] ss:$0 sm:$0xff] }
  0x70   : > { %v405_v18 = vadd.f32 %v373_v53, %v304_v20  ;;  %v374_v59 = vmul.f32 %v1306_v49, %v1388_v2  ;;  %1043 = vst.msk [vmem:[%s1489_s8 + $0x98] sm:$0xff] %vm1023_vm0, %v1010_v19  ;;  %v910_v29 = vadd.f32 %v878_v58, %v809_v17  ;;  %v980_v28 = vmul.f32 %v1431_v16, %v1308_v24  ;;  %v1823_v20 = vld [vmem:[%s1945_s1 + $0x8] ss:$0 sm:$0xff]  ;;  %v1829_v19 = vld [vmem:[%s1945_s1 + $0x6] ss:$0 sm:$0xff] }
  0x71   : > { %v708_v11 = vadd.f32 %v676_v6, %v607_v23  ;;  %v677_v30 = vmul.f32 %v1307_v60, %v1416_v13  ;;  %v779_v33 = vmul.f32 %v1421_v14, %v1243_v8  ;;  %v305_v39 = vadd.f32 %v273_v22, %v204_v21  ;;  %v1278_v22 = vld [vmem:[%s1393_s20 + $0x151] sm:$0xff] }
  0x72   : > { %v507_v32 = vadd.f32 %v475_v12, %v405_v18  ;;  %v476_v25 = vmul.f32 %v1242_v7, %v1398_v3  ;;  %v1011_v26 = vadd.f32 %v979_v44, %v910_v29  ;;  %v577_v31 = vmul.f32 %v1275_v63, %v1403_v4 }
  0x73   : > { %v810_v34 = vadd.f32 %v778_v9, %v708_v11  ;;  %v205_v40 = vmul.f32 %v1241_v38, %v1378_v0  ;;  %v406_v46 = vadd.f32 %v374_v59, %v305_v39  ;;  %v274_v41 = vmul.f32 %v1274_v57, %v1383_v1  ;;  %v1244_v38 = vld [vmem:[%s1393_s20 + $0x140] sm:$0xff]  ;;  %v1245_v9 = vld [vmem:[%s1393_s20 + $0x150] sm:$0xff] }
  0x74   : > { %v608_v36 = vadd.f32 %v576_v27, %v507_v32  ;;  %v375_v49 = vmul.f32 %v1307_v60, %v1388_v2  ;;  %1044 = vst.msk [vmem:[%s1489_s8 + $0xa0] sm:$0xff] %vm1023_vm0, %v1011_v26  ;;  %v880_v3 = vmul.f32 %v1426_v15, %v1276_v35  ;;  %v981_v37 = vmul.f32 %v1431_v16, %v1309_v43  ;;  %v1779_v1 = vld [vmem:[%s1945_s1 + $0x3] ss:$0 sm:$0xff]  ;;  %v1786_v16 = vld [vmem:[%s1945_s1 + $0x4] ss:$0 sm:$0xff]  ;;  %v1311_v59 = vld [vmem:[%s1393_s20 + $0x152] sm:$0xff] }
  0x75   : > { %v911_v47 = vadd.f32 %v879_v10, %v810_v34  ;;  %v678_v4 = vmul.f32 %v1308_v24, %v1416_v13  ;;  %v508_v0 = vadd.f32 %v476_v25, %v406_v46  ;;  %v306_v54 = vadd.f32 %v274_v41, %v205_v40  ;;  %v1277_v60 = vld [vmem:[%s1393_s20 + $0x141] sm:$0xff]  ;;  %v1246_v34 = vld [vmem:[%s1393_s20 + $0x158] sm:$0xff] }
  0x76   : > { %v709_v42 = vadd.f32 %v677_v30, %v608_v36  ;;  %v477_v2 = vmul.f32 %v1779_v1, %v1243_v8  ;;  %v780_v48 = vmul.f32 %v1421_v14, %v1244_v38  ;;  %v578_v13 = vmul.f32 %v1786_v16, %v1276_v35  ;;  %v1839_v11 = vld [vmem:[%s1945_s1 + $0x7] ss:$0 sm:$0xff] }
  0x77   : > { %v1012_v50 = vadd.f32 %v980_v28, %v911_v47  ;;  %v206_v56 = vmul.f32 %v1792_v52, %v1242_v7  ;;  %v609_v57 = vadd.f32 %v577_v31, %v508_v0  ;;  %v407_v14 = vadd.f32 %v375_v49, %v306_v54  ;;  %v1310_v7 = vld [vmem:[%s1393_s20 + $0x142] sm:$0xff]  ;;  %v1279_v31 = vld [vmem:[%s1393_s20 + $0x159] sm:$0xff] }
  0x78   : > { %v811_v51 = vadd.f32 %v779_v33, %v709_v42  ;;  %v275_v58 = vmul.f32 %v1799_v62, %v1275_v63  ;;  %v881_v44 = vmul.f32 %v1426_v15, %v1277_v60  ;;  %v679_v53 = vmul.f32 %v1808_v45, %v1309_v43 }
  0x79   : > { %1045 = vst.msk [vmem:[%s1489_s8 + $0xa8] sm:$0xff] %vm1023_vm0, %v1012_v50  ;;  %v376_v5 = vmul.f32 %v1814_v61, %v1308_v24  ;;  %v478_v55 = vmul.f32 %v1779_v1, %v1244_v38  ;;  %v710_v15 = vadd.f32 %v678_v4, %v609_v57  ;;  %v509_v63 = vadd.f32 %v477_v2, %v407_v14 }
  0x7a   : > { %v912_v6 = vadd.f32 %v880_v3, %v811_v51  ;;  %v307_v10 = vadd.f32 %v275_v58, %v206_v56  ;;  %v982_v12 = vmul.f32 %v1823_v20, %v1310_v7  ;;  %v781_v17 = vmul.f32 %v1829_v19, %v1245_v9  ;;  %v1312_v3 = vld [vmem:[%s1393_s20 + $0x15a] sm:$0xff] }
  0x7b   : > { %v579_v23 = vmul.f32 %v1786_v16, %v1277_v60  ;;  %v207_v21 = vmul.f32 %v1792_v52, %v1243_v8  ;;  %v812_v18 = vadd.f32 %v780_v48, %v710_v15  ;;  %v610_v27 = vadd.f32 %v578_v13, %v509_v63 }
  0x7c   : > { %v1013_v24 = vadd.f32 %v981_v37, %v912_v6  ;;  %v408_v29 = vadd.f32 %v376_v5, %v307_v10  ;;  %v882_v28 = vmul.f32 %v1839_v11, %v1278_v22  ;;  %v983_v30 = vmul.f32 %v1823_v20, %v1311_v59  ;;  %v1280_v5 = vld [vmem:[%s1393_s20 + $0x169] sm:$0xff] }
  0x7d   : > { %v276_v32 = vmul.f32 %v1799_v62, %v1276_v35  ;;  %v377_v8 = vmul.f32 %v1814_v61, %v1309_v43  ;;  %v913_v33 = vadd.f32 %v881_v44, %v812_v18  ;;  %v711_v39 = vadd.f32 %v679_v53, %v610_v27 }
  0x7e   : > { %1046 = vst.msk [vmem:[%s1489_s8 + $0xb0] sm:$0xff] %vm1023_vm0, %v1013_v24  ;;  %v510_v25 = vadd.f32 %v478_v55, %v408_v29  ;;  %v680_v26 = vmul.f32 %v1808_v45, %v1310_v7  ;;  %v782_v40 = vmul.f32 %v1829_v19, %v1246_v34  ;;  %v883_v36 = vmul.f32 %v1839_v11, %v1279_v31  ;;  %v1313_v55 = vld [vmem:[%s1393_s20 + $0x16a] sm:$0xff] }
  0x7f   : > { %v308_v46 = vadd.f32 %v276_v32, %v207_v21  ;;  %v479_v35 = vmul.f32 %v1779_v1, %v1245_v9  ;;  %v1014_v43 = vadd.f32 %v982_v12, %v913_v33  ;;  %v813_v41 = vadd.f32 %v781_v17, %v711_v39  ;;  %v1248_v21 = vld [vmem:[%s1393_s20 + $0x170] sm:$0xff] }
  0x80   : > { %v611_v49 = vadd.f32 %v579_v23, %v510_v25  ;;  %v208_v47 = vmul.f32 %v1792_v52, %v1244_v38  ;;  %v580_v4 = vmul.f32 %v1786_v16, %v1278_v22  ;;  %v277_v42 = vmul.f32 %v1799_v62, %v1277_v60  ;;  %v1247_v38 = vld [vmem:[%s1393_s20 + $0x168] sm:$0xff]  ;;  %v1281_v32 = vld [vmem:[%s1393_s20 + $0x171] sm:$0xff] }
  0x81   : > { %v409_v37 = vadd.f32 %v377_v8, %v308_v46  ;;  %v378_v0 = vmul.f32 %v1814_v61, %v1310_v7  ;;  %1047 = vst.msk [vmem:[%s1489_s8 + $0xb8] sm:$0xff] %vm1023_vm0, %v1014_v43  ;;  %v914_v54 = vadd.f32 %v882_v28, %v813_v41  ;;  %v984_v50 = vmul.f32 %v1823_v20, %v1312_v3  ;;  %v1249_v43 = vld [vmem:[%s1393_s20 + $0x180] sm:$0xff] }
  0x82   : > { %v712_v2 = vadd.f32 %v680_v26, %v611_v49  ;;  %v681_v48 = vmul.f32 %v1808_v45, %v1311_v59  ;;  %v783_v56 = vmul.f32 %v1829_v19, %v1247_v38  ;;  %v309_v51 = vadd.f32 %v277_v42, %v208_v47 }
  0x83   : > { %v511_v13 = vadd.f32 %v479_v35, %v409_v37  ;;  %v480_v57 = vmul.f32 %v1779_v1, %v1246_v34  ;;  %v1015_v60 = vadd.f32 %v983_v30, %v914_v54  ;;  %v581_v58 = vmul.f32 %v1786_v16, %v1279_v31 }
  0x84   : > { %v814_v14 = vadd.f32 %v782_v40, %v712_v2  ;;  %v209_v44 = vmul.f32 %v1792_v52, %v1245_v9  ;;  %v410_v6 = vadd.f32 %v378_v0, %v309_v51  ;;  %v278_v15 = vmul.f32 %v1799_v62, %v1278_v22  ;;  %v1282_v0 = vld [vmem:[%s1393_s20 + $0x181] sm:$0xff] }
  0x85   : > { %v612_v53 = vadd.f32 %v580_v4, %v511_v13  ;;  %v379_v7 = vmul.f32 %v1814_v61, %v1311_v59  ;;  %1048 = vst.msk [vmem:[%s1489_s8 + $0xc0] sm:$0xff] %vm1023_vm0, %v1015_v60  ;;  %v884_v10 = vmul.f32 %v1839_v11, %v1280_v5  ;;  %v985_v12 = vmul.f32 %v1823_v20, %v1313_v55  ;;  %v1315_v51 = vld [vmem:[%s1393_s20 + $0x182] sm:$0xff] }
  0x86   : > { %v915_v63 = vadd.f32 %v883_v36, %v814_v14  ;;  %v682_v17 = vmul.f32 %v1808_v45, %v1312_v3  ;;  %v512_v23 = vadd.f32 %v480_v57, %v410_v6  ;;  %v310_v24 = vadd.f32 %v278_v15, %v209_v44  ;;  %v1250_v60 = vld [vmem:[%s1393_s20 + $0x188] sm:$0xff] }
  0x87   : > { %v713_v9 = vadd.f32 %v681_v48, %v612_v53  ;;  %v481_v18 = vmul.f32 %v1779_v1, %v1247_v38  ;;  %v784_v22 = vmul.f32 %v1829_v19, %v1248_v21  ;;  %v582_v59 = vmul.f32 %v1786_v16, %v1280_v5 }
  0x88   : > { %v1016_v27 = vadd.f32 %v984_v50, %v915_v63  ;;  %v210_v29 = vmul.f32 %v1792_v52, %v1246_v34  ;;  %v613_v30 = vadd.f32 %v581_v58, %v512_v23  ;;  %v411_v8 = vadd.f32 %v379_v7, %v310_v24  ;;  %v1314_v34 = vld [vmem:[%s1393_s20 + $0x172] sm:$0xff]  ;;  %v1283_v7 = vld [vmem:[%s1393_s20 + $0x189] sm:$0xff] }
  0x89   : > { %v815_v28 = vadd.f32 %v783_v56, %v713_v9  ;;  %v279_v33 = vmul.f32 %v1799_v62, %v1279_v31  ;;  %v885_v39 = vmul.f32 %v1839_v11, %v1281_v32  ;;  %v683_v25 = vmul.f32 %v1808_v45, %v1313_v55 }
  0x8a   : > { %1049 = vst.msk [vmem:[%s1489_s8 + $0xc8] sm:$0xff] %vm1023_vm0, %v1016_v27  ;;  %v380_v26 = vmul.f32 %v1814_v61, %v1312_v3  ;;  %v482_v40 = vmul.f32 %v1779_v1, %v1248_v21  ;;  %v714_v46 = vadd.f32 %v682_v17, %v613_v30  ;;  %v513_v35 = vadd.f32 %v481_v18, %v411_v8  ;;  %v1251_v18 = vld [vmem:[%s1393_s20 + $0x198] sm:$0xff]  ;;  %v1316_v27 = vld [vmem:[%s1393_s20 + $0x18a] sm:$0xff] }
  0x8b   : > { %v916_v36 = vadd.f32 %v884_v10, %v815_v28  ;;  %v311_v41 = vadd.f32 %v279_v33, %v210_v29  ;;  %v986_v31 = vmul.f32 %v1823_v20, %v1314_v34  ;;  %v785_v49 = vmul.f32 %v1829_v19, %v1249_v43  ;;  %v1284_v28 = vld [vmem:[%s1393_s20 + $0x199] sm:$0xff] }
  0x8c   : > { %v583_v47 = vmul.f32 %v1786_v16, %v1281_v32  ;;  %v211_v37 = vmul.f32 %v1792_v52, %v1247_v38  ;;  %v816_v4 = vadd.f32 %v784_v22, %v714_v46  ;;  %v614_v42 = vadd.f32 %v582_v59, %v513_v35  ;;  %v1285_v35 = vld [vmem:[%s1393_s20 + $0x1a1] sm:$0xff] }
  0x8d   : > { %v1017_v3 = vadd.f32 %v985_v12, %v916_v36  ;;  %v412_v54 = vadd.f32 %v380_v26, %v311_v41  ;;  %v886_v2 = vmul.f32 %v1839_v11, %v1282_v0  ;;  %v280_v50 = vmul.f32 %v1799_v62, %v1280_v5  ;;  %v1252_v26 = vld [vmem:[%s1393_s20 + $0x1a0] sm:$0xff] }
  0x8e   : > { %v381_v48 = vmul.f32 %v1814_v61, %v1313_v55  ;;  %v917_v13 = vadd.f32 %v885_v39, %v816_v4  ;;  %v715_v56 = vadd.f32 %v683_v25, %v614_v42  ;;  %v684_v38 = vmul.f32 %v1808_v45, %v1314_v34  ;;  %v1317_v25 = vld [vmem:[%s1393_s20 + $0x19a] sm:$0xff] }
  0x8f   : > { %1050 = vst.msk [vmem:[%s1489_s8 + $0xd0] sm:$0xff] %vm1023_vm0, %v1017_v3  ;;  %v514_v57 = vadd.f32 %v482_v40, %v412_v54  ;;  %v987_v14 = vmul.f32 %v1823_v20, %v1315_v51  ;;  %v786_v58 = vmul.f32 %v1829_v19, %v1250_v60  ;;  %v312_v44 = vadd.f32 %v280_v50, %v211_v37 }
  0x90   : > { %v483_v53 = vmul.f32 %v1779_v1, %v1249_v43  ;;  %v1018_v5 = vadd.f32 %v986_v31, %v917_v13  ;;  %v817_v55 = vadd.f32 %v785_v49, %v715_v56  ;;  %v212_v15 = vmul.f32 %v1792_v52, %v1248_v21  ;;  %v1318_v49 = vld [vmem:[%s1393_s20 + $0x1a2] sm:$0xff] }
  0x91   : > { %v615_v6 = vadd.f32 %v583_v47, %v514_v57  ;;  %v413_v63 = vadd.f32 %v381_v48, %v312_v44  ;;  %v584_v10 = vmul.f32 %v1786_v16, %v1282_v0  ;;  %v281_v12 = vmul.f32 %v1799_v62, %v1281_v32 }
  0x92   : > { %v382_v17 = vmul.f32 %v1814_v61, %v1314_v34  ;;  %1051 = vst.msk [vmem:[%s1489_s8 + $0xd8] sm:$0xff] %vm1023_vm0, %v1018_v5  ;;  %v918_v9 = vadd.f32 %v886_v2, %v817_v55  ;;  %v887_v24 = vmul.f32 %v1839_v11, %v1283_v7  ;;  %v685_v21 = vmul.f32 %v1808_v45, %v1315_v51 }
  0x93   : > { %v716_v23 = vadd.f32 %v684_v38, %v615_v6  ;;  %v515_v52 = vadd.f32 %v483_v53, %v413_v63  ;;  %v313_v22 = vadd.f32 %v281_v12, %v212_v15  ;;  %v484_v59 = vmul.f32 %v1779_v1, %v1250_v60 }
  0x94   : > { %v1019_v62 = vadd.f32 %v987_v14, %v918_v9  ;;  %v988_v61 = vmul.f32 %v1823_v20, %v1316_v27  ;;  %v787_v32 = vmul.f32 %v1829_v19, %v1251_v18  ;;  %v585_v33 = vmul.f32 %v1786_v16, %v1283_v7 }
  0x95   : > { %v818_v29 = vadd.f32 %v786_v58, %v716_v23  ;;  %v616_v30 = vadd.f32 %v584_v10, %v515_v52  ;;  %v414_v8 = vadd.f32 %v382_v17, %v313_v22  ;;  %v888_v40 = vmul.f32 %v1839_v11, %v1284_v28 }
  0x96   : > { %1052 = vst.msk [vmem:[%s1489_s8 + $0xe0] sm:$0xff] %vm1023_vm0, %v1019_v62  ;;  %v686_v46 = vmul.f32 %v1808_v45, %v1316_v27  ;;  %v989_v41 = vmul.f32 %v1823_v20, %v1317_v25  ;;  %v788_v31 = vmul.f32 %v1829_v19, %v1252_v26  ;;  %v889_v3 = vmul.f32 %v1839_v11, %v1285_v35 }
  0x97   : > { %v919_v39 = vadd.f32 %v887_v24, %v818_v29  ;;  %v717_v1 = vadd.f32 %v685_v21, %v616_v30  ;;  %v516_v36 = vadd.f32 %v484_v59, %v414_v8  ;;  %v990_v45 = vmul.f32 %v1823_v20, %v1318_v49 }
  0x99   : > { %v1020_v34 = vadd.f32 %v988_v61, %v919_v39  ;;  %v819_v43 = vadd.f32 %v787_v32, %v717_v1  ;;  %v617_v16 = vadd.f32 %v585_v33, %v516_v36 }
  0x9b   : > { %1053 = vst.msk [vmem:[%s1489_s8 + $0xe8] sm:$0xff] %vm1023_vm0, %v1020_v34  ;;  %v920_v47 = vadd.f32 %v888_v40, %v819_v43  ;;  %v718_v37 = vadd.f32 %v686_v46, %v617_v16 }
  0x9d   : > { %v1021_v4 = vadd.f32 %v989_v41, %v920_v47  ;;  %v820_v42 = vadd.f32 %v788_v31, %v718_v37 }
  0x9f   : > { %1054 = vst.msk [vmem:[%s1489_s8 + $0xf0] sm:$0xff] %vm1023_vm0, %v1021_v4  ;;  %v921_v0 = vadd.f32 %v889_v3, %v820_v42 }
  0xa1   : > { %v1022_v54 = vadd.f32 %v990_v45, %v921_v0 }
  0xa3   : > { %1055 = vst.msk [vmem:[%s1489_s8 + $0xf8] sm:$0xff] %vm1023_vm0, %v1022_v54 }
  0xa4 PF: > { %s12_s9 = sadd.s32 1, %s1347_s9  }
  0xa5   : > { %p9_p4 = scmp.ge.s32.totalorder %s12_s9, 4  }
  0xa7   :  { %11 = sbr.rel (!%p9_p4) target bundleno = 1 (0x1), region = 60 }

// kernel: patch_embed_apply.5
= control target key start
LH: loop header
LB: loop body
LE: loop exit
PB: predicated region body
PF: predicated region fallthrough
CT: control target
= control target key end

     0   :  { %vm447_vm0 = vcmask 1040384   ;;  %vm448_vm1 = vcmask 1041408   ;;  %vm350_vm2 = vcmask 23552   ;;  %v8369_v1 = vmov 65535   ;;  %s9984_s10 = inlined_call_operand.vmem [shape: bf16[3,8], index: 10, kind: input, shape index: {}]   ;;  %s9985_s13 = inlined_call_operand.vmem [shape: bf16[3,8], index: 13, kind: input, shape index: {}]   ;;  %s9986_s1 = inlined_call_operand.vmem [shape: bf16[512,3], index: 1, kind: input, shape index: {}]   ;;  %s9987_s4 = inlined_call_operand.vmem [shape: bf16[512,3], index: 4, kind: input, shape index: {}]   ;;  %s9988_s9 = inlined_call_operand.vmem [shape: bf16[3,8], index: 9, kind: input, shape index: {}]   ;;  %s9989_s14 = inlined_call_operand.vmem [shape: bf16[3,8], index: 14, kind: input, shape index: {}]   ;;  %s9990_s5 = inlined_call_operand.vmem [shape: bf16[512,3], index: 5, kind: input, shape index: {}]   ;;  %s9991_s15 = inlined_call_operand.vmem [shape: bf16[3,8], index: 15, kind: input, shape index: {}]   ;;  %s9992_s0 = inlined_call_operand.vmem [shape: bf16[512,3], index: 0, kind: input, shape index: {}]   ;;  %s9993_s11 = inlined_call_operand.vmem [shape: bf16[3,8], index: 11, kind: input, shape index: {}]   ;;  %s9994_s6 = inlined_call_operand.vmem [shape: bf16[512,3], index: 6, kind: input, shape index: {}]   ;;  %s9995_s16 = inlined_call_operand.vmem [shape: bf16[3,8], index: 16, kind: input, shape index: {}]   ;;  %s9996_s2 = inlined_call_operand.vmem [shape: bf16[512,3], index: 2, kind: input, shape index: {}]   ;;  %s9997_s12 = inlined_call_operand.vmem [shape: bf16[3,8], index: 12, kind: input, shape index: {}]   ;;  %s9998_s7 = inlined_call_operand.vmem [shape: bf16[512,3], index: 7, kind: input, shape index: {}]   ;;  %s9999_s17 = inlined_call_operand.vmem [shape: bf16[3,8], index: 17, kind: input, shape index: {}]   ;;  %s10000_s3 = inlined_call_operand.vmem [shape: bf16[512,3], index: 3, kind: input, shape index: {}]   ;;  %s10001_s8 = inlined_call_operand.vmem [shape: bf16[512,3], index: 8, kind: input, shape index: {}]   ;;  %s10002_s18 = inlined_call_operand.vmem [shape: f32[512,8], index: 18, kind: output, shape index: {}]  }
   0x1   :  { %10004 = sst [smem:[#allocation2_spill]] %s9984_s10  ;;  %v449_v2 = vsel %vm447_vm0, 4294967295, %v8369_v1  ;;  %v8082_v6 = vld [vmem:[%s9987_s4] sm:$0xff]   ;;  %v8084_v12 = vld [vmem:[%s9987_s4 + $0x8] sm:$0xff]   ;;  %v8086_v16 = vld [vmem:[%s9987_s4 + $0x10] sm:$0xff]   ;;  %vm6030_vm3 = vcmask 64512  }
   0x2   :  { %10005 = sst [smem:[#allocation3_spill]] %s9985_s13  ;;  %s10007_s29 = sld [smem:[#allocation2_spill]]  ;;  %v8474_v5 = vsel %vm448_vm1, %v449_v2, 0  ;;  %7238 = vmatprep.mubr.msk.bf16.mxu0 %vm350_vm2, %v8082_v6  ;;  %v124_v10 = vld [vmem:[%s9988_s9] sm:$0x3]  ;;  %v8088_v18 = vld [vmem:[%s9987_s4 + $0x18] sm:$0xff]  }
   0x3   :  { %10006 = sst [smem:[#allocation4_spill]] %s9986_s1  ;;  %s10008_s19 = sld [smem:[#allocation3_spill]]  ;;  %v1000_v11 = vand.u32 %v8474_v5, %v124_v10  ;;  %v3386_v13 = vld [vmem:[%s9989_s14] sm:$0x3]  ;;  %v8092_v22 = vld [vmem:[%s9987_s4 + $0x28] sm:$0xff]   ;;  %v8094_v24 = vld [vmem:[%s9987_s4 + $0x30] sm:$0xff]  }
   0x4   :  { %s10009_s21 = sld [smem:[#allocation4_spill]]  ;;  %v3644_v14 = vand.u32 %v3386_v13, %v8474_v5  ;;  %v8090_v20 = vld [vmem:[%s9987_s4 + $0x20] sm:$0xff]   ;;  %v8096_v26 = vld [vmem:[%s9987_s4 + $0x38] sm:$0xff]   ;;  %v8100_v30 = vld [vmem:[%s9987_s4 + $0x48] sm:$0xff]  }
   0x5   :  { %v8098_v28 = vld [vmem:[%s9987_s4 + $0x40] sm:$0xff]   ;;  %v8102_v32 = vld [vmem:[%s9987_s4 + $0x50] sm:$0xff]   ;;  %v8104_v36 = vld [vmem:[%s9987_s4 + $0x58] sm:$0xff]  }
   0x6   :  { %v4063_v33 = vld [vmem:[%s9991_s15] sm:$0x3]  ;;  %v8108_v40 = vld [vmem:[%s9987_s4 + $0x68] sm:$0xff]   ;;  %v8110_v42 = vld [vmem:[%s9987_s4 + $0x70] sm:$0xff]  }
   0x7   :  { %v4321_v34 = vand.u32 %v4063_v33, %v8474_v5  ;;  %v8106_v38 = vld [vmem:[%s9987_s4 + $0x60] sm:$0xff]   ;;  %v8112_v44 = vld [vmem:[%s9987_s4 + $0x78] sm:$0xff]   ;;  %v8116_v48 = vld [vmem:[%s9990_s5 + $0x8] sm:$0xff]  }
   0x8   :  { %v189_v0 = vld [vmem:[%s10007_s29] sm:$0x3]  ;;  %v8118_v52 = vld [vmem:[%s9990_s5 + $0x10] sm:$0xff]   ;;  %v8120_v54 = vld [vmem:[%s9990_s5 + $0x18] sm:$0xff]  }
   0x9   :  { %v2709_v3 = vld [vmem:[%s10008_s19] sm:$0x3]  ;;  %v452_v7 = vand.u32 %v8474_v5, %v189_v0  ;;  %v8124_v58 = vld [vmem:[%s9990_s5 + $0x28] sm:$0xff]   ;;  %v8126_v60 = vld [vmem:[%s9990_s5 + $0x30] sm:$0xff]  }
   0xa   :  { %v8081_v4 = vld [vmem:[%s10009_s21] sm:$0xff]   ;;  %v8481_v8 = vand.u32 %v2709_v3, %v8474_v5  ;;  %v8083_v9 = vld [vmem:[%s10009_s21 + $0x8] sm:$0xff]   ;;  %v8085_v15 = vld [vmem:[%s10009_s21 + $0x10] sm:$0xff]  }
   0xb   :  { %6974 = vmatprep.mubr.msk.bf16.mxu1 %vm350_vm2, %v8081_v4  ;;  %6972 = vmatprep.subr.bf16.mxu1 %v452_v7  ;;  %v8087_v17 = vld [vmem:[%s10009_s21 + $0x18] sm:$0xff]   ;;  %v8089_v19 = vld [vmem:[%s10009_s21 + $0x20] sm:$0xff]   ;;  %v8091_v21 = vld [vmem:[%s10009_s21 + $0x28] sm:$0xff]  }
   0xc   :  { %7236 = vmatprep.subr.bf16.mxu0 %v8481_v8  ;;  %6973 = vmatpush3.bf16.msra.mxu1 %v452_v7  ;;  %v8093_v23 = vld [vmem:[%s10009_s21 + $0x30] sm:$0xff]   ;;  %v8095_v25 = vld [vmem:[%s10009_s21 + $0x38] sm:$0xff]   ;;  %v8097_v27 = vld [vmem:[%s10009_s21 + $0x40] sm:$0xff]  }
   0xd   :  { %7237 = vmatpush3.bf16.msra.mxu0 %v8481_v8  ;;  %7038 = vmatprep.subr.bf16.mxu1 %v1000_v11  ;;  %v8099_v29 = vld [vmem:[%s10009_s21 + $0x48] sm:$0xff]   ;;  %v8101_v31 = vld [vmem:[%s10009_s21 + $0x50] sm:$0xff]   ;;  %v8103_v35 = vld [vmem:[%s10009_s21 + $0x58] sm:$0xff]  }
   0xe   :  { %7302 = vmatprep.subr.bf16.mxu0 %v3644_v14  ;;  %v8105_v37 = vld [vmem:[%s10009_s21 + $0x60] sm:$0xff]   ;;  %v8107_v39 = vld [vmem:[%s10009_s21 + $0x68] sm:$0xff]   ;;  %v8109_v41 = vld [vmem:[%s10009_s21 + $0x70] sm:$0xff]  }
   0xf   :  { %6975 = vmatmul.mubr.msk.bf16.vlgmr.msra.gmra.mrb[0].mxu1 %vm350_vm2, %v8083_v9  ;;  %v8111_v43 = vld [vmem:[%s10009_s21 + $0x78] sm:$0xff]   ;;  %v8113_v45 = vld [vmem:[%s10009_s21 + $0x80] sm:$0xff]   ;;  %v8115_v47 = vld [vmem:[%s10009_s21 + $0x88] sm:$0xff]  }
  0x10   :  { %7239 = vmatmul.mubr.msk.bf16.vlgmr.msra.gmra.mrb[0].mxu0 %vm350_vm2, %v8084_v12  ;;  %7039 = vmatpush3.bf16.msra.mxu1 %v1000_v11  ;;  %v8114_v46 = vld [vmem:[%s9990_s5] sm:$0xff]   ;;  %v8117_v50 = vld [vmem:[%s10009_s21 + $0x90] sm:$0xff]   ;;  %v8119_v53 = vld [vmem:[%s10009_s21 + $0x98] sm:$0xff]  }
  0x11   :  { %7303 = vmatpush3.bf16.msra.mxu0 %v3644_v14  ;;  %6978 = vmatprep.mubr.msk.bf16.mxu1 %vm350_vm2, %v8085_v15  ;;  %v1355_v49 = vld [vmem:[%s9993_s11] sm:$0x3]  ;;  %v8123_v57 = vld [vmem:[%s10009_s21 + $0xa8] sm:$0xff]   ;;  %v8125_v59 = vld [vmem:[%s10009_s21 + $0xb0] sm:$0xff]  }
  0x12   :  { %7242 = vmatprep.mubr.msk.bf16.mxu0 %vm350_vm2, %v8086_v16  ;;  %7368 = vmatprep.subr.bf16.mxu0 %v4321_v34  ;;  %v8640_v51 = vand.u32 %v1355_v49, %v8474_v5  ;;  %v8121_v55 = vld [vmem:[%s10009_s21 + $0xa0] sm:$0xff]   ;;  %v8127_v61 = vld [vmem:[%s10009_s21 + $0xb8] sm:$0xff]   ;;  %v8131_v1 = vld [vmem:[%s10009_s21 + $0xc8] sm:$0xff]  }
  0x13   :  { %v8122_v56 = vld [vmem:[%s9990_s5 + $0x20] sm:$0xff]   ;;  %v8128_v62 = vld [vmem:[%s9990_s5 + $0x38] sm:$0xff]   ;;  %v8132_v2 = vld [vmem:[%s9990_s5 + $0x48] sm:$0xff]  }
  0x14   :  { %7104 = vmatprep.subr.bf16.mxu1 %v8640_v51  ;;  %v8129_v63 = vld [vmem:[%s10009_s21 + $0xc0] sm:$0xff]   ;;  %v8133_v3 = vld [vmem:[%s10009_s21 + $0xd0] sm:$0xff]   ;;  %v8135_v9 = vld [vmem:[%s10009_s21 + $0xd8] sm:$0xff]  }
  0x15   :  { %v8130_v0 = vld [vmem:[%s9990_s5 + $0x40] sm:$0xff]   ;;  %v8134_v4 = vld [vmem:[%s9990_s5 + $0x50] sm:$0xff]   ;;  %v8136_v10 = vld [vmem:[%s9990_s5 + $0x58] sm:$0xff]  }
  0x16   :  { %v4740_v6 = vld [vmem:[%s9995_s16] sm:$0x3]  ;;  %v8139_v13 = vld [vmem:[%s10009_s21 + $0xe8] sm:$0xff]   ;;  %v8141_v15 = vld [vmem:[%s10009_s21 + $0xf0] sm:$0xff]  }
  0x17   :  { %6979 = vmatmul.mubr.msk.bf16.gmra.mrb[4].mxu1 %vm350_vm2, %v8087_v17  ;;  %v8714_v7 = vand.u32 %v4740_v6, %v8474_v5  ;;  %v8137_v11 = vld [vmem:[%s10009_s21 + $0xe0] sm:$0xff]   ;;  %v8140_v14 = vld [vmem:[%s9990_s5 + $0x68] sm:$0xff]   ;;  %v8142_v16 = vld [vmem:[%s9990_s5 + $0x70] sm:$0xff]  }
  0x18   :  { %7243 = vmatmul.mubr.msk.bf16.gmra.mrb[4].mxu0 %vm350_vm2, %v8088_v18  ;;  %6982 = vmatprep.mubr.msk.bf16.mxu1 %vm350_vm2, %v8089_v19  ;;  %v8138_v12 = vld [vmem:[%s9990_s5 + $0x60] sm:$0xff]   ;;  %v8143_v17 = vld [vmem:[%s10009_s21 + $0xf8] sm:$0xff]   ;;  %v8157_v33 = vld [vmem:[%s9992_s0 + $0x30] sm:$0xff]  }
  0x19   :  { %7246 = vmatprep.mubr.msk.bf16.mxu0 %vm350_vm2, %v8090_v20  ;;  %v8144_v18 = vld [vmem:[%s9990_s5 + $0x78] sm:$0xff]   ;;  %v8145_v19 = vld [vmem:[%s9992_s0] sm:$0xff]   ;;  %v8173_v49 = vld [vmem:[%s9992_s0 + $0x70] sm:$0xff]  }
  0x1a   :  { %v8146_v20 = vld [vmem:[%s9990_s5 + $0x80] sm:$0xff]   ;;  %v8192_v6 = vld [vmem:[%s9994_s6 + $0x38] sm:$0xff]  }
  0x1f   :  { %6983 = vmatmul.mubr.msk.bf16.gmra.mrb[8].mxu1 %vm350_vm2, %v8091_v21  ;;  %v8147_v21 = vld [vmem:[%s9992_s0 + $0x8] sm:$0xff]  }
  0x20   :  { %7247 = vmatmul.mubr.msk.bf16.gmra.mrb[8].mxu0 %vm350_vm2, %v8092_v22  ;;  %6986 = vmatprep.mubr.msk.bf16.mxu1 %vm350_vm2, %v8093_v23  ;;  %v8148_v22 = vld [vmem:[%s9990_s5 + $0x88] sm:$0xff]   ;;  %v8149_v23 = vld [vmem:[%s9992_s0 + $0x10] sm:$0xff]  }
  0x21   :  { %7250 = vmatprep.mubr.msk.bf16.mxu0 %vm350_vm2, %v8094_v24  ;;  %v8150_v24 = vld [vmem:[%s9990_s5 + $0x90] sm:$0xff]  }
  0x27   :  { %6987 = vmatmul.mubr.msk.bf16.gmra.mrb[12].mxu1 %vm350_vm2, %v8095_v25  ;;  %v2032_v25 = vld [vmem:[%s9997_s12] sm:$0x3] }
  0x28   :  { %7251 = vmatmul.mubr.msk.bf16.gmra.mrb[12].mxu0 %vm350_vm2, %v8096_v26  ;;  %6990 = vmatprep.mubr.msk.bf16.mxu1 %vm350_vm2, %v8097_v27  ;;  %v8151_v26 = vld [vmem:[%s9992_s0 + $0x18] sm:$0xff]  }
  0x29   :  { %7254 = vmatprep.mubr.msk.bf16.mxu0 %vm350_vm2, %v8098_v28  ;;  %v8152_v27 = vld [vmem:[%s9990_s5 + $0x98] sm:$0xff]   ;;  %v8796_v28 = vand.u32 %v2032_v25, %v8474_v5  ;;  %v8210_v25 = vld [vmem:[%s9994_s6 + $0x80] sm:$0xff]  }
  0x2f   :  { %6991 = vmatmul.mubr.msk.bf16.gmra.mrb[16].mxu1 %vm350_vm2, %v8099_v29  ;;  %v8153_v29 = vld [vmem:[%s9992_s0 + $0x20] sm:$0xff]  }
  0x30   :  { %7255 = vmatmul.mubr.msk.bf16.gmra.mrb[16].mxu0 %vm350_vm2, %v8100_v30  ;;  %6994 = vmatprep.mubr.msk.bf16.mxu1 %vm350_vm2, %v8101_v31  ;;  %v8154_v30 = vld [vmem:[%s9990_s5 + $0xa0] sm:$0xff]   ;;  %v8155_v31 = vld [vmem:[%s9992_s0 + $0x28] sm:$0xff]  }
  0x31   :  { %7258 = vmatprep.mubr.msk.bf16.mxu0 %vm350_vm2, %v8102_v32  ;;  %v8156_v32 = vld [vmem:[%s9990_s5 + $0xa8] sm:$0xff]  }
  0x37   :  { %6995 = vmatmul.mubr.msk.bf16.gmra.mrb[20].mxu1 %vm350_vm2, %v8103_v35  ;;  %v8159_v35 = vld [vmem:[%s9992_s0 + $0x38] sm:$0xff]  }
  0x38   :  { %7259 = vmatmul.mubr.msk.bf16.gmra.mrb[20].mxu0 %vm350_vm2, %v8104_v36  ;;  %6998 = vmatprep.mubr.msk.bf16.mxu1 %vm350_vm2, %v8105_v37  ;;  %v8160_v36 = vld [vmem:[%s9990_s5 + $0xb8] sm:$0xff]   ;;  %v8161_v37 = vld [vmem:[%s9992_s0 + $0x40] sm:$0xff]  }
  0x39   :  { %7262 = vmatprep.mubr.msk.bf16.mxu0 %vm350_vm2, %v8106_v38  ;;  %v8162_v38 = vld [vmem:[%s9990_s5 + $0xc0] sm:$0xff]  }
  0x3f   :  { %6999 = vmatmul.mubr.msk.bf16.gmra.mrb[24].mxu1 %vm350_vm2, %v8107_v39  ;;  %v8163_v39 = vld [vmem:[%s9992_s0 + $0x48] sm:$0xff]  }
  0x40   :  { %7263 = vmatmul.mubr.msk.bf16.gmra.mrb[24].mxu0 %vm350_vm2, %v8108_v40  ;;  %7002 = vmatprep.mubr.msk.bf16.mxu1 %vm350_vm2, %v8109_v41  ;;  %v8164_v40 = vld [vmem:[%s9990_s5 + $0xc8] sm:$0xff]   ;;  %v8165_v41 = vld [vmem:[%s9992_s0 + $0x50] sm:$0xff]  }
  0x41   :  { %7266 = vmatprep.mubr.msk.bf16.mxu0 %vm350_vm2, %v8110_v42  ;;  %v8166_v42 = vld [vmem:[%s9990_s5 + $0xd0] sm:$0xff]  }
  0x47   :  { %7003 = vmatmul.mubr.msk.bf16.gmra.mrb[28].mxu1 %vm350_vm2, %v8111_v43  ;;  %v8167_v43 = vld [vmem:[%s9992_s0 + $0x58] sm:$0xff]  }
  0x48   :  { %7267 = vmatmul.mubr.msk.bf16.gmra.mrb[28].mxu0 %vm350_vm2, %v8112_v44  ;;  %7006 = vmatprep.mubr.msk.bf16.mxu1 %vm350_vm2, %v8113_v45  ;;  %v8168_v44 = vld [vmem:[%s9990_s5 + $0xd8] sm:$0xff]   ;;  %v8169_v45 = vld [vmem:[%s9992_s0 + $0x60] sm:$0xff]  }
  0x49   :  { %7304 = vmatprep.mubr.msk.bf16.mxu0 %vm350_vm2, %v8114_v46  ;;  %v8170_v46 = vld [vmem:[%s9990_s5 + $0xe0] sm:$0xff]  }
  0x4f   :  { %7007 = vmatmul.mubr.msk.bf16.gmra.mrb[32].mxu1 %vm350_vm2, %v8115_v47  ;;  %v8171_v47 = vld [vmem:[%s9992_s0 + $0x68] sm:$0xff]  }
  0x50   :  { %7305 = vmatmul.mubr.msk.bf16.vlgmr.msra.gmra.mrb[0].mxu0 %vm350_vm2, %v8116_v48  ;;  %7010 = vmatprep.mubr.msk.bf16.mxu1 %vm350_vm2, %v8117_v50  ;;  %v8172_v48 = vld [vmem:[%s9990_s5 + $0xe8] sm:$0xff]   ;;  %v8174_v50 = vld [vmem:[%s9990_s5 + $0xf0] sm:$0xff]  }
  0x51   :  { %7369 = vmatpush3.bf16.msra.mxu0 %v4321_v34  ;;  %7308 = vmatprep.mubr.msk.bf16.mxu0 %vm350_vm2, %v8118_v52  ;;  %v8158_v34 = vld [vmem:[%s9990_s5 + $0xb0] sm:$0xff]   ;;  %v8176_v52 = vld [vmem:[%s9990_s5 + $0xf8] sm:$0xff]  }
  0x52   :  { %7434 = vmatprep.subr.bf16.mxu0 %v8714_v7 }
  0x57   :  { %7011 = vmatmul.mubr.msk.bf16.gmra.mrb[36].mxu1 %vm350_vm2, %v8119_v53  ;;  %v8177_v53 = vld [vmem:[%s9992_s0 + $0x80] sm:$0xff]  }
  0x58   :  { %7309 = vmatmul.mubr.msk.bf16.gmra.mrb[4].mxu0 %vm350_vm2, %v8120_v54  ;;  %7014 = vmatprep.mubr.msk.bf16.mxu1 %vm350_vm2, %v8121_v55  ;;  %v8178_v54 = vld [vmem:[%s9994_s6] sm:$0xff]   ;;  %v8179_v55 = vld [vmem:[%s9992_s0 + $0x88] sm:$0xff]  }
  0x59   :  { %7312 = vmatprep.mubr.msk.bf16.mxu0 %vm350_vm2, %v8122_v56  ;;  %v8180_v56 = vld [vmem:[%s9994_s6 + $0x8] sm:$0xff]  }
  0x5f   :  { %7015 = vmatmul.mubr.msk.bf16.gmra.mrb[40].mxu1 %vm350_vm2, %v8123_v57  ;;  %v8181_v57 = vld [vmem:[%s9992_s0 + $0x90] sm:$0xff]  }
  0x60   :  { %7313 = vmatmul.mubr.msk.bf16.gmra.mrb[8].mxu0 %vm350_vm2, %v8124_v58  ;;  %7018 = vmatprep.mubr.msk.bf16.mxu1 %vm350_vm2, %v8125_v59  ;;  %v8182_v58 = vld [vmem:[%s9994_s6 + $0x10] sm:$0xff]   ;;  %v5417_v59 = vld [vmem:[%s9999_s17] sm:$0x3] }
  0x61   :  { %7316 = vmatprep.mubr.msk.bf16.mxu0 %vm350_vm2, %v8126_v60  ;;  %v8183_v60 = vld [vmem:[%s9992_s0 + $0x98] sm:$0xff]  }
  0x67   :  { %7019 = vmatmul.mubr.msk.bf16.gmra.mrb[44].mxu1 %vm350_vm2, %v8127_v61  ;;  %v8184_v61 = vld [vmem:[%s9994_s6 + $0x18] sm:$0xff]  }
  0x68   :  { %7317 = vmatmul.mubr.msk.bf16.gmra.mrb[12].mxu0 %vm350_vm2, %v8128_v62  ;;  %7022 = vmatprep.mubr.msk.bf16.mxu1 %vm350_vm2, %v8129_v63  ;;  %v8932_v62 = vand.u32 %v5417_v59, %v8474_v5  ;;  %v8185_v63 = vld [vmem:[%s9992_s0 + $0xa0] sm:$0xff]   ;;  %v8187_v5 = vld [vmem:[%s9992_s0 + $0xa8] sm:$0xff]  }
  0x69   :  { %7320 = vmatprep.mubr.msk.bf16.mxu0 %vm350_vm2, %v8130_v0  ;;  %v8186_v0 = vld [vmem:[%s9994_s6 + $0x20] sm:$0xff]   ;;  %v8244_v59 = vld [vmem:[%s9998_s7 + $0x8] sm:$0xff]  }
  0x6f   :  { %7023 = vmatmul.mubr.msk.bf16.gmra.mrb[48].mxu1 %vm350_vm2, %v8131_v1  ;;  %v8188_v1 = vld [vmem:[%s9994_s6 + $0x28] sm:$0xff]  }
  0x70   :  { %7321 = vmatmul.mubr.msk.bf16.gmra.mrb[16].mxu0 %vm350_vm2, %v8132_v2  ;;  %7026 = vmatprep.mubr.msk.bf16.mxu1 %vm350_vm2, %v8133_v3  ;;  %v8189_v2 = vld [vmem:[%s9992_s0 + $0xb0] sm:$0xff]  }
  0x71   :  { %7324 = vmatprep.mubr.msk.bf16.mxu0 %vm350_vm2, %v8134_v4  ;;  %v8190_v3 = vld [vmem:[%s9994_s6 + $0x30] sm:$0xff]   ;;  %v8191_v4 = vld [vmem:[%s9992_s0 + $0xb8] sm:$0xff]  }
  0x77   :  { %7027 = vmatmul.mubr.msk.bf16.gmra.mrb[52].mxu1 %vm350_vm2, %v8135_v9  ;;  %v8194_v9 = vld [vmem:[%s9994_s6 + $0x40] sm:$0xff]  }
  0x78   :  { %7325 = vmatmul.mubr.msk.bf16.gmra.mrb[20].mxu0 %vm350_vm2, %v8136_v10  ;;  %7030 = vmatprep.mubr.msk.bf16.mxu1 %vm350_vm2, %v8137_v11  ;;  %v8195_v10 = vld [vmem:[%s9992_s0 + $0xc8] sm:$0xff]  }
  0x79   :  { %7328 = vmatprep.mubr.msk.bf16.mxu0 %vm350_vm2, %v8138_v12  ;;  %v8196_v11 = vld [vmem:[%s9994_s6 + $0x48] sm:$0xff]   ;;  %v8197_v12 = vld [vmem:[%s9992_s0 + $0xd0] sm:$0xff]  }
  0x7f   :  { %7031 = vmatmul.mubr.msk.bf16.gmra.mrb[56].mxu1 %vm350_vm2, %v8139_v13  ;;  %v8198_v13 = vld [vmem:[%s9994_s6 + $0x50] sm:$0xff]  }
  0x80   :  { %7329 = vmatmul.mubr.msk.bf16.gmra.mrb[24].mxu0 %vm350_vm2, %v8140_v14  ;;  %7034 = vmatprep.mubr.msk.bf16.mxu1 %vm350_vm2, %v8141_v15  ;;  %v8199_v14 = vld [vmem:[%s9992_s0 + $0xd8] sm:$0xff]  }
  0x81   :  { %7332 = vmatprep.mubr.msk.bf16.mxu0 %vm350_vm2, %v8142_v16  ;;  %v8200_v15 = vld [vmem:[%s9994_s6 + $0x58] sm:$0xff]   ;;  %v8201_v16 = vld [vmem:[%s9992_s0 + $0xe0] sm:$0xff]  }
  0x87   :  { %7035 = vmatmul.mubr.msk.bf16.gmra.mrb[60].mxu1 %vm350_vm2, %v8143_v17  ;;  %v8202_v17 = vld [vmem:[%s9994_s6 + $0x60] sm:$0xff]  }
  0x88   :  { %7333 = vmatmul.mubr.msk.bf16.gmra.mrb[28].mxu0 %vm350_vm2, %v8144_v18  ;;  %7040 = vmatprep.mubr.msk.bf16.mxu1 %vm350_vm2, %v8145_v19  ;;  %v8203_v18 = vld [vmem:[%s9992_s0 + $0xe8] sm:$0xff]  }
  0x89   :  { %7336 = vmatprep.mubr.msk.bf16.mxu0 %vm350_vm2, %v8146_v20  ;;  %v8204_v19 = vld [vmem:[%s9994_s6 + $0x68] sm:$0xff]   ;;  %v8205_v20 = vld [vmem:[%s9992_s0 + $0xf0] sm:$0xff]  }
  0x8f   :  { %7041 = vmatmul.mubr.msk.bf16.vlgmr.msra.gmra.mrb[0].mxu1 %vm350_vm2, %v8147_v21  ;;  %v8206_v21 = vld [vmem:[%s9994_s6 + $0x70] sm:$0xff]  }
  0x90   :  { %7337 = vmatmul.mubr.msk.bf16.gmra.mrb[32].mxu0 %vm350_vm2, %v8148_v22  ;;  %7105 = vmatpush3.bf16.msra.mxu1 %v8640_v51  ;;  %v8175_v51 = vld [vmem:[%s9992_s0 + $0x78] sm:$0xff]  }
  0x91   :  { %7044 = vmatprep.mubr.msk.bf16.mxu1 %vm350_vm2, %v8149_v23  ;;  %7340 = vmatprep.mubr.msk.bf16.mxu0 %vm350_vm2, %v8150_v24  ;;  %v8207_v22 = vld [vmem:[%s9992_s0 + $0xf8] sm:$0xff]   ;;  %v8209_v24 = vld [vmem:[%s9996_s2] sm:$0xff]  }
  0x92   :  { %7170 = vmatprep.subr.bf16.mxu1 %v8796_v28  ;;  %v8208_v23 = vld [vmem:[%s9994_s6 + $0x78] sm:$0xff]  }
  0x97   :  { %7045 = vmatmul.mubr.msk.bf16.gmra.mrb[4].mxu1 %vm350_vm2, %v8151_v26  ;;  %v8211_v26 = vld [vmem:[%s9996_s2 + $0x8] sm:$0xff]  }
  0x98   :  { %7341 = vmatmul.mubr.msk.bf16.gmra.mrb[36].mxu0 %vm350_vm2, %v8152_v27  ;;  %7048 = vmatprep.mubr.msk.bf16.mxu1 %vm350_vm2, %v8153_v29  ;;  %v8212_v27 = vld [vmem:[%s9994_s6 + $0x88] sm:$0xff]   ;;  %v8213_v29 = vld [vmem:[%s9996_s2 + $0x10] sm:$0xff]  }
  0x99   :  { %7344 = vmatprep.mubr.msk.bf16.mxu0 %vm350_vm2, %v8154_v30  ;;  %v8214_v30 = vld [vmem:[%s9994_s6 + $0x90] sm:$0xff]  }
  0x9f   :  { %7049 = vmatmul.mubr.msk.bf16.gmra.mrb[8].mxu1 %vm350_vm2, %v8155_v31  ;;  %v8215_v31 = vld [vmem:[%s9996_s2 + $0x18] sm:$0xff]  }
  0xa0   :  { %7345 = vmatmul.mubr.msk.bf16.gmra.mrb[40].mxu0 %vm350_vm2, %v8156_v32  ;;  %7052 = vmatprep.mubr.msk.bf16.mxu1 %vm350_vm2, %v8157_v33  ;;  %v8216_v32 = vld [vmem:[%s9994_s6 + $0x98] sm:$0xff]   ;;  %v8217_v33 = vld [vmem:[%s9996_s2 + $0x20] sm:$0xff]  }
  0xa1   :  { %7348 = vmatprep.mubr.msk.bf16.mxu0 %vm350_vm2, %v8158_v34  ;;  %v8219_v34 = vld [vmem:[%s9996_s2 + $0x28] sm:$0xff]  }
  0xa7   :  { %7053 = vmatmul.mubr.msk.bf16.gmra.mrb[12].mxu1 %vm350_vm2, %v8159_v35  ;;  %v8220_v35 = vld [vmem:[%s9994_s6 + $0xa8] sm:$0xff]  }
  0xa8   :  { %7349 = vmatmul.mubr.msk.bf16.gmra.mrb[44].mxu0 %vm350_vm2, %v8160_v36  ;;  %7056 = vmatprep.mubr.msk.bf16.mxu1 %vm350_vm2, %v8161_v37  ;;  %v8221_v36 = vld [vmem:[%s9996_s2 + $0x30] sm:$0xff]  }
  0xa9   :  { %7352 = vmatprep.mubr.msk.bf16.mxu0 %vm350_vm2, %v8162_v38  ;;  %v8222_v37 = vld [vmem:[%s9994_s6 + $0xb0] sm:$0xff]   ;;  %v8223_v38 = vld [vmem:[%s9996_s2 + $0x38] sm:$0xff]  }
  0xaf   :  { %7057 = vmatmul.mubr.msk.bf16.gmra.mrb[16].mxu1 %vm350_vm2, %v8163_v39  ;;  %v8224_v39 = vld [vmem:[%s9994_s6 + $0xb8] sm:$0xff]  }
  0xb0   :  { %7353 = vmatmul.mubr.msk.bf16.gmra.mrb[48].mxu0 %vm350_vm2, %v8164_v40  ;;  %7060 = vmatprep.mubr.msk.bf16.mxu1 %vm350_vm2, %v8165_v41  ;;  %v8225_v40 = vld [vmem:[%s9996_s2 + $0x40] sm:$0xff]  }
  0xb1   :  { %7356 = vmatprep.mubr.msk.bf16.mxu0 %vm350_vm2, %v8166_v42  ;;  %v8226_v41 = vld [vmem:[%s9994_s6 + $0xc0] sm:$0xff]   ;;  %v8227_v42 = vld [vmem:[%s9996_s2 + $0x48] sm:$0xff]  }
  0xb7   :  { %7061 = vmatmul.mubr.msk.bf16.gmra.mrb[20].mxu1 %vm350_vm2, %v8167_v43  ;;  %v8228_v43 = vld [vmem:[%s9994_s6 + $0xc8] sm:$0xff]  }
  0xb8   :  { %7357 = vmatmul.mubr.msk.bf16.gmra.mrb[52].mxu0 %vm350_vm2, %v8168_v44  ;;  %7064 = vmatprep.mubr.msk.bf16.mxu1 %vm350_vm2, %v8169_v45  ;;  %v8229_v44 = vld [vmem:[%s9996_s2 + $0x50] sm:$0xff]  }
  0xb9   :  { %7360 = vmatprep.mubr.msk.bf16.mxu0 %vm350_vm2, %v8170_v46  ;;  %v8230_v45 = vld [vmem:[%s9994_s6 + $0xd0] sm:$0xff]   ;;  %v8231_v46 = vld [vmem:[%s9996_s2 + $0x58] sm:$0xff]  }
  0xbf   :  { %7065 = vmatmul.mubr.msk.bf16.gmra.mrb[24].mxu1 %vm350_vm2, %v8171_v47  ;;  %v8232_v47 = vld [vmem:[%s9994_s6 + $0xd8] sm:$0xff]  }
  0xc0   :  { %7361 = vmatmul.mubr.msk.bf16.gmra.mrb[56].mxu0 %vm350_vm2, %v8172_v48  ;;  %7068 = vmatprep.mubr.msk.bf16.mxu1 %vm350_vm2, %v8173_v49  ;;  %v8233_v48 = vld [vmem:[%s9996_s2 + $0x60] sm:$0xff]  }
  0xc1   :  { %7364 = vmatprep.mubr.msk.bf16.mxu0 %vm350_vm2, %v8174_v50  ;;  %v8234_v49 = vld [vmem:[%s9994_s6 + $0xe0] sm:$0xff]   ;;  %v8235_v50 = vld [vmem:[%s9996_s2 + $0x68] sm:$0xff]  }
  0xc7   :  { %7069 = vmatmul.mubr.msk.bf16.gmra.mrb[28].mxu1 %vm350_vm2, %v8175_v51  ;;  %v8236_v51 = vld [vmem:[%s9994_s6 + $0xe8] sm:$0xff]  }
  0xc8   :  { %7365 = vmatmul.mubr.msk.bf16.gmra.mrb[60].mxu0 %vm350_vm2, %v8176_v52  ;;  %7072 = vmatprep.mubr.msk.bf16.mxu1 %vm350_vm2, %v8177_v53  ;;  %v8237_v52 = vld [vmem:[%s9996_s2 + $0x70] sm:$0xff]  }
  0xc9   :  { %7370 = vmatprep.mubr.msk.bf16.mxu0 %vm350_vm2, %v8178_v54  ;;  %v8238_v53 = vld [vmem:[%s9994_s6 + $0xf0] sm:$0xff]   ;;  %v8239_v54 = vld [vmem:[%s9996_s2 + $0x78] sm:$0xff]  }
  0xcf   :  { %7073 = vmatmul.mubr.msk.bf16.gmra.mrb[32].mxu1 %vm350_vm2, %v8179_v55  ;;  %v8240_v55 = vld [vmem:[%s9994_s6 + $0xf8] sm:$0xff]  }
  0xd0   :  { %7371 = vmatmul.mubr.msk.bf16.vlgmr.msra.gmra.mrb[0].mxu0 %vm350_vm2, %v8180_v56  ;;  %7076 = vmatprep.mubr.msk.bf16.mxu1 %vm350_vm2, %v8181_v57  ;;  %v8241_v56 = vld [vmem:[%s9996_s2 + $0x80] sm:$0xff]  }
  0xd1   :  { %7435 = vmatpush3.bf16.msra.mxu0 %v8714_v7  ;;  %7374 = vmatprep.mubr.msk.bf16.mxu0 %vm350_vm2, %v8182_v58  ;;  %v8193_v7 = vld [vmem:[%s9992_s0 + $0xc0] sm:$0xff]   ;;  %v8243_v58 = vld [vmem:[%s9996_s2 + $0x88] sm:$0xff]  }
  0xd2   :  { %7500 = vmatprep.subr.bf16.mxu0 %v8932_v62  ;;  %v8242_v57 = vld [vmem:[%s9998_s7] sm:$0xff]  }
  0xd7   :  { %7077 = vmatmul.mubr.msk.bf16.gmra.mrb[36].mxu1 %vm350_vm2, %v8183_v60  ;;  %v8245_v60 = vld [vmem:[%s9996_s2 + $0x90] sm:$0xff]  }
  0xd8   :  { %7375 = vmatmul.mubr.msk.bf16.gmra.mrb[4].mxu0 %vm350_vm2, %v8184_v61  ;;  %7080 = vmatprep.mubr.msk.bf16.mxu1 %vm350_vm2, %v8185_v63  ;;  %v8246_v61 = vld [vmem:[%s9998_s7 + $0x10] sm:$0xff]   ;;  %v8247_v63 = vld [vmem:[%s9996_s2 + $0x98] sm:$0xff]  }
  0xd9   :  { %7378 = vmatprep.mubr.msk.bf16.mxu0 %vm350_vm2, %v8186_v0  ;;  %v8248_v0 = vld [vmem:[%s9998_s7 + $0x18] sm:$0xff]  }
  0xdf   :  { %7081 = vmatmul.mubr.msk.bf16.gmra.mrb[40].mxu1 %vm350_vm2, %v8187_v5  ;;  %v8249_v5 = vld [vmem:[%s9996_s2 + $0xa0] sm:$0xff]  }
  0xe0   :  { %7379 = vmatmul.mubr.msk.bf16.gmra.mrb[8].mxu0 %vm350_vm2, %v8188_v1  ;;  %7084 = vmatprep.mubr.msk.bf16.mxu1 %vm350_vm2, %v8189_v2  ;;  %v8251_v1 = vld [vmem:[%s9996_s2 + $0xa8] sm:$0xff]  }
  0xe1   :  { %7382 = vmatprep.mubr.msk.bf16.mxu0 %vm350_vm2, %v8190_v3  ;;  %v8252_v2 = vld [vmem:[%s9998_s7 + $0x28] sm:$0xff]   ;;  %v8253_v3 = vld [vmem:[%s9996_s2 + $0xb0] sm:$0xff]  }
  0xe7   :  { %7085 = vmatmul.mubr.msk.bf16.gmra.mrb[44].mxu1 %vm350_vm2, %v8191_v4  ;;  %v8254_v4 = vld [vmem:[%s9998_s7 + $0x30] sm:$0xff]  }
  0xe8   :  { %7383 = vmatmul.mubr.msk.bf16.gmra.mrb[12].mxu0 %vm350_vm2, %v8192_v6  ;;  %7088 = vmatprep.mubr.msk.bf16.mxu1 %vm350_vm2, %v8193_v7  ;;  %v8255_v6 = vld [vmem:[%s9996_s2 + $0xb8] sm:$0xff]  }
  0xe9   :  { %7386 = vmatprep.mubr.msk.bf16.mxu0 %vm350_vm2, %v8194_v9  ;;  %v8256_v7 = vld [vmem:[%s9998_s7 + $0x38] sm:$0xff]   ;;  %v8257_v9 = vld [vmem:[%s9996_s2 + $0xc0] sm:$0xff]  }
  0xef   :  { %7089 = vmatmul.mubr.msk.bf16.gmra.mrb[48].mxu1 %vm350_vm2, %v8195_v10  ;;  %v8258_v10 = vld [vmem:[%s9998_s7 + $0x40] sm:$0xff]  }
  0xf0   :  { %7387 = vmatmul.mubr.msk.bf16.gmra.mrb[16].mxu0 %vm350_vm2, %v8196_v11  ;;  %7092 = vmatprep.mubr.msk.bf16.mxu1 %vm350_vm2, %v8197_v12  ;;  %v8259_v11 = vld [vmem:[%s9996_s2 + $0xc8] sm:$0xff]  }
  0xf1   :  { %7390 = vmatprep.mubr.msk.bf16.mxu0 %vm350_vm2, %v8198_v13  ;;  %v8260_v12 = vld [vmem:[%s9998_s7 + $0x48] sm:$0xff]   ;;  %v8261_v13 = vld [vmem:[%s9996_s2 + $0xd0] sm:$0xff]  }
  0xf7   :  { %7093 = vmatmul.mubr.msk.bf16.gmra.mrb[52].mxu1 %vm350_vm2, %v8199_v14  ;;  %v8262_v14 = vld [vmem:[%s9998_s7 + $0x50] sm:$0xff]  }
  0xf8   :  { %7391 = vmatmul.mubr.msk.bf16.gmra.mrb[20].mxu0 %vm350_vm2, %v8200_v15  ;;  %7096 = vmatprep.mubr.msk.bf16.mxu1 %vm350_vm2, %v8201_v16  ;;  %v8263_v15 = vld [vmem:[%s9996_s2 + $0xd8] sm:$0xff]  }
  0xf9   :  { %7394 = vmatprep.mubr.msk.bf16.mxu0 %vm350_vm2, %v8202_v17  ;;  %v8264_v16 = vld [vmem:[%s9998_s7 + $0x58] sm:$0xff]   ;;  %v8265_v17 = vld [vmem:[%s9996_s2 + $0xe0] sm:$0xff]  }
  0xff   :  { %7097 = vmatmul.mubr.msk.bf16.gmra.mrb[56].mxu1 %vm350_vm2, %v8203_v18  ;;  %v8266_v18 = vld [vmem:[%s9998_s7 + $0x60] sm:$0xff]  }
 0x100   :  { %7395 = vmatmul.mubr.msk.bf16.gmra.mrb[24].mxu0 %vm350_vm2, %v8204_v19  ;;  %7100 = vmatprep.mubr.msk.bf16.mxu1 %vm350_vm2, %v8205_v20  ;;  %v8267_v19 = vld [vmem:[%s9996_s2 + $0xe8] sm:$0xff]  }
 0x101   :  { %7398 = vmatprep.mubr.msk.bf16.mxu0 %vm350_vm2, %v8206_v21  ;;  %v8268_v20 = vld [vmem:[%s9998_s7 + $0x68] sm:$0xff]   ;;  %v8269_v21 = vld [vmem:[%s9996_s2 + $0xf0] sm:$0xff]  }
 0x107   :  { %7101 = vmatmul.mubr.msk.bf16.gmra.mrb[60].mxu1 %vm350_vm2, %v8207_v22  ;;  %v8270_v22 = vld [vmem:[%s9998_s7 + $0x70] sm:$0xff]  }
 0x108   :  { %7399 = vmatmul.mubr.msk.bf16.gmra.mrb[28].mxu0 %vm350_vm2, %v8208_v23  ;;  %7106 = vmatprep.mubr.msk.bf16.mxu1 %vm350_vm2, %v8209_v24  ;;  %v8271_v23 = vld [vmem:[%s9996_s2 + $0xf8] sm:$0xff]  }
 0x109   :  { %7402 = vmatprep.mubr.msk.bf16.mxu0 %vm350_vm2, %v8210_v25  ;;  %v8272_v24 = vld [vmem:[%s9998_s7 + $0x78] sm:$0xff]   ;;  %v8273_v25 = vld [vmem:[%s10000_s3] sm:$0xff]  }
 0x10f   :  { %7107 = vmatmul.mubr.msk.bf16.vlgmr.msra.gmra.mrb[0].mxu1 %vm350_vm2, %v8211_v26  ;;  %v8274_v26 = vld [vmem:[%s9998_s7 + $0x80] sm:$0xff]  }
 0x110   :  { %7403 = vmatmul.mubr.msk.bf16.gmra.mrb[32].mxu0 %vm350_vm2, %v8212_v27  ;;  %7171 = vmatpush3.bf16.msra.mxu1 %v8796_v28  ;;  %v8218_v28 = vld [vmem:[%s9994_s6 + $0xa0] sm:$0xff]   ;;  %v8275_v27 = vld [vmem:[%s10000_s3 + $0x8] sm:$0xff]  }
 0x111   :  { %7110 = vmatprep.mubr.msk.bf16.mxu1 %vm350_vm2, %v8213_v29  ;;  %7406 = vmatprep.mubr.msk.bf16.mxu0 %vm350_vm2, %v8214_v30  ;;  %v8276_v29 = vld [vmem:[%s9998_s7 + $0x88] sm:$0xff]   ;;  %v8277_v30 = vld [vmem:[%s10000_s3 + $0x10] sm:$0xff]  }
 0x112   :  { %7566 = vmatprep.subr.bf16.mxu1 %v8481_v8 }
 0x117   :  { %7111 = vmatmul.mubr.msk.bf16.gmra.mrb[4].mxu1 %vm350_vm2, %v8215_v31  ;;  %v8278_v31 = vld [vmem:[%s9998_s7 + $0x90] sm:$0xff]  }
 0x118   :  { %7407 = vmatmul.mubr.msk.bf16.gmra.mrb[36].mxu0 %vm350_vm2, %v8216_v32  ;;  %7114 = vmatprep.mubr.msk.bf16.mxu1 %vm350_vm2, %v8217_v33  ;;  %v8279_v32 = vld [vmem:[%s10000_s3 + $0x18] sm:$0xff]  }
 0x119   :  { %7410 = vmatprep.mubr.msk.bf16.mxu0 %vm350_vm2, %v8218_v28  ;;  %v8280_v33 = vld [vmem:[%s9998_s7 + $0x98] sm:$0xff]   ;;  %v8281_v28 = vld [vmem:[%s10000_s3 + $0x20] sm:$0xff]  }
 0x11f   :  { %7115 = vmatmul.mubr.msk.bf16.gmra.mrb[8].mxu1 %vm350_vm2, %v8219_v34  ;;  %v8283_v34 = vld [vmem:[%s10000_s3 + $0x28] sm:$0xff]  }
 0x120   :  { %7411 = vmatmul.mubr.msk.bf16.gmra.mrb[40].mxu0 %vm350_vm2, %v8220_v35  ;;  %7118 = vmatprep.mubr.msk.bf16.mxu1 %vm350_vm2, %v8221_v36  ;;  %v8284_v35 = vld [vmem:[%s9998_s7 + $0xa8] sm:$0xff]   ;;  %v8285_v36 = vld [vmem:[%s10000_s3 + $0x30] sm:$0xff]  }
 0x121   :  { %7414 = vmatprep.mubr.msk.bf16.mxu0 %vm350_vm2, %v8222_v37  ;;  %v8286_v37 = vld [vmem:[%s9998_s7 + $0xb0] sm:$0xff]  }
 0x127   :  { %7119 = vmatmul.mubr.msk.bf16.gmra.mrb[12].mxu1 %vm350_vm2, %v8223_v38  ;;  %v8287_v38 = vld [vmem:[%s10000_s3 + $0x38] sm:$0xff]  }
 0x128   :  { %7415 = vmatmul.mubr.msk.bf16.gmra.mrb[44].mxu0 %vm350_vm2, %v8224_v39  ;;  %7122 = vmatprep.mubr.msk.bf16.mxu1 %vm350_vm2, %v8225_v40  ;;  %v8288_v39 = vld [vmem:[%s9998_s7 + $0xb8] sm:$0xff]   ;;  %v8289_v40 = vld [vmem:[%s10000_s3 + $0x40] sm:$0xff]  }
 0x129   :  { %7418 = vmatprep.mubr.msk.bf16.mxu0 %vm350_vm2, %v8226_v41  ;;  %v8290_v41 = vld [vmem:[%s9998_s7 + $0xc0] sm:$0xff]  }
 0x12f   :  { %7123 = vmatmul.mubr.msk.bf16.gmra.mrb[16].mxu1 %vm350_vm2, %v8227_v42  ;;  %v8291_v42 = vld [vmem:[%s10000_s3 + $0x48] sm:$0xff]  }
 0x130   :  { %7419 = vmatmul.mubr.msk.bf16.gmra.mrb[48].mxu0 %vm350_vm2, %v8228_v43  ;;  %7126 = vmatprep.mubr.msk.bf16.mxu1 %vm350_vm2, %v8229_v44  ;;  %v8292_v43 = vld [vmem:[%s9998_s7 + $0xc8] sm:$0xff]   ;;  %v8293_v44 = vld [vmem:[%s10000_s3 + $0x50] sm:$0xff]  }
 0x131   :  { %7422 = vmatprep.mubr.msk.bf16.mxu0 %vm350_vm2, %v8230_v45  ;;  %v8294_v45 = vld [vmem:[%s9998_s7 + $0xd0] sm:$0xff]  }
 0x137   :  { %7127 = vmatmul.mubr.msk.bf16.gmra.mrb[20].mxu1 %vm350_vm2, %v8231_v46  ;;  %v8295_v46 = vld [vmem:[%s10000_s3 + $0x58] sm:$0xff]  }
 0x138   :  { %7423 = vmatmul.mubr.msk.bf16.gmra.mrb[52].mxu0 %vm350_vm2, %v8232_v47  ;;  %7130 = vmatprep.mubr.msk.bf16.mxu1 %vm350_vm2, %v8233_v48  ;;  %v8296_v47 = vld [vmem:[%s9998_s7 + $0xd8] sm:$0xff]   ;;  %v8297_v48 = vld [vmem:[%s10000_s3 + $0x60] sm:$0xff]  }
 0x139   :  { %7426 = vmatprep.mubr.msk.bf16.mxu0 %vm350_vm2, %v8234_v49  ;;  %v8298_v49 = vld [vmem:[%s9998_s7 + $0xe0] sm:$0xff]  }
 0x13f   :  { %7131 = vmatmul.mubr.msk.bf16.gmra.mrb[24].mxu1 %vm350_vm2, %v8235_v50  ;;  %v8299_v50 = vld [vmem:[%s10000_s3 + $0x68] sm:$0xff]  }
 0x140   :  { %7427 = vmatmul.mubr.msk.bf16.gmra.mrb[56].mxu0 %vm350_vm2, %v8236_v51  ;;  %7134 = vmatprep.mubr.msk.bf16.mxu1 %vm350_vm2, %v8237_v52  ;;  %v8300_v51 = vld [vmem:[%s9998_s7 + $0xe8] sm:$0xff]   ;;  %v8301_v52 = vld [vmem:[%s10000_s3 + $0x70] sm:$0xff]  }
 0x141   :  { %7430 = vmatprep.mubr.msk.bf16.mxu0 %vm350_vm2, %v8238_v53  ;;  %v8302_v53 = vld [vmem:[%s9998_s7 + $0xf0] sm:$0xff]  }
 0x147   :  { %7135 = vmatmul.mubr.msk.bf16.gmra.mrb[28].mxu1 %vm350_vm2, %v8239_v54  ;;  %v8303_v54 = vld [vmem:[%s10000_s3 + $0x78] sm:$0xff]  }
 0x148   :  { %7431 = vmatmul.mubr.msk.bf16.gmra.mrb[60].mxu0 %vm350_vm2, %v8240_v55  ;;  %7138 = vmatprep.mubr.msk.bf16.mxu1 %vm350_vm2, %v8241_v56  ;;  %v8304_v55 = vld [vmem:[%s9998_s7 + $0xf8] sm:$0xff]   ;;  %v8305_v56 = vld [vmem:[%s10000_s3 + $0x80] sm:$0xff]  }
 0x149   :  { %7436 = vmatprep.mubr.msk.bf16.mxu0 %vm350_vm2, %v8242_v57  ;;  %v8306_v57 = vld [vmem:[%s10001_s8] sm:$0xff]  }
 0x14f   :  { %7139 = vmatmul.mubr.msk.bf16.gmra.mrb[32].mxu1 %vm350_vm2, %v8243_v58  ;;  %v8307_v58 = vld [vmem:[%s10000_s3 + $0x88] sm:$0xff]  }
 0x150   :  { %7437 = vmatmul.mubr.msk.bf16.vlgmr.msra.gmra.mrb[0].mxu0 %vm350_vm2, %v8244_v59  ;;  %7142 = vmatprep.mubr.msk.bf16.mxu1 %vm350_vm2, %v8245_v60  ;;  %v8308_v59 = vld [vmem:[%s10001_s8 + $0x8] sm:$0xff]   ;;  %v8309_v60 = vld [vmem:[%s10000_s3 + $0x90] sm:$0xff]  }
 0x151   :  { %7501 = vmatpush3.bf16.msra.mxu0 %v8932_v62  ;;  %7440 = vmatprep.mubr.msk.bf16.mxu0 %vm350_vm2, %v8246_v61  ;;  %v8250_v62 = vld [vmem:[%s9998_s7 + $0x20] sm:$0xff]   ;;  %v8310_v61 = vld [vmem:[%s10001_s8 + $0x10] sm:$0xff]  }
 0x157   :  { %7143 = vmatmul.mubr.msk.bf16.gmra.mrb[36].mxu1 %vm350_vm2, %v8247_v63  ;;  %v8311_v63 = vld [vmem:[%s10000_s3 + $0x98] sm:$0xff]  }
 0x158   :  { %7441 = vmatmul.mubr.msk.bf16.gmra.mrb[4].mxu0 %vm350_vm2, %v8248_v0  ;;  %7146 = vmatprep.mubr.msk.bf16.mxu1 %vm350_vm2, %v8249_v5  ;;  %v8312_v0 = vld [vmem:[%s10001_s8 + $0x18] sm:$0xff]   ;;  %v8313_v5 = vld [vmem:[%s10000_s3 + $0xa0] sm:$0xff]  }
 0x159   :  { %7444 = vmatprep.mubr.msk.bf16.mxu0 %vm350_vm2, %v8250_v62  ;;  %v8314_v62 = vld [vmem:[%s10001_s8 + $0x20] sm:$0xff]  }
 0x15f   :  { %7147 = vmatmul.mubr.msk.bf16.gmra.mrb[40].mxu1 %vm350_vm2, %v8251_v1  ;;  %v8315_v1 = vld [vmem:[%s10000_s3 + $0xa8] sm:$0xff]  }
 0x160   :  { %7445 = vmatmul.mubr.msk.bf16.gmra.mrb[8].mxu0 %vm350_vm2, %v8252_v2  ;;  %7150 = vmatprep.mubr.msk.bf16.mxu1 %vm350_vm2, %v8253_v3  ;;  %v8316_v2 = vld [vmem:[%s10001_s8 + $0x28] sm:$0xff]   ;;  %v8317_v3 = vld [vmem:[%s10000_s3 + $0xb0] sm:$0xff]  }
 0x161   :  { %7448 = vmatprep.mubr.msk.bf16.mxu0 %vm350_vm2, %v8254_v4  ;;  %v8318_v4 = vld [vmem:[%s10001_s8 + $0x30] sm:$0xff]  }
 0x167   :  { %7151 = vmatmul.mubr.msk.bf16.gmra.mrb[44].mxu1 %vm350_vm2, %v8255_v6  ;;  %v8319_v6 = vld [vmem:[%s10000_s3 + $0xb8] sm:$0xff]  }
 0x168   :  { %7449 = vmatmul.mubr.msk.bf16.gmra.mrb[12].mxu0 %vm350_vm2, %v8256_v7  ;;  %7154 = vmatprep.mubr.msk.bf16.mxu1 %vm350_vm2, %v8257_v9  ;;  %v8320_v7 = vld [vmem:[%s10001_s8 + $0x38] sm:$0xff]   ;;  %v8321_v9 = vld [vmem:[%s10000_s3 + $0xc0] sm:$0xff]  }
 0x169   :  { %7452 = vmatprep.mubr.msk.bf16.mxu0 %vm350_vm2, %v8258_v10  ;;  %v8322_v10 = vld [vmem:[%s10001_s8 + $0x40] sm:$0xff]  }
 0x16f   :  { %7155 = vmatmul.mubr.msk.bf16.gmra.mrb[48].mxu1 %vm350_vm2, %v8259_v11  ;;  %v8323_v11 = vld [vmem:[%s10000_s3 + $0xc8] sm:$0xff]  }
 0x170   :  { %7453 = vmatmul.mubr.msk.bf16.gmra.mrb[16].mxu0 %vm350_vm2, %v8260_v12  ;;  %7158 = vmatprep.mubr.msk.bf16.mxu1 %vm350_vm2, %v8261_v13  ;;  %v8324_v12 = vld [vmem:[%s10001_s8 + $0x48] sm:$0xff]   ;;  %v8325_v13 = vld [vmem:[%s10000_s3 + $0xd0] sm:$0xff]  }
 0x171   :  { %7456 = vmatprep.mubr.msk.bf16.mxu0 %vm350_vm2, %v8262_v14  ;;  %v8326_v14 = vld [vmem:[%s10001_s8 + $0x50] sm:$0xff]  }
 0x177   :  { %7159 = vmatmul.mubr.msk.bf16.gmra.mrb[52].mxu1 %vm350_vm2, %v8263_v15  ;;  %v8327_v15 = vld [vmem:[%s10000_s3 + $0xd8] sm:$0xff]  }
 0x178   :  { %7457 = vmatmul.mubr.msk.bf16.gmra.mrb[20].mxu0 %vm350_vm2, %v8264_v16  ;;  %7162 = vmatprep.mubr.msk.bf16.mxu1 %vm350_vm2, %v8265_v17  ;;  %v8328_v16 = vld [vmem:[%s10001_s8 + $0x58] sm:$0xff]   ;;  %v8329_v17 = vld [vmem:[%s10000_s3 + $0xe0] sm:$0xff]  }
 0x179   :  { %7460 = vmatprep.mubr.msk.bf16.mxu0 %vm350_vm2, %v8266_v18  ;;  %v8330_v18 = vld [vmem:[%s10001_s8 + $0x60] sm:$0xff]  }
 0x17f   :  { %7163 = vmatmul.mubr.msk.bf16.gmra.mrb[56].mxu1 %vm350_vm2, %v8267_v19  ;;  %v8331_v19 = vld [vmem:[%s10000_s3 + $0xe8] sm:$0xff]  }
 0x180   :  { %7461 = vmatmul.mubr.msk.bf16.gmra.mrb[24].mxu0 %vm350_vm2, %v8268_v20  ;;  %7166 = vmatprep.mubr.msk.bf16.mxu1 %vm350_vm2, %v8269_v21  ;;  %v8332_v20 = vld [vmem:[%s10001_s8 + $0x68] sm:$0xff]   ;;  %v8333_v21 = vld [vmem:[%s10000_s3 + $0xf0] sm:$0xff]  }
 0x181   :  { %7464 = vmatprep.mubr.msk.bf16.mxu0 %vm350_vm2, %v8270_v22  ;;  %v8334_v22 = vld [vmem:[%s10001_s8 + $0x70] sm:$0xff]  }
 0x187   :  { %7167 = vmatmul.mubr.msk.bf16.gmra.mrb[60].mxu1 %vm350_vm2, %v8271_v23  ;;  %v8335_v23 = vld [vmem:[%s10000_s3 + $0xf8] sm:$0xff]  }
 0x188   :  { %7465 = vmatmul.mubr.msk.bf16.gmra.mrb[28].mxu0 %vm350_vm2, %v8272_v24  ;;  %7172 = vmatprep.mubr.msk.bf16.mxu1 %vm350_vm2, %v8273_v25  ;;  %v8336_v24 = vld [vmem:[%s10001_s8 + $0x78] sm:$0xff]   ;;  %v8337_v25 = vld [vmem:[%s9987_s4 + $0x80] sm:$0xff]  }
 0x189   :  { %7468 = vmatprep.mubr.msk.bf16.mxu0 %vm350_vm2, %v8274_v26  ;;  %v8338_v26 = vld [vmem:[%s10001_s8 + $0x80] sm:$0xff]  }
 0x18f   :  { %7173 = vmatmul.mubr.msk.bf16.vlgmr.msra.gmra.mrb[0].mxu1 %vm350_vm2, %v8275_v27  ;;  %v8339_v27 = vld [vmem:[%s9987_s4 + $0x88] sm:$0xff]  }
 0x190   :  { %7469 = vmatmul.mubr.msk.bf16.gmra.mrb[32].mxu0 %vm350_vm2, %v8276_v29  ;;  %7567 = vmatpush3.bf16.msra.mxu1 %v8481_v8  ;;  %v8282_v8 = vld [vmem:[%s9998_s7 + $0xa0] sm:$0xff]   ;;  %v8340_v29 = vld [vmem:[%s10001_s8 + $0x88] sm:$0xff]  }
 0x191   :  { %7176 = vmatprep.mubr.msk.bf16.mxu1 %vm350_vm2, %v8277_v30  ;;  %7472 = vmatprep.mubr.msk.bf16.mxu0 %vm350_vm2, %v8278_v31  ;;  %v8341_v30 = vld [vmem:[%s9987_s4 + $0x90] sm:$0xff]  }
 0x192   :  { %v8342_v31 = vld [vmem:[%s10001_s8 + $0x90] sm:$0xff]  }
 0x197   :  { %7177 = vmatmul.mubr.msk.bf16.gmra.mrb[4].mxu1 %vm350_vm2, %v8279_v32  ;;  %v8343_v32 = vld [vmem:[%s9987_s4 + $0x98] sm:$0xff]  }
 0x198   :  { %7473 = vmatmul.mubr.msk.bf16.gmra.mrb[36].mxu0 %vm350_vm2, %v8280_v33  ;;  %7180 = vmatprep.mubr.msk.bf16.mxu1 %vm350_vm2, %v8281_v28  ;;  %v8344_v33 = vld [vmem:[%s10001_s8 + $0x98] sm:$0xff]   ;;  %v8345_v28 = vld [vmem:[%s9987_s4 + $0xa0] sm:$0xff]  }
 0x199   :  { %7476 = vmatprep.mubr.msk.bf16.mxu0 %vm350_vm2, %v8282_v8  ;;  %v8346_v8 = vld [vmem:[%s10001_s8 + $0xa0] sm:$0xff]  }
 0x19f   :  { %7181 = vmatmul.mubr.msk.bf16.gmra.mrb[8].mxu1 %vm350_vm2, %v8283_v34  ;;  %v8347_v34 = vld [vmem:[%s9987_s4 + $0xa8] sm:$0xff]  }
 0x1a0   :  { %7477 = vmatmul.mubr.msk.bf16.gmra.mrb[40].mxu0 %vm350_vm2, %v8284_v35  ;;  %7184 = vmatprep.mubr.msk.bf16.mxu1 %vm350_vm2, %v8285_v36  ;;  %v8348_v35 = vld [vmem:[%s10001_s8 + $0xa8] sm:$0xff]   ;;  %v8349_v36 = vld [vmem:[%s9987_s4 + $0xb0] sm:$0xff]  }
 0x1a1   :  { %7480 = vmatprep.mubr.msk.bf16.mxu0 %vm350_vm2, %v8286_v37  ;;  %v8350_v37 = vld [vmem:[%s10001_s8 + $0xb0] sm:$0xff]  }
 0x1a7   :  { %7185 = vmatmul.mubr.msk.bf16.gmra.mrb[12].mxu1 %vm350_vm2, %v8287_v38  ;;  %v8351_v38 = vld [vmem:[%s9987_s4 + $0xb8] sm:$0xff]  }
 0x1a8   :  { %7481 = vmatmul.mubr.msk.bf16.gmra.mrb[44].mxu0 %vm350_vm2, %v8288_v39  ;;  %7188 = vmatprep.mubr.msk.bf16.mxu1 %vm350_vm2, %v8289_v40  ;;  %v8352_v39 = vld [vmem:[%s10001_s8 + $0xb8] sm:$0xff]   ;;  %v8353_v40 = vld [vmem:[%s9987_s4 + $0xc0] sm:$0xff]  }
 0x1a9   :  { %7484 = vmatprep.mubr.msk.bf16.mxu0 %vm350_vm2, %v8290_v41  ;;  %v8354_v41 = vld [vmem:[%s10001_s8 + $0xc0] sm:$0xff]  }
 0x1af   :  { %7189 = vmatmul.mubr.msk.bf16.gmra.mrb[16].mxu1 %vm350_vm2, %v8291_v42  ;;  %v8355_v42 = vld [vmem:[%s9987_s4 + $0xc8] sm:$0xff]  }
 0x1b0   :  { %7485 = vmatmul.mubr.msk.bf16.gmra.mrb[48].mxu0 %vm350_vm2, %v8292_v43  ;;  %7192 = vmatprep.mubr.msk.bf16.mxu1 %vm350_vm2, %v8293_v44  ;;  %v8356_v43 = vld [vmem:[%s10001_s8 + $0xc8] sm:$0xff]   ;;  %v8357_v44 = vld [vmem:[%s9987_s4 + $0xd0] sm:$0xff]  }
 0x1b1   :  { %7488 = vmatprep.mubr.msk.bf16.mxu0 %vm350_vm2, %v8294_v45  ;;  %v8358_v45 = vld [vmem:[%s10001_s8 + $0xd0] sm:$0xff]  }
 0x1b7   :  { %7193 = vmatmul.mubr.msk.bf16.gmra.mrb[20].mxu1 %vm350_vm2, %v8295_v46  ;;  %v8359_v46 = vld [vmem:[%s9987_s4 + $0xd8] sm:$0xff]  }
 0x1b8   :  { %7489 = vmatmul.mubr.msk.bf16.gmra.mrb[52].mxu0 %vm350_vm2, %v8296_v47  ;;  %7196 = vmatprep.mubr.msk.bf16.mxu1 %vm350_vm2, %v8297_v48  ;;  %v8360_v47 = vld [vmem:[%s10001_s8 + $0xd8] sm:$0xff]   ;;  %v8361_v48 = vld [vmem:[%s9987_s4 + $0xe0] sm:$0xff]  }
 0x1b9   :  { %7492 = vmatprep.mubr.msk.bf16.mxu0 %vm350_vm2, %v8298_v49  ;;  %v8362_v49 = vld [vmem:[%s10001_s8 + $0xe0] sm:$0xff]  }
 0x1bf   :  { %7197 = vmatmul.mubr.msk.bf16.gmra.mrb[24].mxu1 %vm350_vm2, %v8299_v50  ;;  %v8363_v50 = vld [vmem:[%s9987_s4 + $0xe8] sm:$0xff]  }
 0x1c0   :  { %7493 = vmatmul.mubr.msk.bf16.gmra.mrb[56].mxu0 %vm350_vm2, %v8300_v51  ;;  %7200 = vmatprep.mubr.msk.bf16.mxu1 %vm350_vm2, %v8301_v52  ;;  %v8364_v51 = vld [vmem:[%s10001_s8 + $0xe8] sm:$0xff]   ;;  %v8365_v52 = vld [vmem:[%s9987_s4 + $0xf0] sm:$0xff]  }
 0x1c1   :  { %7496 = vmatprep.mubr.msk.bf16.mxu0 %vm350_vm2, %v8302_v53  ;;  %v8366_v53 = vld [vmem:[%s10001_s8 + $0xf0] sm:$0xff]  }
 0x1c7   :  { %7201 = vmatmul.mubr.msk.bf16.gmra.mrb[28].mxu1 %vm350_vm2, %v8303_v54  ;;  %v8367_v54 = vld [vmem:[%s9987_s4 + $0xf8] sm:$0xff]  }
 0x1c8   :  { %7497 = vmatmul.mubr.msk.bf16.gmra.mrb[60].mxu0 %vm350_vm2, %v8304_v55  ;;  %7204 = vmatprep.mubr.msk.bf16.mxu1 %vm350_vm2, %v8305_v56  ;;  %v8368_v55 = vld [vmem:[%s10001_s8 + $0xf8] sm:$0xff]  }
 0x1c9   :  { %7502 = vmatprep.mubr.msk.bf16.mxu0 %vm350_vm2, %v8306_v57 }
 0x1cf   :  { %7205 = vmatmul.mubr.msk.bf16.gmra.mrb[32].mxu1 %vm350_vm2, %v8307_v58 }
 0x1d0   :  { %7503 = vmatmul.mubr.msk.bf16.vlgmr.msra.gmra.mrb[0].mxu0 %vm350_vm2, %v8308_v59  ;;  %7208 = vmatprep.mubr.msk.bf16.mxu1 %vm350_vm2, %v8309_v60 }
 0x1d1   :  { %7506 = vmatprep.mubr.msk.bf16.mxu0 %vm350_vm2, %v8310_v61 }
 0x1d7   :  { %7209 = vmatmul.mubr.msk.bf16.gmra.mrb[36].mxu1 %vm350_vm2, %v8311_v63 }
 0x1d8   :  { %7507 = vmatmul.mubr.msk.bf16.gmra.mrb[4].mxu0 %vm350_vm2, %v8312_v0  ;;  %7212 = vmatprep.mubr.msk.bf16.mxu1 %vm350_vm2, %v8313_v5 }
 0x1d9   :  { %7510 = vmatprep.mubr.msk.bf16.mxu0 %vm350_vm2, %v8314_v62 }
 0x1df   :  { %7213 = vmatmul.mubr.msk.bf16.gmra.mrb[40].mxu1 %vm350_vm2, %v8315_v1 }
 0x1e0   :  { %7511 = vmatmul.mubr.msk.bf16.gmra.mrb[8].mxu0 %vm350_vm2, %v8316_v2  ;;  %7216 = vmatprep.mubr.msk.bf16.mxu1 %vm350_vm2, %v8317_v3 }
 0x1e1   :  { %7514 = vmatprep.mubr.msk.bf16.mxu0 %vm350_vm2, %v8318_v4 }
 0x1e7   :  { %7217 = vmatmul.mubr.msk.bf16.gmra.mrb[44].mxu1 %vm350_vm2, %v8319_v6 }
 0x1e8   :  { %7515 = vmatmul.mubr.msk.bf16.gmra.mrb[12].mxu0 %vm350_vm2, %v8320_v7  ;;  %7220 = vmatprep.mubr.msk.bf16.mxu1 %vm350_vm2, %v8321_v9 }
 0x1e9   :  { %7518 = vmatprep.mubr.msk.bf16.mxu0 %vm350_vm2, %v8322_v10 }
 0x1ef   :  { %7221 = vmatmul.mubr.msk.bf16.gmra.mrb[48].mxu1 %vm350_vm2, %v8323_v11 }
 0x1f0   :  { %7519 = vmatmul.mubr.msk.bf16.gmra.mrb[16].mxu0 %vm350_vm2, %v8324_v12  ;;  %7224 = vmatprep.mubr.msk.bf16.mxu1 %vm350_vm2, %v8325_v13 }
 0x1f1   :  { %7522 = vmatprep.mubr.msk.bf16.mxu0 %vm350_vm2, %v8326_v14 }
 0x1f7   :  { %7225 = vmatmul.mubr.msk.bf16.gmra.mrb[52].mxu1 %vm350_vm2, %v8327_v15 }
 0x1f8   :  { %7523 = vmatmul.mubr.msk.bf16.gmra.mrb[20].mxu0 %vm350_vm2, %v8328_v16  ;;  %7228 = vmatprep.mubr.msk.bf16.mxu1 %vm350_vm2, %v8329_v17 }
 0x1f9   :  { %7526 = vmatprep.mubr.msk.bf16.mxu0 %vm350_vm2, %v8330_v18 }
 0x1ff   :  { %7229 = vmatmul.mubr.msk.bf16.gmra.mrb[56].mxu1 %vm350_vm2, %v8331_v19 }
 0x200   :  { %7527 = vmatmul.mubr.msk.bf16.gmra.mrb[24].mxu0 %vm350_vm2, %v8332_v20  ;;  %7232 = vmatprep.mubr.msk.bf16.mxu1 %vm350_vm2, %v8333_v21 }
 0x201   :  { %7530 = vmatprep.mubr.msk.bf16.mxu0 %vm350_vm2, %v8334_v22 }
 0x207   :  { %7233 = vmatmul.mubr.msk.bf16.gmra.mrb[60].mxu1 %vm350_vm2, %v8335_v23 }
 0x208   :  { %7531 = vmatmul.mubr.msk.bf16.gmra.mrb[28].mxu0 %vm350_vm2, %v8336_v24  ;;  %7270 = vmatprep.mubr.msk.bf16.mxu1 %vm350_vm2, %v8337_v25 }
 0x209   :  { %7534 = vmatprep.mubr.msk.bf16.mxu0 %vm350_vm2, %v8338_v26 }
 0x20f   :  { %7271 = vmatmul.mubr.msk.bf16.vlgmr.msra.gmra.mrb[32].mxu1 %vm350_vm2, %v8339_v27 }
 0x210   :  { %7535 = vmatmul.mubr.msk.bf16.gmra.mrb[32].mxu0 %vm350_vm2, %v8340_v29  ;;  %7274 = vmatprep.mubr.msk.bf16.mxu1 %vm350_vm2, %v8341_v30 }
 0x211   :  { %7538 = vmatprep.mubr.msk.bf16.mxu0 %vm350_vm2, %v8342_v31 }
 0x217   :  { %7275 = vmatmul.mubr.msk.bf16.gmra.mrb[36].mxu1 %vm350_vm2, %v8343_v32 }
 0x218   :  { %7539 = vmatmul.mubr.msk.bf16.gmra.mrb[36].mxu0 %vm350_vm2, %v8344_v33  ;;  %7278 = vmatprep.mubr.msk.bf16.mxu1 %vm350_vm2, %v8345_v28 }
 0x219   :  { %7542 = vmatprep.mubr.msk.bf16.mxu0 %vm350_vm2, %v8346_v8 }
 0x21f   :  { %7279 = vmatmul.mubr.msk.bf16.gmra.mrb[40].mxu1 %vm350_vm2, %v8347_v34 }
 0x220   :  { %7543 = vmatmul.mubr.msk.bf16.gmra.mrb[40].mxu0 %vm350_vm2, %v8348_v35  ;;  %7282 = vmatprep.mubr.msk.bf16.mxu1 %vm350_vm2, %v8349_v36 }
 0x221   :  { %7546 = vmatprep.mubr.msk.bf16.mxu0 %vm350_vm2, %v8350_v37 }
 0x227   :  { %7283 = vmatmul.mubr.msk.bf16.gmra.mrb[44].mxu1 %vm350_vm2, %v8351_v38 }
 0x228   :  { %7547 = vmatmul.mubr.msk.bf16.gmra.mrb[44].mxu0 %vm350_vm2, %v8352_v39  ;;  %7286 = vmatprep.mubr.msk.bf16.mxu1 %vm350_vm2, %v8353_v40 }
 0x229   :  { %7550 = vmatprep.mubr.msk.bf16.mxu0 %vm350_vm2, %v8354_v41 }
 0x22f   :  { %7287 = vmatmul.mubr.msk.bf16.gmra.mrb[48].mxu1 %vm350_vm2, %v8355_v42 }
 0x230   :  { %7551 = vmatmul.mubr.msk.bf16.gmra.mrb[48].mxu0 %vm350_vm2, %v8356_v43  ;;  %7290 = vmatprep.mubr.msk.bf16.mxu1 %vm350_vm2, %v8357_v44 }
 0x231   :  { %7554 = vmatprep.mubr.msk.bf16.mxu0 %vm350_vm2, %v8358_v45 }
 0x237   :  { %7291 = vmatmul.mubr.msk.bf16.gmra.mrb[52].mxu1 %vm350_vm2, %v8359_v46 }
 0x238   :  { %7555 = vmatmul.mubr.msk.bf16.gmra.mrb[52].mxu0 %vm350_vm2, %v8360_v47  ;;  %7294 = vmatprep.mubr.msk.bf16.mxu1 %vm350_vm2, %v8361_v48 }
 0x239   :  { %7558 = vmatprep.mubr.msk.bf16.mxu0 %vm350_vm2, %v8362_v49 }
 0x23f   :  { %7295 = vmatmul.mubr.msk.bf16.gmra.mrb[56].mxu1 %vm350_vm2, %v8363_v50 }
 0x240   :  { %7559 = vmatmul.mubr.msk.bf16.gmra.mrb[56].mxu0 %vm350_vm2, %v8364_v51  ;;  %7298 = vmatprep.mubr.msk.bf16.mxu1 %vm350_vm2, %v8365_v52 }
 0x241   :  { %7562 = vmatprep.mubr.msk.bf16.mxu0 %vm350_vm2, %v8366_v53 }
 0x247   :  { %7299 = vmatmul.mubr.msk.bf16.gmra.mrb[60].mxu1 %vm350_vm2, %v8367_v54 }
 0x248   :  { %7563 = vmatmul.mubr.msk.bf16.gmra.mrb[60].mxu0 %vm350_vm2, %v8368_v55 }
 0x262   :  { %v7174_v56 = vpop.f32.mrb[0].mxu1 }
 0x263   :  { %v2326_v57 = vpop.f32.mrb[1].mxu1 }
 0x264   :  { %v7175_v58 = vpop.f32.mrb[2].mxu1 }
 0x265   :  { %v2329_v59 = vpop.f32.mrb[3].mxu1 }
 0x26a   :  { %v7178_v60 = vpop.f32.mrb[4].mxu1 }
 0x26b   :  { %v2342_v61 = vpop.f32.mrb[5].mxu1 }
 0x26c   :  { %v7179_v63 = vpop.f32.mrb[6].mxu1 }
 0x26d   :  { %v2345_v0 = vpop.f32.mrb[7].mxu1 }
 0x272   :  { %v7182_v5 = vpop.f32.mrb[8].mxu1 }
 0x273   :  { %v2358_v62 = vpop.f32.mrb[9].mxu1 }
 0x274   :  { %v7183_v1 = vpop.f32.mrb[10].mxu1 }
 0x275   :  { %v2361_v2 = vpop.f32.mrb[11].mxu1 }
 0x27a   :  { %v7186_v3 = vpop.f32.mrb[12].mxu1 }
 0x27b   :  { %v2374_v4 = vpop.f32.mrb[13].mxu1 }
 0x27c   :  { %v7187_v6 = vpop.f32.mrb[14].mxu1 }
 0x27d   :  { %v9677_v7 = vpop.f32.mrb[15].mxu1 }
 0x282   :  { %v9679_v9 = vpop.f32.mrb[16].mxu1 }
 0x283   :  { %v9681_v10 = vpop.f32.mrb[17].mxu1 }
 0x284   :  { %v9683_v11 = vpop.f32.mrb[18].mxu1 }
 0x285   :  { %v9685_v12 = vpop.f32.mrb[19].mxu1 }
 0x28a   :  { %v9687_v13 = vpop.f32.mrb[20].mxu1 }
 0x28b   :  { %v9689_v14 = vpop.f32.mrb[21].mxu1 }
 0x28c   :  { %v9691_v15 = vpop.f32.mrb[22].mxu1 }
 0x28d   :  { %v9693_v16 = vpop.f32.mrb[23].mxu1 }
 0x292   :  { %v9695_v17 = vpop.f32.mrb[24].mxu1 }
 0x293   :  { %v9697_v18 = vpop.f32.mrb[25].mxu1 }
 0x294   :  { %v9699_v19 = vpop.f32.mrb[26].mxu1 }
 0x295   :  { %v9701_v20 = vpop.f32.mrb[27].mxu1 }
 0x29a   :  { %v9703_v21 = vpop.f32.mrb[28].mxu1 }
 0x29b   :  { %v9705_v22 = vpop.f32.mrb[29].mxu1 }
 0x29c   :  { %v9707_v23 = vpop.f32.mrb[30].mxu1 }
 0x29d   :  { %v9709_v24 = vpop.f32.mrb[31].mxu1 }
 0x2a3   :  { %v7504_v25 = vpop.f32.mrb[0].mxu0 }
 0x2a4   :  { %v7568_v26 = vadd.f32 %v7504_v25, %v7174_v56  ;;  %v5711_v27 = vpop.f32.mrb[1].mxu0 }
 0x2a5   :  { %v7569_v29 = vadd.f32 %v5711_v27, %v2326_v57  ;;  %v7505_v30 = vpop.f32.mrb[2].mxu0 }
 0x2a6   :  { %6033 = vst.msk [vmem:[%s10002_s18 + $0x10] sm:$0xff] %vm6030_vm3, %v7568_v26  ;;  %v7570_v31 = vadd.f32 %v7505_v30, %v7175_v58  ;;  %v5714_v32 = vpop.f32.mrb[3].mxu0 }
 0x2a7   :  { %6031 = vst.msk [vmem:[%s10002_s18] sm:$0xff] %vm6030_vm3, %v7569_v29  ;;  %v7571_v33 = vadd.f32 %v5714_v32, %v2329_v59 }
 0x2a8   :  { %6034 = vst.msk [vmem:[%s10002_s18 + $0x18] sm:$0xff] %vm6030_vm3, %v7570_v31 }
 0x2a9   :  { %6032 = vst.msk [vmem:[%s10002_s18 + $0x8] sm:$0xff] %vm6030_vm3, %v7571_v33 }
 0x2ab   :  { %v7508_v28 = vpop.f32.mrb[4].mxu0 }
 0x2ac   :  { %v7572_v8 = vadd.f32 %v7508_v28, %v7178_v60  ;;  %v5727_v34 = vpop.f32.mrb[5].mxu0 }
 0x2ad   :  { %v7573_v35 = vadd.f32 %v5727_v34, %v2342_v61  ;;  %v7509_v36 = vpop.f32.mrb[6].mxu0 }
 0x2ae   :  { %6037 = vst.msk [vmem:[%s10002_s18 + $0x30] sm:$0xff] %vm6030_vm3, %v7572_v8  ;;  %v7574_v37 = vadd.f32 %v7509_v36, %v7179_v63  ;;  %v5730_v38 = vpop.f32.mrb[7].mxu0 }
 0x2af   :  { %6035 = vst.msk [vmem:[%s10002_s18 + $0x20] sm:$0xff] %vm6030_vm3, %v7573_v35  ;;  %v7575_v39 = vadd.f32 %v5730_v38, %v2345_v0 }
 0x2b0   :  { %6038 = vst.msk [vmem:[%s10002_s18 + $0x38] sm:$0xff] %vm6030_vm3, %v7574_v37 }
 0x2b1   :  { %6036 = vst.msk [vmem:[%s10002_s18 + $0x28] sm:$0xff] %vm6030_vm3, %v7575_v39 }
 0x2b3   :  { %v7512_v40 = vpop.f32.mrb[8].mxu0 }
 0x2b4   :  { %v7576_v41 = vadd.f32 %v7512_v40, %v7182_v5  ;;  %v5743_v42 = vpop.f32.mrb[9].mxu0 }
 0x2b5   :  { %v7577_v43 = vadd.f32 %v5743_v42, %v2358_v62  ;;  %v7513_v44 = vpop.f32.mrb[10].mxu0 }
 0x2b6   :  { %6041 = vst.msk [vmem:[%s10002_s18 + $0x50] sm:$0xff] %vm6030_vm3, %v7576_v41  ;;  %v7578_v45 = vadd.f32 %v7513_v44, %v7183_v1  ;;  %v5746_v46 = vpop.f32.mrb[11].mxu0 }
 0x2b7   :  { %6039 = vst.msk [vmem:[%s10002_s18 + $0x40] sm:$0xff] %vm6030_vm3, %v7577_v43  ;;  %v7579_v47 = vadd.f32 %v5746_v46, %v2361_v2 }
 0x2b8   :  { %6042 = vst.msk [vmem:[%s10002_s18 + $0x58] sm:$0xff] %vm6030_vm3, %v7578_v45 }
 0x2b9   :  { %6040 = vst.msk [vmem:[%s10002_s18 + $0x48] sm:$0xff] %vm6030_vm3, %v7579_v47 }
 0x2bb   :  { %v7516_v48 = vpop.f32.mrb[12].mxu0 }
 0x2bc   :  { %v7580_v49 = vadd.f32 %v7516_v48, %v7186_v3  ;;  %v5759_v50 = vpop.f32.mrb[13].mxu0 }
 0x2bd   :  { %v7581_v51 = vadd.f32 %v5759_v50, %v2374_v4  ;;  %v7517_v52 = vpop.f32.mrb[14].mxu0 }
 0x2be   :  { %6045 = vst.msk [vmem:[%s10002_s18 + $0x70] sm:$0xff] %vm6030_vm3, %v7580_v49  ;;  %v7582_v53 = vadd.f32 %v7517_v52, %v7187_v6  ;;  %v5762_v54 = vpop.f32.mrb[15].mxu0 }
 0x2bf   :  { %6043 = vst.msk [vmem:[%s10002_s18 + $0x60] sm:$0xff] %vm6030_vm3, %v7581_v51  ;;  %v7583_v55 = vadd.f32 %v5762_v54, %v9677_v7 }
 0x2c0   :  { %6046 = vst.msk [vmem:[%s10002_s18 + $0x78] sm:$0xff] %vm6030_vm3, %v7582_v53 }
 0x2c1   :  { %6044 = vst.msk [vmem:[%s10002_s18 + $0x68] sm:$0xff] %vm6030_vm3, %v7583_v55 }
 0x2c3   :  { %v7520_v56 = vpop.f32.mrb[16].mxu0 }
 0x2c4   :  { %v7584_v57 = vadd.f32 %v7520_v56, %v9679_v9  ;;  %v5775_v58 = vpop.f32.mrb[17].mxu0 }
 0x2c5   :  { %v7585_v59 = vadd.f32 %v5775_v58, %v9681_v10  ;;  %v7521_v60 = vpop.f32.mrb[18].mxu0 }
 0x2c6   :  { %6049 = vst.msk [vmem:[%s10002_s18 + $0x90] sm:$0xff] %vm6030_vm3, %v7584_v57  ;;  %v7586_v61 = vadd.f32 %v7521_v60, %v9683_v11  ;;  %v5778_v63 = vpop.f32.mrb[19].mxu0 }
 0x2c7   :  { %6047 = vst.msk [vmem:[%s10002_s18 + $0x80] sm:$0xff] %vm6030_vm3, %v7585_v59  ;;  %v7587_v0 = vadd.f32 %v5778_v63, %v9685_v12 }
 0x2c8   :  { %6050 = vst.msk [vmem:[%s10002_s18 + $0x98] sm:$0xff] %vm6030_vm3, %v7586_v61 }
 0x2c9   :  { %6048 = vst.msk [vmem:[%s10002_s18 + $0x88] sm:$0xff] %vm6030_vm3, %v7587_v0 }
 0x2cb   :  { %v7524_v5 = vpop.f32.mrb[20].mxu0 }
 0x2cc   :  { %v7588_v62 = vadd.f32 %v7524_v5, %v9687_v13  ;;  %v5791_v1 = vpop.f32.mrb[21].mxu0 }
 0x2cd   :  { %v7589_v2 = vadd.f32 %v5791_v1, %v9689_v14  ;;  %v7525_v3 = vpop.f32.mrb[22].mxu0 }
 0x2ce   :  { %6053 = vst.msk [vmem:[%s10002_s18 + $0xb0] sm:$0xff] %vm6030_vm3, %v7588_v62  ;;  %v7590_v4 = vadd.f32 %v7525_v3, %v9691_v15  ;;  %v5794_v6 = vpop.f32.mrb[23].mxu0 }
 0x2cf   :  { %6051 = vst.msk [vmem:[%s10002_s18 + $0xa0] sm:$0xff] %vm6030_vm3, %v7589_v2  ;;  %v7591_v7 = vadd.f32 %v5794_v6, %v9693_v16 }
 0x2d0   :  { %6054 = vst.msk [vmem:[%s10002_s18 + $0xb8] sm:$0xff] %vm6030_vm3, %v7590_v4 }
 0x2d1   :  { %6052 = vst.msk [vmem:[%s10002_s18 + $0xa8] sm:$0xff] %vm6030_vm3, %v7591_v7 }
 0x2d3   :  { %v7528_v9 = vpop.f32.mrb[24].mxu0 }
 0x2d4   :  { %v7592_v10 = vadd.f32 %v7528_v9, %v9695_v17  ;;  %v5807_v11 = vpop.f32.mrb[25].mxu0 }
 0x2d5   :  { %v7593_v12 = vadd.f32 %v5807_v11, %v9697_v18  ;;  %v7529_v13 = vpop.f32.mrb[26].mxu0 }
 0x2d6   :  { %6057 = vst.msk [vmem:[%s10002_s18 + $0xd0] sm:$0xff] %vm6030_vm3, %v7592_v10  ;;  %v7594_v14 = vadd.f32 %v7529_v13, %v9699_v19  ;;  %v5810_v15 = vpop.f32.mrb[27].mxu0 }
 0x2d7   :  { %6055 = vst.msk [vmem:[%s10002_s18 + $0xc0] sm:$0xff] %vm6030_vm3, %v7593_v12  ;;  %v7595_v16 = vadd.f32 %v5810_v15, %v9701_v20 }
 0x2d8   :  { %6058 = vst.msk [vmem:[%s10002_s18 + $0xd8] sm:$0xff] %vm6030_vm3, %v7594_v14 }
 0x2d9   :  { %6056 = vst.msk [vmem:[%s10002_s18 + $0xc8] sm:$0xff] %vm6030_vm3, %v7595_v16 }
 0x2db   :  { %v7532_v17 = vpop.f32.mrb[28].mxu0 }
 0x2dc   :  { %v7596_v18 = vadd.f32 %v7532_v17, %v9703_v21  ;;  %v5823_v19 = vpop.f32.mrb[29].mxu0 }
 0x2dd   :  { %v7597_v25 = vadd.f32 %v5823_v19, %v9705_v22  ;;  %v7533_v26 = vpop.f32.mrb[30].mxu0 }
 0x2de   :  { %6061 = vst.msk [vmem:[%s10002_s18 + $0xf0] sm:$0xff] %vm6030_vm3, %v7596_v18  ;;  %v7598_v20 = vadd.f32 %v7533_v26, %v9707_v23  ;;  %v5826_v27 = vpop.f32.mrb[31].mxu0 }
 0x2df   :  { %6059 = vst.msk [vmem:[%s10002_s18 + $0xe0] sm:$0xff] %vm6030_vm3, %v7597_v25  ;;  %v7599_v29 = vadd.f32 %v5826_v27, %v9709_v24 }
 0x2e0   :  { %6062 = vst.msk [vmem:[%s10002_s18 + $0xf8] sm:$0xff] %vm6030_vm3, %v7598_v20 }
 0x2e1   :  { %6060 = vst.msk [vmem:[%s10002_s18 + $0xe8] sm:$0xff] %vm6030_vm3, %v7599_v29 }
 0x2e2   :  { %v7272_v21 = vpop.f32.mrb[32].mxu1 }
 0x2e3   :  { %v7536_v22 = vpop.f32.mrb[32].mxu0  ;;  %v3131_v30 = vpop.f32.mrb[33].mxu1 }
 0x2e4   :  { %v7600_v23 = vadd.f32 %v7536_v22, %v7272_v21  ;;  %v5839_v31 = vpop.f32.mrb[33].mxu0  ;;  %v7273_v33 = vpop.f32.mrb[34].mxu1 }
 0x2e5   :  { %v7601_v32 = vadd.f32 %v5839_v31, %v3131_v30  ;;  %v7537_v28 = vpop.f32.mrb[34].mxu0  ;;  %v3134_v8 = vpop.f32.mrb[35].mxu1 }
 0x2e6   :  { %6065 = vst.msk [vmem:[%s10002_s18 + $0x110] sm:$0xff] %vm6030_vm3, %v7600_v23  ;;  %v7602_v24 = vadd.f32 %v7537_v28, %v7273_v33  ;;  %v5842_v34 = vpop.f32.mrb[35].mxu0 }
 0x2e7   :  { %6063 = vst.msk [vmem:[%s10002_s18 + $0x100] sm:$0xff] %vm6030_vm3, %v7601_v32  ;;  %v7603_v35 = vadd.f32 %v5842_v34, %v3134_v8 }
 0x2e8   :  { %6066 = vst.msk [vmem:[%s10002_s18 + $0x118] sm:$0xff] %vm6030_vm3, %v7602_v24 }
 0x2e9   :  { %6064 = vst.msk [vmem:[%s10002_s18 + $0x108] sm:$0xff] %vm6030_vm3, %v7603_v35 }
 0x2ea   :  { %v7276_v36 = vpop.f32.mrb[36].mxu1 }
 0x2eb   :  { %v7540_v37 = vpop.f32.mrb[36].mxu0  ;;  %v3147_v39 = vpop.f32.mrb[37].mxu1 }
 0x2ec   :  { %v7604_v38 = vadd.f32 %v7540_v37, %v7276_v36  ;;  %v5855_v40 = vpop.f32.mrb[37].mxu0  ;;  %v7277_v42 = vpop.f32.mrb[38].mxu1 }
 0x2ed   :  { %v7605_v41 = vadd.f32 %v5855_v40, %v3147_v39  ;;  %v7541_v43 = vpop.f32.mrb[38].mxu0  ;;  %v3150_v45 = vpop.f32.mrb[39].mxu1 }
 0x2ee   :  { %6069 = vst.msk [vmem:[%s10002_s18 + $0x130] sm:$0xff] %vm6030_vm3, %v7604_v38  ;;  %v7606_v44 = vadd.f32 %v7541_v43, %v7277_v42  ;;  %v5858_v46 = vpop.f32.mrb[39].mxu0 }
 0x2ef   :  { %6067 = vst.msk [vmem:[%s10002_s18 + $0x120] sm:$0xff] %vm6030_vm3, %v7605_v41  ;;  %v7607_v47 = vadd.f32 %v5858_v46, %v3150_v45 }
 0x2f0   :  { %6070 = vst.msk [vmem:[%s10002_s18 + $0x138] sm:$0xff] %vm6030_vm3, %v7606_v44 }
 0x2f1   :  { %6068 = vst.msk [vmem:[%s10002_s18 + $0x128] sm:$0xff] %vm6030_vm3, %v7607_v47 }
 0x2f2   :  { %v7280_v48 = vpop.f32.mrb[40].mxu1 }
 0x2f3   :  { %v7544_v49 = vpop.f32.mrb[40].mxu0  ;;  %v3163_v51 = vpop.f32.mrb[41].mxu1 }
 0x2f4   :  { %v7608_v50 = vadd.f32 %v7544_v49, %v7280_v48  ;;  %v5871_v52 = vpop.f32.mrb[41].mxu0  ;;  %v7281_v54 = vpop.f32.mrb[42].mxu1 }
 0x2f5   :  { %v7609_v53 = vadd.f32 %v5871_v52, %v3163_v51  ;;  %v7545_v55 = vpop.f32.mrb[42].mxu0  ;;  %v3166_v57 = vpop.f32.mrb[43].mxu1 }
 0x2f6   :  { %6073 = vst.msk [vmem:[%s10002_s18 + $0x150] sm:$0xff] %vm6030_vm3, %v7608_v50  ;;  %v7610_v56 = vadd.f32 %v7545_v55, %v7281_v54  ;;  %v5874_v58 = vpop.f32.mrb[43].mxu0 }
 0x2f7   :  { %6071 = vst.msk [vmem:[%s10002_s18 + $0x140] sm:$0xff] %vm6030_vm3, %v7609_v53  ;;  %v7611_v59 = vadd.f32 %v5874_v58, %v3166_v57 }
 0x2f8   :  { %6074 = vst.msk [vmem:[%s10002_s18 + $0x158] sm:$0xff] %vm6030_vm3, %v7610_v56 }
 0x2f9   :  { %6072 = vst.msk [vmem:[%s10002_s18 + $0x148] sm:$0xff] %vm6030_vm3, %v7611_v59 }
 0x2fa   :  { %v7284_v60 = vpop.f32.mrb[44].mxu1 }
 0x2fb   :  { %v7548_v61 = vpop.f32.mrb[44].mxu0  ;;  %v3179_v0 = vpop.f32.mrb[45].mxu1 }
 0x2fc   :  { %v7612_v63 = vadd.f32 %v7548_v61, %v7284_v60  ;;  %v5887_v5 = vpop.f32.mrb[45].mxu0  ;;  %v7285_v1 = vpop.f32.mrb[46].mxu1 }
 0x2fd   :  { %v7613_v62 = vadd.f32 %v5887_v5, %v3179_v0  ;;  %v7549_v2 = vpop.f32.mrb[46].mxu0  ;;  %v3182_v4 = vpop.f32.mrb[47].mxu1 }
 0x2fe   :  { %6077 = vst.msk [vmem:[%s10002_s18 + $0x170] sm:$0xff] %vm6030_vm3, %v7612_v63  ;;  %v7614_v3 = vadd.f32 %v7549_v2, %v7285_v1  ;;  %v5890_v6 = vpop.f32.mrb[47].mxu0 }
 0x2ff   :  { %6075 = vst.msk [vmem:[%s10002_s18 + $0x160] sm:$0xff] %vm6030_vm3, %v7613_v62  ;;  %v7615_v7 = vadd.f32 %v5890_v6, %v3182_v4 }
 0x300   :  { %6078 = vst.msk [vmem:[%s10002_s18 + $0x178] sm:$0xff] %vm6030_vm3, %v7614_v3 }
 0x301   :  { %6076 = vst.msk [vmem:[%s10002_s18 + $0x168] sm:$0xff] %vm6030_vm3, %v7615_v7 }
 0x302   :  { %v7288_v9 = vpop.f32.mrb[48].mxu1 }
 0x303   :  { %v7552_v10 = vpop.f32.mrb[48].mxu0  ;;  %v3195_v12 = vpop.f32.mrb[49].mxu1 }
 0x304   :  { %v7616_v11 = vadd.f32 %v7552_v10, %v7288_v9  ;;  %v5903_v13 = vpop.f32.mrb[49].mxu0  ;;  %v7289_v15 = vpop.f32.mrb[50].mxu1 }
 0x305   :  { %v7617_v14 = vadd.f32 %v5903_v13, %v3195_v12  ;;  %v7553_v16 = vpop.f32.mrb[50].mxu0  ;;  %v3198_v18 = vpop.f32.mrb[51].mxu1 }
 0x306   :  { %6081 = vst.msk [vmem:[%s10002_s18 + $0x190] sm:$0xff] %vm6030_vm3, %v7616_v11  ;;  %v7618_v17 = vadd.f32 %v7553_v16, %v7289_v15  ;;  %v5906_v19 = vpop.f32.mrb[51].mxu0 }
 0x307   :  { %6079 = vst.msk [vmem:[%s10002_s18 + $0x180] sm:$0xff] %vm6030_vm3, %v7617_v14  ;;  %v7619_v25 = vadd.f32 %v5906_v19, %v3198_v18 }
 0x308   :  { %6082 = vst.msk [vmem:[%s10002_s18 + $0x198] sm:$0xff] %vm6030_vm3, %v7618_v17 }
 0x309   :  { %6080 = vst.msk [vmem:[%s10002_s18 + $0x188] sm:$0xff] %vm6030_vm3, %v7619_v25 }
 0x30a   :  { %v7292_v26 = vpop.f32.mrb[52].mxu1 }
 0x30b   :  { %v7556_v20 = vpop.f32.mrb[52].mxu0  ;;  %v3211_v29 = vpop.f32.mrb[53].mxu1 }
 0x30c   :  { %v7620_v27 = vadd.f32 %v7556_v20, %v7292_v26  ;;  %v5919_v21 = vpop.f32.mrb[53].mxu0  ;;  %v7293_v23 = vpop.f32.mrb[54].mxu1 }
 0x30d   :  { %v7621_v22 = vadd.f32 %v5919_v21, %v3211_v29  ;;  %v7557_v30 = vpop.f32.mrb[54].mxu0  ;;  %v3214_v32 = vpop.f32.mrb[55].mxu1 }
 0x30e   :  { %6085 = vst.msk [vmem:[%s10002_s18 + $0x1b0] sm:$0xff] %vm6030_vm3, %v7620_v27  ;;  %v7622_v31 = vadd.f32 %v7557_v30, %v7293_v23  ;;  %v5922_v33 = vpop.f32.mrb[55].mxu0 }
 0x30f   :  { %6083 = vst.msk [vmem:[%s10002_s18 + $0x1a0] sm:$0xff] %vm6030_vm3, %v7621_v22  ;;  %v7623_v28 = vadd.f32 %v5922_v33, %v3214_v32 }
 0x310   :  { %6086 = vst.msk [vmem:[%s10002_s18 + $0x1b8] sm:$0xff] %vm6030_vm3, %v7622_v31 }
 0x311   :  { %6084 = vst.msk [vmem:[%s10002_s18 + $0x1a8] sm:$0xff] %vm6030_vm3, %v7623_v28 }
 0x312   :  { %v7296_v24 = vpop.f32.mrb[56].mxu1 }
 0x313   :  { %v7560_v8 = vpop.f32.mrb[56].mxu0  ;;  %v3227_v35 = vpop.f32.mrb[57].mxu1 }
 0x314   :  { %v7624_v34 = vadd.f32 %v7560_v8, %v7296_v24  ;;  %v5935_v36 = vpop.f32.mrb[57].mxu0  ;;  %v7297_v38 = vpop.f32.mrb[58].mxu1 }
 0x315   :  { %v7625_v37 = vadd.f32 %v5935_v36, %v3227_v35  ;;  %v7561_v39 = vpop.f32.mrb[58].mxu0  ;;  %v3230_v41 = vpop.f32.mrb[59].mxu1 }
 0x316   :  { %6089 = vst.msk [vmem:[%s10002_s18 + $0x1d0] sm:$0xff] %vm6030_vm3, %v7624_v34  ;;  %v7626_v40 = vadd.f32 %v7561_v39, %v7297_v38  ;;  %v5938_v42 = vpop.f32.mrb[59].mxu0 }
 0x317   :  { %6087 = vst.msk [vmem:[%s10002_s18 + $0x1c0] sm:$0xff] %vm6030_vm3, %v7625_v37  ;;  %v7627_v43 = vadd.f32 %v5938_v42, %v3230_v41 }
 0x318   :  { %6090 = vst.msk [vmem:[%s10002_s18 + $0x1d8] sm:$0xff] %vm6030_vm3, %v7626_v40 }
 0x319   :  { %6088 = vst.msk [vmem:[%s10002_s18 + $0x1c8] sm:$0xff] %vm6030_vm3, %v7627_v43 }
 0x31a   :  { %v7300_v44 = vpop.f32.mrb[60].mxu1 }
 0x31b   :  { %v7564_v45 = vpop.f32.mrb[60].mxu0  ;;  %v3243_v47 = vpop.f32.mrb[61].mxu1 }
 0x31c   :  { %v7628_v46 = vadd.f32 %v7564_v45, %v7300_v44  ;;  %v5951_v48 = vpop.f32.mrb[61].mxu0  ;;  %v7301_v50 = vpop.f32.mrb[62].mxu1 }
 0x31d   :  { %v7629_v49 = vadd.f32 %v5951_v48, %v3243_v47  ;;  %v7565_v51 = vpop.f32.mrb[62].mxu0  ;;  %v3246_v53 = vpop.f32.mrb[63].mxu1 }
 0x31e   :  { %6093 = vst.msk [vmem:[%s10002_s18 + $0x1f0] sm:$0xff] %vm6030_vm3, %v7628_v46  ;;  %v7630_v52 = vadd.f32 %v7565_v51, %v7301_v50  ;;  %v5954_v54 = vpop.f32.mrb[63].mxu0 }
 0x31f   :  { %6091 = vst.msk [vmem:[%s10002_s18 + $0x1e0] sm:$0xff] %vm6030_vm3, %v7629_v49  ;;  %v7631_v55 = vadd.f32 %v5954_v54, %v3246_v53 }
 0x320   :  { %6094 = vst.msk [vmem:[%s10002_s18 + $0x1f8] sm:$0xff] %vm6030_vm3, %v7630_v52 }
 0x321   :  { %6092 = vst.msk [vmem:[%s10002_s18 + $0x1e8] sm:$0xff] %vm6030_vm3, %v7631_v55 }

</bundles_post_ra>
